<compile_context>
chip_gen: v6e
topology: v6e:2x2x1
jax: 0.10.0
libtpu: 0.0.40
codegen_flags: <defaults>
</compile_context>

<pallas_src>
import functools

import jax
import jax.numpy as jnp
import numpy as np
from jax import lax
from jax.experimental import pallas as pl
from jax.experimental.pallas import tpu as pltpu

EXPANSION = 4
BN_EPS = 1e-5


# ----------------------------- fused kernel ----------------------------------
def _bottleneck_kernel(x_ref, w1_ref, b1_ref, w2_ref, b2_ref, w3_ref, b3_ref,
                       o_ref, h1e_ref, *, H, W, F):
    """Fused Bottleneck forward for one image (one grid step).

    x_ref   : (1, H*W, Cin)    bf16  input rows (conv1 input + residual)
    w1_ref  : (Cin, P)         bf16  conv1 weight, BN1 scale folded in
    b1_ref  : (1, P)           f32   BN1 bias
    w2_ref  : (9, P, P)        bf16  conv2 taps (index dy*3+dx), BN2 scale folded
    b2_ref  : (1, P)           f32   BN2 bias
    w3_ref  : (P, Cout)        bf16  conv3 weight, BN3 scale folded in
    b3_ref  : (1, Cout)        f32   BN3 bias
    o_ref   : (1, H*W, Cout)   f32   output rows
    h1e_ref : (H*W + 2F, P)    bf16  margin-extended stage-1 activations
    """
    HW = H * W
    P = w1_ref.shape[1]

    x = x_ref[0]                                             # (HW, Cin) bf16

    # ---- stage 1: 1x1 conv (BN scale folded) + bias + ReLU -------------------
    h1 = jnp.dot(x, w1_ref[...], preferred_element_type=jnp.float32)
    h1 = jnp.maximum(h1 + b1_ref[...], 0.0)

    # Write once into the margin-extended flat scratch.  Zero margins make taps
    # that fall above/below the image read exact zeros (conv2 padding = 1).
    h1e_ref[pl.ds(0, F), :] = jnp.zeros((F, P), h1e_ref.dtype)
    h1e_ref[pl.ds(F + HW, F), :] = jnp.zeros((F, P), h1e_ref.dtype)
    h1e_ref[pl.ds(F, HW), :] = h1.astype(h1e_ref.dtype)

    # ---- stage 2: 3x3 conv as 9 contiguous-slab matmuls ----------------------
    # Output flat index k = r*W + c needs h1[r+dy-1, c+dx-1], i.e. flat scratch
    # index F + k + (dy-1)*W + (dx-1): a contiguous slab per tap (no strided
    # window copies).  Columns that cross the left/right image border are
    # masked out after the matmul.
    col = lax.broadcasted_iota(jnp.int32, (HW, 1), 0) % W    # column index
    acc = jnp.zeros((HW, P), jnp.float32)
    for dx in range(3):
        part = jnp.zeros((HW, P), jnp.float32)
        for dy in range(3):
            start = F + (dy - 1) * W + (dx - 1)              # static offset
            patch = h1e_ref[pl.ds(start, HW), :]             # (HW, P) bf16 slab
            part = part + jnp.dot(patch, w2_ref[dy * 3 + dx],
                                  preferred_element_type=jnp.float32)
        if dx == 0:
            part = jnp.where(col >= 1, part, 0.0)            # left border
        elif dx == 2:
            part = jnp.where(col <= W - 2, part, 0.0)        # right border
        acc = acc + part
    h2 = jnp.maximum(acc + b2_ref[...], 0.0)

    # ---- stage 3: 1x1 conv + bias + residual + ReLU --------------------------
    h3 = jnp.dot(h2.astype(w3_ref.dtype), w3_ref[...],
                 preferred_element_type=jnp.float32)
    out = jnp.maximum(h3 + b3_ref[...] + x.astype(jnp.float32), 0.0)
    o_ref[0] = out.astype(o_ref.dtype)


# ------------------------------- wrappers -------------------------------------
def bottleneck_forward_nhwc(x_nhwc, params):
    """Fused Bottleneck forward, NHWC activations (native TPU layout)."""
    w1, b1, w2, b2, w3, b3 = params
    N, H, W, Cin = x_nhwc.shape
    P = w1.shape[1]
    Cout = w3.shape[1]
    assert Cout == Cin, "identity residual requires inplanes == planes * expansion"
    HW = H * W
    # Zero margin above/below the image in the flat row-major h1 scratch; must
    # cover the largest tap offset (W + 1); rounded up for sublane alignment.
    F = ((W + 1 + 15) // 16) * 16

    x_rows = x_nhwc.reshape(N, HW, Cin).astype(jnp.bfloat16)
    kernel = functools.partial(_bottleneck_kernel, H=H, W=W, F=F)

    out = pl.pallas_call(
        kernel,
        out_shape=jax.ShapeDtypeStruct((N, HW, Cout), jnp.float32),
        grid=(N,),                                           # one image per step
        in_specs=[
            pl.BlockSpec((1, HW, Cin), lambda n: (n, 0, 0)),  # per-image rows
            pl.BlockSpec(w1.shape, lambda n: (0, 0)),         # resident weights
            pl.BlockSpec(b1.shape, lambda n: (0, 0)),
            pl.BlockSpec(w2.shape, lambda n: (0, 0, 0)),
            pl.BlockSpec(b2.shape, lambda n: (0, 0)),
            pl.BlockSpec(w3.shape, lambda n: (0, 0)),
            pl.BlockSpec(b3.shape, lambda n: (0, 0)),
        ],
        out_specs=pl.BlockSpec((1, HW, Cout), lambda n: (n, 0, 0)),
        scratch_shapes=[pltpu.VMEM((HW + 2 * F, P), jnp.bfloat16)],
        compiler_params=pltpu.CompilerParams(
            dimension_semantics=("parallel",),               # shard batch over TCs (v7x)
            vmem_limit_bytes=48 * 1024 * 1024),              # fits v7x's 64 MiB VMEM
    )(x_rows, w1, b1, w2, b2, w3, b3)
    return out.reshape(N, H, W, Cout)


def bottleneck_forward(x_nchw, params):
    # NCHW adapter for parity with the PyTorch module.  In an NHWC end-to-end
    # model these two transposes (one HBM read+write each) should be dropped
    # and bottleneck_forward_nhwc called directly.
    x = jnp.transpose(x_nchw, (0, 2, 3, 1))
    out = bottleneck_forward_nhwc(x, params)
    return jnp.transpose(out, (0, 3, 1, 2))


# --------------------------- parameter handling --------------------------------
def _fold_bn(gamma, beta, mean, var):
    scale = gamma / jnp.sqrt(var + BN_EPS)
    bias = beta - mean * scale
    return scale, bias


def kernel_params(raw):
    """Fold inference BN into the conv weights; bf16 weights, f32 biases."""
    w1_pt, w2_pt, w3_pt, bn1, bn2, bn3 = raw
    s1, b1 = _fold_bn(*bn1)
    s2, b2 = _fold_bn(*bn2)
    s3, b3 = _fold_bn(*bn3)
    w1 = jnp.transpose(w1_pt[:, :, 0, 0], (1, 0)) * s1[None, :]           # (Cin, P)
    w2 = jnp.transpose(w2_pt, (2, 3, 1, 0)) * s2[None, None, None, :]     # (3,3,Pin,Pout)
    w2 = w2.reshape(9, w2.shape[2], w2.shape[3])                           # (9, Pin, Pout)
    w3 = jnp.transpose(w3_pt[:, :, 0, 0], (1, 0)) * s3[None, :]           # (P, 4P)
    return (w1.astype(jnp.bfloat16), b1.reshape(1, -1).astype(jnp.float32),
            w2.astype(jnp.bfloat16), b2.reshape(1, -1).astype(jnp.float32),
            w3.astype(jnp.bfloat16), b3.reshape(1, -1).astype(jnp.float32))


def init_raw_params(key, inplanes, planes):
    ks = jax.random.split(key, 6)
    w1_pt = (inplanes ** -0.5) * jax.random.normal(
        ks[0], (planes, inplanes, 1, 1), jnp.float32)
    w2_pt = ((9 * planes) ** -0.5) * jax.random.normal(
        ks[1], (planes, planes, 3, 3), jnp.float32)
    w3_pt = (planes ** -0.5) * jax.random.normal(
        ks[2], (planes * EXPANSION, planes, 1, 1), jnp.float32)

    def bn(k, c):
        k1, k2, k3, k4 = jax.random.split(k, 4)
        gamma = 1.0 + 0.1 * jax.random.normal(k1, (c,), jnp.float32)
        beta = 0.1 * jax.random.normal(k2, (c,), jnp.float32)
        mean = 0.1 * jax.random.normal(k3, (c,), jnp.float32)
        var = 1.0 + 0.2 * jax.random.uniform(k4, (c,), jnp.float32)
        return gamma, beta, mean, var

    return (w1_pt, w2_pt, w3_pt, bn(ks[3], planes), bn(ks[4], planes),
            bn(ks[5], planes * EXPANSION))


# ------------------------------- reference -------------------------------------
def reference_forward(x_nchw, raw):
    w1_pt, w2_pt, w3_pt, bn1, bn2, bn3 = raw
    x = jnp.transpose(x_nchw, (0, 2, 3, 1))
    dn = ('NHWC', 'HWIO', 'NHWC')

    def conv(inp, w_pt, pad):
        w = jnp.transpose(w_pt, (2, 3, 1, 0))
        return jax.lax.conv_general_dilated(inp, w, (1, 1), pad,
                                            dimension_numbers=dn)

    def bn_apply(h, bnp):
        g, b, m, v = bnp
        return (h - m) / jnp.sqrt(v + BN_EPS) * g + b

    h = jnp.maximum(bn_apply(conv(x, w1_pt, 'VALID'), bn1), 0.0)
    h = jnp.maximum(bn_apply(conv(h, w2_pt, 'SAME'), bn2), 0.0)
    h = bn_apply(conv(h, w3_pt, 'VALID'), bn3)
    out = jnp.maximum(h + x, 0.0)
    return jnp.transpose(out, (0, 3, 1, 2))


if __name__ == "__main__":
    # inplanes == planes * expansion -> identity residual (stride=1, no downsample)
    inplanes, planes = 128, 32
    N, H, W = 2, 16, 16
    key = jax.random.PRNGKey(0)
    kx, kp = jax.random.split(key)
    x = jax.random.normal(kx, (N, inplanes, H, W), jnp.float32)

    raw = init_raw_params(kp, inplanes, planes)
    params = kernel_params(raw)

    out = bottleneck_forward(x, params)
    out = jax.block_until_ready(out)

    ref = reference_forward(x, raw)
    np.testing.assert_allclose(np.asarray(out), np.asarray(ref),
                               rtol=5e-2, atol=5e-2)   # bf16 matmul tolerance
    print("KERNEL_OK")
</pallas_src>

<mosaic_0001>
module attributes {stable_mosaic.version = 11 : i64} {
  func.func @_bottleneck_kernel(%arg0: i32, %arg1: memref<1x256x128xbf16, #tpu.memory_space<vmem>>, %arg2: memref<128x32xbf16, #tpu.memory_space<vmem>>, %arg3: memref<1x32xf32, #tpu.memory_space<vmem>>, %arg4: memref<9x32x32xbf16, #tpu.memory_space<vmem>>, %arg5: memref<1x32xf32, #tpu.memory_space<vmem>>, %arg6: memref<32x128xbf16, #tpu.memory_space<vmem>>, %arg7: memref<1x128xf32, #tpu.memory_space<vmem>>, %arg8: memref<1x256x128xf32, #tpu.memory_space<vmem>>, %arg9: memref<320x32xbf16, #tpu.memory_space<vmem>>) attributes {dimension_semantics = [#tpu.dimension_semantics<parallel>], iteration_bounds = array<i64: 2>, scalar_prefetch = 0 : i64, scratch_operands = 1 : i64, tpu.core_type = #tpu.core_type<tc>, window_params = [{transform_indices = @transform_0, window_bounds = array<i64: 1, 256, 128>}, {pipeline_mode = #tpu.pipeline_mode<synchronous>, transform_indices = @transform_1, window_bounds = array<i64: 128, 32>}, {pipeline_mode = #tpu.pipeline_mode<synchronous>, transform_indices = @transform_2, window_bounds = array<i64: 1, 32>}, {pipeline_mode = #tpu.pipeline_mode<synchronous>, transform_indices = @transform_3, window_bounds = array<i64: 9, 32, 32>}, {pipeline_mode = #tpu.pipeline_mode<synchronous>, transform_indices = @transform_4, window_bounds = array<i64: 1, 32>}, {pipeline_mode = #tpu.pipeline_mode<synchronous>, transform_indices = @transform_5, window_bounds = array<i64: 32, 128>}, {pipeline_mode = #tpu.pipeline_mode<synchronous>, transform_indices = @transform_6, window_bounds = array<i64: 1, 128>}, {transform_indices = @transform_7, window_bounds = array<i64: 1, 256, 128>}]} {
    %c0 = arith.constant 0 : index
    %c0_0 = arith.constant 0 : index
    %c0_1 = arith.constant 0 : index
    %0 = vector.load %arg1[%c0, %c0_0, %c0_1] : memref<1x256x128xbf16, #tpu.memory_space<vmem>>, vector<1x256x128xbf16>
    %1 = vector.shape_cast %0 : vector<1x256x128xbf16> to vector<256x128xbf16>
    %c0_2 = arith.constant 0 : index
    %c0_3 = arith.constant 0 : index
    %2 = vector.load %arg2[%c0_2, %c0_3] : memref<128x32xbf16, #tpu.memory_space<vmem>>, vector<128x32xbf16>
    %cst = arith.constant dense<0.000000e+00> : vector<256x32xf32>
    %3 = tpu.matmul %1, %2, %cst {dimension_numbers = #tpu.dot_dimension_numbers<[1], [0], [0], [1], [0, 0, 1, 1], [], []>} : vector<256x128xbf16>, vector<128x32xbf16>, vector<256x32xf32> -> vector<256x32xf32>
    %c0_4 = arith.constant 0 : index
    %c0_5 = arith.constant 0 : index
    %4 = vector.load %arg3[%c0_4, %c0_5] : memref<1x32xf32, #tpu.memory_space<vmem>>, vector<1x32xf32>
    %5 = vector.broadcast %4 : vector<1x32xf32> to vector<256x32xf32>
    %6 = arith.addf %3, %5 : vector<256x32xf32>
    %cst_6 = arith.constant 0.000000e+00 : f32
    %7 = vector.broadcast %cst_6 : f32 to vector<256x32xf32>
    %8 = arith.maximumf %6, %7 : vector<256x32xf32>
    %cst_7 = arith.constant 0.000000e+00 : bf16
    %9 = vector.broadcast %cst_7 : bf16 to vector<32x32xbf16>
    %c0_8 = arith.constant 0 : index
    %c0_9 = arith.constant 0 : index
    %10 = vector.load %arg9[%c0_8, %c0_9] : memref<320x32xbf16, #tpu.memory_space<vmem>>, vector<32x32xbf16>
    tpu.vector_store %arg9[%c0_8, %c0_9], %9 {strides = array<i32>} : memref<320x32xbf16, #tpu.memory_space<vmem>>, vector<32x32xbf16>,
    %cst_10 = arith.constant 0.000000e+00 : bf16
    %11 = vector.broadcast %cst_10 : bf16 to vector<32x32xbf16>
    %c288 = arith.constant 288 : index
    %c0_11 = arith.constant 0 : index
    %12 = vector.load %arg9[%c288, %c0_11] : memref<320x32xbf16, #tpu.memory_space<vmem>>, vector<32x32xbf16>
    tpu.vector_store %arg9[%c288, %c0_11], %11 {strides = array<i32>} : memref<320x32xbf16, #tpu.memory_space<vmem>>, vector<32x32xbf16>,
    %13 = arith.truncf %8 : vector<256x32xf32> to vector<256x32xbf16>
    %c32 = arith.constant 32 : index
    %c0_12 = arith.constant 0 : index
    %14 = vector.load %arg9[%c32, %c0_12] : memref<320x32xbf16, #tpu.memory_space<vmem>>, vector<256x32xbf16>
    tpu.vector_store %arg9[%c32, %c0_12], %13 {strides = array<i32>} : memref<320x32xbf16, #tpu.memory_space<vmem>>, vector<256x32xbf16>,
    %15 = tpu.iota {dimensions = array<i32: 0>} : vector<256x1xi32>
    %c16_i32 = arith.constant 16 : i32
    %c0_i32 = arith.constant 0 : i32
    %16 = arith.cmpi eq, %c16_i32, %c0_i32 : i32
    %c1_i32 = arith.constant 1 : i32
    %17 = arith.select %16, %c1_i32, %c16_i32 : i32
    %18 = vector.broadcast %17 : i32 to vector<256x1xi32>
    %19 = arith.remsi %15, %18 : vector<256x1xi32>
    %c0_i32_13 = arith.constant 0 : i32
    %20 = vector.broadcast %c0_i32_13 : i32 to vector<256x1xi32>
    %21 = arith.cmpi ne, %19, %20 : vector<256x1xi32>
    %c0_i32_14 = arith.constant 0 : i32
    %22 = vector.broadcast %c0_i32_14 : i32 to vector<256x1xi32>
    %23 = arith.cmpi slt, %19, %22 : vector<256x1xi32>
    %c0_i32_15 = arith.constant 0 : i32
    %24 = arith.cmpi slt, %17, %c0_i32_15 : i32
    %25 = vector.broadcast %24 : i1 to vector<256x1xi1>
    %26 = vector.broadcast %25 : vector<256x1xi1> to vector<256x1xi1>
    %27 = arith.xori %23, %26 : vector<256x1xi1>
    %28 = arith.andi %27, %21 : vector<256x1xi1>
    %29 = vector.broadcast %17 : i32 to vector<256x1xi32>
    %30 = arith.addi %19, %29 : vector<256x1xi32>
    %31 = arith.select %28, %30, %19 : vector<256x1xi1>, vector<256x1xi32>
    %cst_16 = arith.constant 0.000000e+00 : f32
    %32 = vector.broadcast %cst_16 : f32 to vector<256x32xf32>
    %cst_17 = arith.constant 0.000000e+00 : f32
    %33 = vector.broadcast %cst_17 : f32 to vector<256x32xf32>
    %c15 = arith.constant 15 : index
    %c0_18 = arith.constant 0 : index
    %34 = vector.load %arg9[%c15, %c0_18] : memref<320x32xbf16, #tpu.memory_space<vmem>>, vector<256x32xbf16>
    %c0_19 = arith.constant 0 : index
    %c0_20 = arith.constant 0 : index
    %c0_21 = arith.constant 0 : index
    %35 = vector.load %arg4[%c0_19, %c0_20, %c0_21] : memref<9x32x32xbf16, #tpu.memory_space<vmem>>, vector<1x32x32xbf16>
    %36 = vector.shape_cast %35 : vector<1x32x32xbf16> to vector<32x32xbf16>
    %cst_22 = arith.constant dense<0.000000e+00> : vector<256x32xf32>
    %37 = tpu.matmul %34, %36, %cst_22 {dimension_numbers = #tpu.dot_dimension_numbers<[1], [0], [0], [1], [0, 0, 1, 1], [], []>} : vector<256x32xbf16>, vector<32x32xbf16>, vector<256x32xf32> -> vector<256x32xf32>
    %38 = arith.addf %33, %37 : vector<256x32xf32>
    %c31 = arith.constant 31 : index
    %c0_23 = arith.constant 0 : index
    %39 = vector.load %arg9[%c31, %c0_23] : memref<320x32xbf16, #tpu.memory_space<vmem>>, vector<256x32xbf16>
    %c3 = arith.constant 3 : index
    %c0_24 = arith.constant 0 : index
    %c0_25 = arith.constant 0 : index
    %40 = vector.load %arg4[%c3, %c0_24, %c0_25] : memref<9x32x32xbf16, #tpu.memory_space<vmem>>, vector<1x32x32xbf16>
    %41 = vector.shape_cast %40 : vector<1x32x32xbf16> to vector<32x32xbf16>
    %cst_26 = arith.constant dense<0.000000e+00> : vector<256x32xf32>
    %42 = tpu.matmul %39, %41, %cst_26 {dimension_numbers = #tpu.dot_dimension_numbers<[1], [0], [0], [1], [0, 0, 1, 1], [], []>} : vector<256x32xbf16>, vector<32x32xbf16>, vector<256x32xf32> -> vector<256x32xf32>
    %43 = arith.addf %38, %42 : vector<256x32xf32>
    %c47 = arith.constant 47 : index
    %c0_27 = arith.constant 0 : index
    %44 = vector.load %arg9[%c47, %c0_27] : memref<320x32xbf16, #tpu.memory_space<vmem>>, vector<256x32xbf16>
    %c6 = arith.constant 6 : index
    %c0_28 = arith.constant 0 : index
    %c0_29 = arith.constant 0 : index
    %45 = vector.load %arg4[%c6, %c0_28, %c0_29] : memref<9x32x32xbf16, #tpu.memory_space<vmem>>, vector<1x32x32xbf16>
    %46 = vector.shape_cast %45 : vector<1x32x32xbf16> to vector<32x32xbf16>
    %cst_30 = arith.constant dense<0.000000e+00> : vector<256x32xf32>
    %47 = tpu.matmul %44, %46, %cst_30 {dimension_numbers = #tpu.dot_dimension_numbers<[1], [0], [0], [1], [0, 0, 1, 1], [], []>} : vector<256x32xbf16>, vector<32x32xbf16>, vector<256x32xf32> -> vector<256x32xf32>
    %48 = arith.addf %43, %47 : vector<256x32xf32>
    %c1_i32_31 = arith.constant 1 : i32
    %49 = vector.broadcast %c1_i32_31 : i32 to vector<256x1xi32>
    %50 = arith.cmpi sge, %31, %49 : vector<256x1xi32>
    %cst_32 = arith.constant 0.000000e+00 : f32
    %51 = vector.shape_cast %50 : vector<256x1xi1> to vector<256x1xi1>
    %52 = vector.broadcast %51 : vector<256x1xi1> to vector<256x32xi1>
    %53 = vector.broadcast %cst_32 : f32 to vector<256x32xf32>
    %54 = arith.select %52, %48, %53 : vector<256x32xi1>, vector<256x32xf32>
    %55 = arith.addf %32, %54 : vector<256x32xf32>
    %cst_33 = arith.constant 0.000000e+00 : f32
    %56 = vector.broadcast %cst_33 : f32 to vector<256x32xf32>
    %c16 = arith.constant 16 : index
    %c0_34 = arith.constant 0 : index
    %57 = vector.load %arg9[%c16, %c0_34] : memref<320x32xbf16, #tpu.memory_space<vmem>>, vector<256x32xbf16>
    %c1 = arith.constant 1 : index
    %c0_35 = arith.constant 0 : index
    %c0_36 = arith.constant 0 : index
    %58 = vector.load %arg4[%c1, %c0_35, %c0_36] : memref<9x32x32xbf16, #tpu.memory_space<vmem>>, vector<1x32x32xbf16>
    %59 = vector.shape_cast %58 : vector<1x32x32xbf16> to vector<32x32xbf16>
    %cst_37 = arith.constant dense<0.000000e+00> : vector<256x32xf32>
    %60 = tpu.matmul %57, %59, %cst_37 {dimension_numbers = #tpu.dot_dimension_numbers<[1], [0], [0], [1], [0, 0, 1, 1], [], []>} : vector<256x32xbf16>, vector<32x32xbf16>, vector<256x32xf32> -> vector<256x32xf32>
    %61 = arith.addf %56, %60 : vector<256x32xf32>
    %c32_38 = arith.constant 32 : index
    %c0_39 = arith.constant 0 : index
    %62 = vector.load %arg9[%c32_38, %c0_39] : memref<320x32xbf16, #tpu.memory_space<vmem>>, vector<256x32xbf16>
    %c4 = arith.constant 4 : index
    %c0_40 = arith.constant 0 : index
    %c0_41 = arith.constant 0 : index
    %63 = vector.load %arg4[%c4, %c0_40, %c0_41] : memref<9x32x32xbf16, #tpu.memory_space<vmem>>, vector<1x32x32xbf16>
    %64 = vector.shape_cast %63 : vector<1x32x32xbf16> to vector<32x32xbf16>
    %cst_42 = arith.constant dense<0.000000e+00> : vector<256x32xf32>
    %65 = tpu.matmul %62, %64, %cst_42 {dimension_numbers = #tpu.dot_dimension_numbers<[1], [0], [0], [1], [0, 0, 1, 1], [], []>} : vector<256x32xbf16>, vector<32x32xbf16>, vector<256x32xf32> -> vector<256x32xf32>
    %66 = arith.addf %61, %65 : vector<256x32xf32>
    %c48 = arith.constant 48 : index
    %c0_43 = arith.constant 0 : index
    %67 = vector.load %arg9[%c48, %c0_43] : memref<320x32xbf16, #tpu.memory_space<vmem>>, vector<256x32xbf16>
    %c7 = arith.constant 7 : index
    %c0_44 = arith.constant 0 : index
    %c0_45 = arith.constant 0 : index
    %68 = vector.load %arg4[%c7, %c0_44, %c0_45] : memref<9x32x32xbf16, #tpu.memory_space<vmem>>, vector<1x32x32xbf16>
    %69 = vector.shape_cast %68 : vector<1x32x32xbf16> to vector<32x32xbf16>
    %cst_46 = arith.constant dense<0.000000e+00> : vector<256x32xf32>
    %70 = tpu.matmul %67, %69, %cst_46 {dimension_numbers = #tpu.dot_dimension_numbers<[1], [0], [0], [1], [0, 0, 1, 1], [], []>} : vector<256x32xbf16>, vector<32x32xbf16>, vector<256x32xf32> -> vector<256x32xf32>
    %71 = arith.addf %66, %70 : vector<256x32xf32>
    %72 = arith.addf %55, %71 : vector<256x32xf32>
    %cst_47 = arith.constant 0.000000e+00 : f32
    %73 = vector.broadcast %cst_47 : f32 to vector<256x32xf32>
    %c17 = arith.constant 17 : index
    %c0_48 = arith.constant 0 : index
    %74 = vector.load %arg9[%c17, %c0_48] : memref<320x32xbf16, #tpu.memory_space<vmem>>, vector<256x32xbf16>
    %c2 = arith.constant 2 : index
    %c0_49 = arith.constant 0 : index
    %c0_50 = arith.constant 0 : index
    %75 = vector.load %arg4[%c2, %c0_49, %c0_50] : memref<9x32x32xbf16, #tpu.memory_space<vmem>>, vector<1x32x32xbf16>
    %76 = vector.shape_cast %75 : vector<1x32x32xbf16> to vector<32x32xbf16>
    %cst_51 = arith.constant dense<0.000000e+00> : vector<256x32xf32>
    %77 = tpu.matmul %74, %76, %cst_51 {dimension_numbers = #tpu.dot_dimension_numbers<[1], [0], [0], [1], [0, 0, 1, 1], [], []>} : vector<256x32xbf16>, vector<32x32xbf16>, vector<256x32xf32> -> vector<256x32xf32>
    %78 = arith.addf %73, %77 : vector<256x32xf32>
    %c33 = arith.constant 33 : index
    %c0_52 = arith.constant 0 : index
    %79 = vector.load %arg9[%c33, %c0_52] : memref<320x32xbf16, #tpu.memory_space<vmem>>, vector<256x32xbf16>
    %c5 = arith.constant 5 : index
    %c0_53 = arith.constant 0 : index
    %c0_54 = arith.constant 0 : index
    %80 = vector.load %arg4[%c5, %c0_53, %c0_54] : memref<9x32x32xbf16, #tpu.memory_space<vmem>>, vector<1x32x32xbf16>
    %81 = vector.shape_cast %80 : vector<1x32x32xbf16> to vector<32x32xbf16>
    %cst_55 = arith.constant dense<0.000000e+00> : vector<256x32xf32>
    %82 = tpu.matmul %79, %81, %cst_55 {dimension_numbers = #tpu.dot_dimension_numbers<[1], [0], [0], [1], [0, 0, 1, 1], [], []>} : vector<256x32xbf16>, vector<32x32xbf16>, vector<256x32xf32> -> vector<256x32xf32>
    %83 = arith.addf %78, %82 : vector<256x32xf32>
    %c49 = arith.constant 49 : index
    %c0_56 = arith.constant 0 : index
    %84 = vector.load %arg9[%c49, %c0_56] : memref<320x32xbf16, #tpu.memory_space<vmem>>, vector<256x32xbf16>
    %c8 = arith.constant 8 : index
    %c0_57 = arith.constant 0 : index
    %c0_58 = arith.constant 0 : index
    %85 = vector.load %arg4[%c8, %c0_57, %c0_58] : memref<9x32x32xbf16, #tpu.memory_space<vmem>>, vector<1x32x32xbf16>
    %86 = vector.shape_cast %85 : vector<1x32x32xbf16> to vector<32x32xbf16>
    %cst_59 = arith.constant dense<0.000000e+00> : vector<256x32xf32>
    %87 = tpu.matmul %84, %86, %cst_59 {dimension_numbers = #tpu.dot_dimension_numbers<[1], [0], [0], [1], [0, 0, 1, 1], [], []>} : vector<256x32xbf16>, vector<32x32xbf16>, vector<256x32xf32> -> vector<256x32xf32>
    %88 = arith.addf %83, %87 : vector<256x32xf32>
    %c14_i32 = arith.constant 14 : i32
    %89 = vector.broadcast %c14_i32 : i32 to vector<256x1xi32>
    %90 = arith.cmpi sle, %31, %89 : vector<256x1xi32>
    %cst_60 = arith.constant 0.000000e+00 : f32
    %91 = vector.shape_cast %90 : vector<256x1xi1> to vector<256x1xi1>
    %92 = vector.broadcast %91 : vector<256x1xi1> to vector<256x32xi1>
    %93 = vector.broadcast %cst_60 : f32 to vector<256x32xf32>
    %94 = arith.select %92, %88, %93 : vector<256x32xi1>, vector<256x32xf32>
    %95 = arith.addf %72, %94 : vector<256x32xf32>
    %c0_61 = arith.constant 0 : index
    %c0_62 = arith.constant 0 : index
    %96 = vector.load %arg5[%c0_61, %c0_62] : memref<1x32xf32, #tpu.memory_space<vmem>>, vector<1x32xf32>
    %97 = vector.broadcast %96 : vector<1x32xf32> to vector<256x32xf32>
    %98 = arith.addf %95, %97 : vector<256x32xf32>
    %cst_63 = arith.constant 0.000000e+00 : f32
    %99 = vector.broadcast %cst_63 : f32 to vector<256x32xf32>
    %100 = arith.maximumf %98, %99 : vector<256x32xf32>
    %101 = arith.truncf %100 : vector<256x32xf32> to vector<256x32xbf16>
    %c0_64 = arith.constant 0 : index
    %c0_65 = arith.constant 0 : index
    %102 = vector.load %arg6[%c0_64, %c0_65] : memref<32x128xbf16, #tpu.memory_space<vmem>>, vector<32x128xbf16>
    %cst_66 = arith.constant dense<0.000000e+00> : vector<256x128xf32>
    %103 = tpu.matmul %101, %102, %cst_66 {dimension_numbers = #tpu.dot_dimension_numbers<[1], [0], [0], [1], [0, 0, 1, 1], [], []>} : vector<256x32xbf16>, vector<32x128xbf16>, vector<256x128xf32> -> vector<256x128xf32>
    %c0_67 = arith.constant 0 : index
    %c0_68 = arith.constant 0 : index
    %104 = vector.load %arg7[%c0_67, %c0_68] : memref<1x128xf32, #tpu.memory_space<vmem>>, vector<1x128xf32>
    %105 = vector.broadcast %104 : vector<1x128xf32> to vector<256x128xf32>
    %106 = arith.addf %103, %105 : vector<256x128xf32>
    %107 = arith.extf %1 : vector<256x128xbf16> to vector<256x128xf32>
    %108 = arith.addf %106, %107 : vector<256x128xf32>
    %cst_69 = arith.constant 0.000000e+00 : f32
    %109 = vector.broadcast %cst_69 : f32 to vector<256x128xf32>
    %110 = arith.maximumf %108, %109 : vector<256x128xf32>
    %c0_70 = arith.constant 0 : index
    %c0_71 = arith.constant 0 : index
    %c0_72 = arith.constant 0 : index
    %111 = vector.load %arg8[%c0_70, %c0_71, %c0_72] : memref<1x256x128xf32, #tpu.memory_space<vmem>>, vector<1x256x128xf32>
    %112 = vector.shape_cast %111 : vector<1x256x128xf32> to vector<256x128xf32>
    %113 = vector.shape_cast %110 : vector<256x128xf32> to vector<1x256x128xf32>
    tpu.vector_store %arg8[%c0_70, %c0_71, %c0_72], %113 {strides = array<i32>} : memref<1x256x128xf32, #tpu.memory_space<vmem>>, vector<1x256x128xf32>,
    return
  }
  func.func @transform_0(%arg0: i32) -> (i32, i32, i32) {
    %c0_i32 = arith.constant 0 : i32
    %c0_i32_0 = arith.constant 0 : i32
    %c0_i32_1 = arith.constant 0 : i32
    return %arg0, %c0_i32, %c0_i32_0 : i32, i32, i32
  }
  func.func @transform_1(%arg0: i32) -> (i32, i32) {
    %c0_i32 = arith.constant 0 : i32
    %c0_i32_0 = arith.constant 0 : i32
    %c0_i32_1 = arith.constant 0 : i32
    return %c0_i32, %c0_i32_0 : i32, i32
  }
  func.func @transform_2(%arg0: i32) -> (i32, i32) {
    %c0_i32 = arith.constant 0 : i32
    %c0_i32_0 = arith.constant 0 : i32
    %c0_i32_1 = arith.constant 0 : i32
    return %c0_i32, %c0_i32_0 : i32, i32
  }
  func.func @transform_3(%arg0: i32) -> (i32, i32, i32) {
    %c0_i32 = arith.constant 0 : i32
    %c0_i32_0 = arith.constant 0 : i32
    %c0_i32_1 = arith.constant 0 : i32
    %c0_i32_2 = arith.constant 0 : i32
    return %c0_i32, %c0_i32_0, %c0_i32_1 : i32, i32, i32
  }
  func.func @transform_4(%arg0: i32) -> (i32, i32) {
    %c0_i32 = arith.constant 0 : i32
    %c0_i32_0 = arith.constant 0 : i32
    %c0_i32_1 = arith.constant 0 : i32
    return %c0_i32, %c0_i32_0 : i32, i32
  }
  func.func @transform_5(%arg0: i32) -> (i32, i32) {
    %c0_i32 = arith.constant 0 : i32
    %c0_i32_0 = arith.constant 0 : i32
    %c0_i32_1 = arith.constant 0 : i32
    return %c0_i32, %c0_i32_0 : i32, i32
  }
  func.func @transform_6(%arg0: i32) -> (i32, i32) {
    %c0_i32 = arith.constant 0 : i32
    %c0_i32_0 = arith.constant 0 : i32
    %c0_i32_1 = arith.constant 0 : i32
    return %c0_i32, %c0_i32_0 : i32, i32
  }
  func.func @transform_7(%arg0: i32) -> (i32, i32, i32) {
    %c0_i32 = arith.constant 0 : i32
    %c0_i32_0 = arith.constant 0 : i32
    %c0_i32_1 = arith.constant 0 : i32
    return %arg0, %c0_i32, %c0_i32_0 : i32, i32, i32
  }
}

</mosaic_0001>

<bundles_post_ra>
// kernel: tpu_custom_call.1
= control target key start
LH: loop header
LB: loop body
LE: loop exit
PB: predicated region body
PF: predicated region fallthrough
CT: control target
= control target key end

     0   :  { %s8753_s0 = inlined_call_operand.hbm [shape: bf16[2,256,128], index: 0, kind: input, shape index: {}]   ;;  %s8754_s1 = inlined_call_operand.vmem [shape: bf16[128,32], index: 1, kind: input, shape index: {}]   ;;  %s8755_s2 = inlined_call_operand.vmem [shape: f32[1,32], index: 2, kind: input, shape index: {}]   ;;  %s8756_s3 = inlined_call_operand.hbm [shape: bf16[9,32,32], index: 3, kind: input, shape index: {}]   ;;  %s8757_s4 = inlined_call_operand.vmem [shape: f32[1,32], index: 4, kind: input, shape index: {}]   ;;  %s8758_s5 = inlined_call_operand.vmem [shape: bf16[32,128], index: 5, kind: input, shape index: {}]   ;;  %s8759_s6 = inlined_call_operand.vmem [shape: f32[1,128], index: 6, kind: input, shape index: {}]   ;;  %s8760_s7 = inlined_call_operand.hbm [shape: f32[2,256,128], index: 7, kind: output, shape index: {}]  }
   0x1   :  { %8824 = sst [smem:[#allocation61_spill]] %s8756_s3 }
   0x2   :  { %12 = vsyncpa [#allocation4], 0 }
   0x3   :  { %14 = vsyncpa [#allocation4 + $0x1], 0 }
   0x4   :  { %15 = vsyncpa [#allocation7], 0 }
   0x5   :  { %16 = vsyncpa [#allocation5], 0 }
   0x6   :  { %18 = vsyncpa [#allocation5 + $0x1], 0  ;;  %s6745_s24 = smov 0   ;;  %s6747_s25 = smov 0  }
   0x7   :  { %s6749_s26 = smov 0   ;;  %s6751_s27 = smov 0  }
   0x8 LB: > { %s6766_s28 = sadd.s32 4294967295, %s6695_s27   ;;  %s5321_s29 = sadd.s32 4294967294, %s6695_s27   ;;  %s6695_s27 = sphi %s6751_s27, %s9105_s27   ;;  %s6691_s26 = sphi %s6749_s26, %s9104_s26   ;;  %s6687_s25 = sphi %s6747_s25, %s9103_s25   ;;  %s6683_s24 = sphi %s6745_s24, %s9102_s24  }
   0x9   : > { %p44_p0 = scmp.ne.s32.totalorder %s6687_s25, %s6683_s24  ;;  %p8762_p1 = scmp.eq.s32.totalorder %s6766_s28, 0 }
   0xa   : > { %p200_p3 = scmp.eq.s32.totalorder %s5321_s29, 1  ;;  %p5322_p5 = scmp.ge.s32.totalorder %s6695_s27, 1 }
   0xb   : > { %p6775_p4 = por %p8762_p1, %p44_p0  ;;  %p207_p7 = scmp.lt.s32.totalorder %s6695_s27, 3 }
   0xc   : > { %p6780_p6 = por %p200_p3, %p44_p0  ;;  %s6697_s10 = smov [#allocation6]  }
   0xd   : > { %s8825_s30 = scalar_select %p6775_p4, 1, 0 }
   0xe   : > { %s8826_s8 = scalar_select %p6780_p6, 1, 0 }
   0xf   : > { %p6785_p8 = pnand %p5322_p5, %p207_p7  ;;  %s225_s11 = sshll.u32 %s6697_s10, 4  ;;  %s226_s11 = int_to_ptr.vmem [resolvable:$true] %s225_s11 }
  0x10   : > { %s6799_s13 = sadd.s32 1, %s6695_s27   ;;  %s31_s14 = sadd.s32 1, %s6691_s26 }
  0x11   : > { %s8827_s9 = scalar_select %p6785_p8, 1, 0 }
  0x12   : > { %p6340_p9 = pneg %p6785_p8  ;;  %s28_s15 = ssub.s32 %s6695_s27, %s6799_s13 }
  0x13   : > { %s6584_s16 = scalar_lea.vmem %s226_s11, 2304  ;;  %p6592_p5 = scmp.lt.s32.totalorder %s226_s11, %s226_s11 }
  0x14   : > { %p6794_p11 = pnand %p6340_p9, %p8762_p1  ;;  %p6585_p13 = scmp.ne.s32.totalorder %s226_s11, %s6584_s16 }
  0x15   : > { %p6593_p7 = scmp.lt.s32.totalorder %s6584_s16, %s6584_s16 }
  0x16   : > { %p6575_p12 = pneg %p6794_p11 }
  0x17   : > { %p6594_p10 = por %p6593_p7, %p6592_p5 }
  0x18   : > { %p6587_p0 = pnand %p6585_p13, %p6575_p12 }
  0x1a   : > { %p6588_p3 = pneg %p6587_p0 }
  0x1c   : > { %p6595_p2 = pnand %p6594_p10, %p6588_p3 }
  0x1e   : > { %6598 = shalt.err (!%p6595_p2)
}
  0x1f   : > { %s8761_s17 = smov 64   ;;  %s8763_s18 = smov 4  }
  0x20   : > { %s8829_s3 = sld [smem:[#allocation61_spill]]  ;;  %p29_p2 = scmp.eq.s32.totalorder %s28_s15, 0 }
  0x21   : > { %p38_p9 = scmp.ne.s32.totalorder %s6691_s26, %s6687_s25  ;;  %p39_p10 = scmp.eq.s32.totalorder %s6695_s27, 0 }
  0x22   : > { %p6353_p12 = scmp.lt.s32.totalorder %s6695_s27, 2  ;;  %p8830_p0 = scmp.eq.s32.totalorder %s6766_s28, 1 }
  0x23   : > { %s6819_s21 = scalar_select %p29_p2, %s6691_s26, %s31_s14  }
  0x24   : > { %p40_p13 = por %p39_p10, %p38_p9  ;;  %p6823_p3 = por %p8830_p0, %p38_p9 }
  0x25   : > { %s248_s23 = sand.u32 1, %s6691_s26   ;;  %s5682_s29 = sshll.u32 %s6695_s27, 11 }
  0x26   : > { %6343 = dma.hbm_to_vmem [thread:$0]  (!%p6794_p11), %s8829_s3, 2304, %s226_s11, [#allocation7], %s8761_s17, %s8761_s17, %s8763_s18  }
  0x27   : > { %s8831_s22 = scalar_select %p6823_p3, 1, 0 }
  0x28   : > { %s5325_s10 = sshll.u32 %s248_s23, 7  ;;  %s6832_s19 = scalar_lea.hbm %s8753_s0, %s5682_s29 }
  0x29   : > { %s252_s11 = scalar_lea.vmem [#allocation3], %s5325_s10  ;;  %p6834_p11 = pnand %p6353_p12, %p40_p13 }
  0x2a   : > { %s259_s14 = sshll.u32 %s252_s11, 4  ;;  %s6840_s20 = scalar_lea.sflag [#allocation4], %s248_s23  ;;  %s6838_s14 = int_to_ptr.vmem [resolvable:$true] %s259_s14 }
  0x2b   : > { %s6599_s17 = scalar_lea.hbm %s6832_s19, 2048  ;;  %p6601_p7 = pneg %p6834_p11 }
  0x2c   : > { %p6600_p5 = scmp.ne.s32.totalorder %s6832_s19, %s6599_s17  ;;  %s6604_s10 = scalar_lea.hbm %s8753_s0, 4096 }
  0x2d   : > { %p6605_p10 = scmp.lt.s32.totalorder %s6832_s19, %s8753_s0  ;;  %p6606_p12 = scmp.lt.s32.totalorder %s6604_s10, %s6599_s17 }
  0x2e   : > { %p6602_p2 = pnand %p6601_p7, %p6600_p5 }
  0x2f   : > { %p6607_p13 = por %p6606_p12, %p6605_p10 }
  0x30   : > { %p6603_p9 = pneg %p6602_p2 }
  0x32   : > { %p6608_p0 = pnand %p6607_p13, %p6603_p9 }
  0x34   : > { %6611 = shalt.err (!%p6608_p0)
}
  0x35   : > { %s6612_s23 = scalar_lea.vmem %s6838_s14, 2048  ;;  %s6700_s18 = smov [#allocation3]  }
  0x36   : > { %p6613_p1 = scmp.ne.s32.totalorder %s6838_s14, %s6612_s23  ;;  %s6617_s3 = sshll.u32 %s6700_s18, 4  ;;  %s6618_s3 = int_to_ptr.vmem [resolvable:$false] %s6617_s3 }
  0x37   : > { %s6619_s29 = scalar_lea.vmem %s6618_s3, 4096  ;;  %p6620_p2 = scmp.lt.s32.totalorder %s6838_s14, %s6618_s3 }
  0x38   : > { %p6615_p6 = pnand %p6613_p1, %p6601_p7  ;;  %p6621_p3 = scmp.lt.s32.totalorder %s6619_s29, %s6612_s23 }
  0x3a   : > { %p6616_p5 = pneg %p6615_p6  ;;  %p6622_p4 = por %p6621_p3, %p6620_p2 }
  0x3c   : > { %p6623_p8 = pnand %p6622_p4, %p6616_p5 }
  0x3e   : > { %6626 = shalt.err (!%p6623_p8)
}
  0x3f   : > { %s8833_s17 = smov 4   ;;  %s8834_s12 = smov 64  }
  0x40   : > { %6347 = dma.hbm_to_vmem [thread:$0]  (!%p6834_p11), %s6832_s19, 2048, %s6838_s14, %s6840_s20, %s8834_s12, %s8834_s12, %s8833_s17  }
  0x41   : > { %p8835_p1 = scmp.ne.s32.totalorder %s8827_s9, 0 }
  0x43   : > { %271 = sbr.rel (%p8835_p1) target bundleno = 1088 (0x440), region = 48 }
  0x48   : > { %s6867_s18 = sand.u32 1, %s6687_s25   ;;  %p8836_p4 = scmp.ne.s32.totalorder %s8825_s30, 0 }
  0x49   : > { %s5329_s3 = sshll.u32 %s6867_s18, 7  ;;  %s274_s10 = scalar_lea.sflag [#allocation4], %s6867_s18 }
  0x4a   : > { %s6871_s16 = scalar_lea.vmem [#allocation3], %s5329_s3 }
  0x4b   : > { %6670 = dma.done.wait (%p8836_p4), %s274_s10, 2048  }
  0x4c   : > { %6672 = vsyncadd (%p8836_p4), %s274_s10, 4294965248  ;;  %p8837_p6 = scmp.eq.s32.totalorder %s6766_s28, 0 }
  0x4e   : > { %6674 = dma.done.wait (%p8837_p6), [#allocation7], 2304   ;;  %p8838_p8 = pmov %p8837_p6 }
  0x4f   : > { %v6394_v0 = vld [vmem:[%s8754_s1 + $0x38] sm:$0xff]   ;;  %v6395_v1 = vld [vmem:[%s8754_s1 + $0x30] sm:$0xff]   ;;  %v6396_v2 = vld [vmem:[%s8754_s1 + $0x28] sm:$0xff]   ;;  %vm705_vm0 = vcmask 257024   ;;  %v6701_v24 = vmov 0   ;;  %vm1584_vm1 = vcmask 261120  }
  0x50   : > { %6676 = vsyncadd (%p8838_p8), [#allocation7], 4294964992  ;;  %5920 = vmatprep.subr.bf16.mxu0 %v6394_v0  ;;  %v6397_v3 = vld [vmem:[%s8754_s1 + $0x20] sm:$0xff]   ;;  %v6398_v5 = vld [vmem:[%s8754_s1 + $0x18] sm:$0xff]   ;;  %709 = vst.msk [vmem:[#allocation2 + $0xc] sm:$0xf] %vm705_vm0, %v6701_v24 }
  0x51   : > { %5921 = vmatpush3.bf16.msra.mxu0 %v6394_v0  ;;  %v313_v4 = vld [vmem:[%s6871_s16] sm:$0xff]   ;;  %v6399_v6 = vld [vmem:[%s8754_s1 + $0x10] sm:$0xff]   ;;  %v6400_v7 = vld [vmem:[%s8754_s1 + $0x8] sm:$0xff]   ;;  %707 = vst.msk [vmem:[#allocation2 + $0x4] sm:$0xf] %vm705_vm0, %v6701_v24  ;;  %s5331_s9 = sshll.u32 %s6867_s18, 8 }
  0x52   : > { %5922 = vmatprep.subr.bf16.mxu0 %v6395_v1  ;;  %5936 = vmatprep.mubr.bf16.mxu0 %v313_v4  ;;  %v6401_v8 = vld [vmem:[%s8754_s1] sm:$0xff]   ;;  %v315_v9 = vld [vmem:[%s6871_s16 + $0x8] sm:$0xff]   ;;  %v317_v10 = vld [vmem:[%s6871_s16 + $0x10] sm:$0xff]   ;;  %708 = vst.msk [vmem:[#allocation2 + $0x8] sm:$0xf] %vm705_vm0, %v6701_v24  ;;  %s8626_s19 = scalar_lea.vmem [#allocation8], %s5331_s9 }
  0x53   : > { %v319_v11 = vld [vmem:[%s6871_s16 + $0x18] sm:$0xff]   ;;  %v321_v12 = vld [vmem:[%s6871_s16 + $0x20] sm:$0xff]   ;;  %v323_v13 = vld [vmem:[%s6871_s16 + $0x28] sm:$0xff]   ;;  %710 = vst.msk [vmem:[#allocation2 + $0x90] sm:$0xf] %vm705_vm0, %v6701_v24  ;;  %s5238_s14 = sshll.u32 %s8626_s19, 4  ;;  %s8708_s14 = int_to_ptr.vmem [resolvable:$true] %s5238_s14 }
  0x54   : > { %v325_v14 = vld [vmem:[%s6871_s16 + $0x30] sm:$0xff]   ;;  %v327_v15 = vld [vmem:[%s6871_s16 + $0x38] sm:$0xff]   ;;  %v329_v16 = vld [vmem:[%s6871_s16 + $0x40] sm:$0xff]   ;;  %711 = vst.msk [vmem:[#allocation2 + $0x94] sm:$0xf] %vm705_vm0, %v6701_v24  ;;  %s5225_s11 = scalar_lea.sflag [#allocation5], %s6867_s18 }
  0x55   : > { %5923 = vmatpush3.bf16.msra.mxu0 %v6395_v1  ;;  %v331_v17 = vld [vmem:[%s6871_s16 + $0x48] sm:$0xff]   ;;  %v333_v18 = vld [vmem:[%s6871_s16 + $0x50] sm:$0xff]   ;;  %v335_v19 = vld [vmem:[%s6871_s16 + $0x58] sm:$0xff]   ;;  %712 = vst.msk [vmem:[#allocation2 + $0x98] sm:$0xf] %vm705_vm0, %v6701_v24  ;;  %s6627_s23 = scalar_lea.vmem %s8708_s14, 4096 }
  0x56   : > { %5924 = vmatprep.subr.bf16.mxu0 %v6396_v2  ;;  %v337_v20 = vld [vmem:[%s6871_s16 + $0x60] sm:$0xff]   ;;  %v339_v21 = vld [vmem:[%s6871_s16 + $0x68] sm:$0xff]   ;;  %v341_v22 = vld [vmem:[%s6871_s16 + $0x70] sm:$0xff]   ;;  %vm1419_vm2 = vsmask.f32 4352  ;;  %p6628_p3 = scmp.ne.s32.totalorder %s8708_s14, %s6627_s23  ;;  %p9099_p11 = scmp.ne.s32.totalorder %s8831_s22, 0 }
  0x57   : > { %v343_v23 = vld [vmem:[%s6871_s16 + $0x78] sm:$0xff]   ;;  %v6419_v26 = vld [vmem:[#allocation6 + $0x30] sm:$0xff]   ;;  %v6927_v27 = vld [vmem:[#allocation6 + $0x68] sm:$0xff]   ;;  %vm3557_vm3 = vsmask.f32 7424 }
  0x58   : > { %v6418_v25 = vld [vmem:[#allocation6 + $0x38] sm:$0xff]   ;;  %v6930_v28 = vld [vmem:[#allocation6 + $0x8] sm:$0xff]   ;;  %v6936_v29 = vld [vmem:[%s8755_s2] ss:$0 sm:$0xff]  ;;  %p6629_p7 = pnand %p6628_p3, %p9099_p11 }
  0x59   : > { %5925 = vmatpush3.bf16.msra.mxu0 %v6396_v2  ;;  %6328 = vmatprep.subr.bf16.mxu1 %v6418_v25  ;;  %v1291_v39 = vld [vmem:[#allocation2 + $0x4] sm:$0x8]  ;;  %v1292_v40 = vld [vmem:[#allocation2 + $0x8] sm:$0xf]  ;;  %v1328_v61 = vld [vmem:[#allocation2 + $0xc] sm:$0x8] }
  0x5a   : > { %5926 = vmatprep.subr.bf16.mxu0 %v6397_v3  ;;  %6330 = vmatpush3.bf16.msra.mxu1 %v6418_v25  ;;  %v5424_v46 = vcombine.low %v1291_v39, %v1292_v40  ;;  %v1293_v1 = vld [vmem:[#allocation2 + $0xc] sm:$0xf]  ;;  %p6630_p9 = pneg %p6629_p7 }
  0x5b   : > { %6329 = vmatprep.subr.bf16.mxu1 %v6419_v26 }
  0x5c   : > { %v1804_v55 = vshrl.u32 %v5424_v46, 16  ;;  %v1807_v56 = vshll.u32 %v5424_v46, 16 }
  0x5d   : > { %5927 = vmatpush3.bf16.msra.mxu0 %v6397_v3 }
  0x5e   : > { %5928 = vmatprep.subr.bf16.mxu0 %v6398_v5  ;;  %6331 = vmatpush3.bf16.msra.mxu1 %v6419_v26  ;;  %v6951_v4 = vrot.slane %v1804_v55, 3 }
  0x5f   : > { %6004 = vmatprep.subr.bf16.mxu1 %v6930_v28 }
  0x61   : > { %5929 = vmatpush3.bf16.msra.mxu0 %v6398_v5  ;;  %v6953_v5 = vrot.slane %v1807_v56, 4 }
  0x62   : > { %5930 = vmatprep.subr.bf16.mxu0 %v6399_v6 }
  0x65   : > { %5931 = vmatpush3.bf16.msra.mxu0 %v6399_v6 }
  0x66   : > { %5932 = vmatprep.subr.bf16.mxu0 %v6400_v7 }
  0x69   : > { %5933 = vmatpush3.bf16.msra.mxu0 %v6400_v7 }
  0x6a   : > { %5934 = vmatprep.subr.bf16.mxu0 %v6401_v8 }
  0x6d   : > { %5935 = vmatpush3.bf16.msra.mxu0 %v6401_v8 }
  0x6e   : > { %5968 = vmatprep.subr.bf16.mxu0 %v6418_v25 }
  0x70   : > { %5937 = vmatmul.mubr.bf16.vlgmr.msra.gmra.mxu0 %v315_v9 }
  0x71   : > { %5940 = vmatprep.mubr.bf16.mxu0 %v317_v10  ;;  %5969 = vmatpush3.bf16.msra.mxu0 %v6418_v25 }
  0x72   : > { %5970 = vmatprep.subr.bf16.mxu0 %v6419_v26 }
  0x75   : > { %5971 = vmatpush3.bf16.msra.mxu0 %v6419_v26 }
  0x76   : > { %6040 = vmatprep.subr.bf16.mxu0 %v6927_v27 }
  0x78   : > { %5941 = vmatmul.mubr.bf16.gmra.mxu0 %v319_v11 }
  0x79   : > { %5944 = vmatprep.mubr.bf16.mxu0 %v321_v12 }
  0x80   : > { %5945 = vmatmul.mubr.bf16.gmra.mxu0 %v323_v13 }
  0x81   : > { %5948 = vmatprep.mubr.bf16.mxu0 %v325_v14 }
  0x88   : > { %5949 = vmatmul.mubr.bf16.gmra.mxu0 %v327_v15 }
  0x89   : > { %5952 = vmatprep.mubr.bf16.mxu0 %v329_v16 }
  0x90   : > { %5953 = vmatmul.mubr.bf16.gmra.mxu0 %v331_v17 }
  0x91   : > { %5956 = vmatprep.mubr.bf16.mxu0 %v333_v18 }
  0x98   : > { %5957 = vmatmul.mubr.bf16.gmra.mxu0 %v335_v19 }
  0x99   : > { %5960 = vmatprep.mubr.bf16.mxu0 %v337_v20 }
  0xa0   : > { %5961 = vmatmul.mubr.bf16.gmra.mxu0 %v339_v21 }
  0xa1   : > { %5964 = vmatprep.mubr.bf16.mxu0 %v341_v22 }
  0xa8   : > { %5965 = vmatmul.mubr.bf16.gmra.mxu0 %v343_v23 }
 0x130   : > { %v5938_v30 = vpop.f32.mrf.mxu0 }
 0x131   : > { %v555_v31 = vadd.f32 %v5938_v30, %v6936_v29 }
 0x132   : > { %v546_v32 = vpop.f32.mrf.mxu0 }
 0x133   : > { %v675_v33 = vmax.f32 %v555_v31, 0.0  ;;  %v547_v34 = vadd.f32 %v6936_v29, %v546_v32 }
 0x134   : > { %v5939_v35 = vpop.f32.mrf.mxu0 }
 0x135   : > { %v5685_v36 = vpack.c.bf16 %v675_v33, %v675_v33  ;;  %v673_v37 = vmax.f32 %v547_v34, 0.0  ;;  %v558_v38 = vadd.f32 %v5939_v35, %v6936_v29 }
 0x136   : > { %v549_v41 = vpop.f32.mrf.mxu0 }
 0x137   : > { %844 = vst.msk [vmem:[#allocation2 + $0x18] sm:$0xf] %vm705_vm0, %v5685_v36  ;;  %v5683_v42 = vpack.c.bf16 %v673_v37, %v673_v37  ;;  %v676_v43 = vmax.f32 %v558_v38, 0.0  ;;  %v550_v44 = vadd.f32 %v6936_v29, %v549_v41 }
 0x138   : > { %v5942_v45 = vpop.f32.mrf.mxu0 }
 0x139   : > { %842 = vst.msk [vmem:[#allocation2 + $0x10] sm:$0xf] %vm705_vm0, %v5683_v42  ;;  %v5686_v47 = vpack.c.bf16 %v676_v43, %v676_v43  ;;  %v674_v48 = vmax.f32 %v550_v44, 0.0  ;;  %v571_v49 = vadd.f32 %v5942_v45, %v6936_v29 }
 0x13a   : > { %v562_v50 = vpop.f32.mrf.mxu0 }
 0x13b   : > { %845 = vst.msk [vmem:[#allocation2 + $0x1c] sm:$0xf] %vm705_vm0, %v5686_v47  ;;  %v5684_v51 = vpack.c.bf16 %v674_v48, %v674_v48  ;;  %v679_v52 = vmax.f32 %v571_v49, 0.0  ;;  %v563_v53 = vadd.f32 %v6936_v29, %v562_v50 }
 0x13c   : > { %v5943_v54 = vpop.f32.mrf.mxu0 }
 0x13d   : > { %843 = vst.msk [vmem:[#allocation2 + $0x14] sm:$0xf] %vm705_vm0, %v5684_v51  ;;  %v5689_v57 = vpack.c.bf16 %v679_v52, %v679_v52  ;;  %v677_v58 = vmax.f32 %v563_v53, 0.0  ;;  %v574_v59 = vadd.f32 %v5943_v54, %v6936_v29 }
 0x13e   : > { %v565_v60 = vpop.f32.mrf.mxu0  ;;  %v1296_v9 = vld [vmem:[#allocation2 + $0x18] sm:$0xf] }
 0x13f   : > { %848 = vst.msk [vmem:[#allocation2 + $0x28] sm:$0xf] %vm705_vm0, %v5689_v57  ;;  %v5687_v62 = vpack.c.bf16 %v677_v58, %v677_v58  ;;  %v680_v63 = vmax.f32 %v574_v59, 0.0  ;;  %v566_v0 = vadd.f32 %v6936_v29, %v565_v60  ;;  %v6963_v19 = vld [vmem:[#allocation2 + $0x18] sm:$0xf] }
 0x140   : > { %v5946_v2 = vpop.f32.mrf.mxu0  ;;  %v1294_v3 = vld [vmem:[#allocation2 + $0x10] sm:$0xf]  ;;  %8840 = vst [vmem:[#allocation13_spill] sm:$0xff] %v6963_v19 }
 0x141   : > { %846 = vst.msk [vmem:[#allocation2 + $0x20] sm:$0xf] %vm705_vm0, %v5687_v62  ;;  %v5690_v6 = vpack.c.bf16 %v680_v63, %v680_v63  ;;  %v678_v7 = vmax.f32 %v566_v0, 0.0  ;;  %v587_v8 = vadd.f32 %v5946_v2, %v6936_v29  ;;  %v5389_v10 = vcombine.low %v1328_v61, %v1294_v3 }
 0x142   : > { %v578_v11 = vpop.f32.mrf.mxu0  ;;  %v1297_v12 = vld [vmem:[#allocation2 + $0x1c] sm:$0xf]  ;;  %v6959_v14 = vcombine.low %v1293_v1, %v1294_v3 }
 0x143   : > { %v6957_v13 = vld [vmem:[#allocation2 + $0x1c] sm:$0xf]  ;;  %849 = vst.msk [vmem:[#allocation2 + $0x2c] sm:$0xf] %vm705_vm0, %v5690_v6  ;;  %v5688_v15 = vpack.c.bf16 %v678_v7, %v678_v7  ;;  %v683_v16 = vmax.f32 %v587_v8, 0.0  ;;  %v579_v17 = vadd.f32 %v6936_v29, %v578_v11  ;;  %v1421_v18 = vshrl.u32 %v5389_v10, 16 }
 0x144   : > { %8839 = vst [vmem:[#allocation12_spill] sm:$0xff] %v6957_v13  ;;  %v5947_v20 = vpop.f32.mrf.mxu0  ;;  %v1295_v21 = vld [vmem:[#allocation2 + $0x14] sm:$0xf]  ;;  %v1424_v22 = vshll.u32 %v5389_v10, 16  ;;  %v6966_v25 = vcombine.low %v1296_v9, %v1297_v12 }
 0x145   : > { %v2012_v23 = vld [vmem:[#allocation2 + $0x14] sm:$0x8]  ;;  %847 = vst.msk [vmem:[#allocation2 + $0x24] sm:$0xf] %vm705_vm0, %v5688_v15  ;;  %v5693_v30 = vpack.c.bf16 %v683_v16, %v683_v16  ;;  %v681_v31 = vmax.f32 %v579_v17, 0.0  ;;  %v590_v32 = vadd.f32 %v5947_v20, %v6936_v29  ;;  %v5390_v33 = vcombine.low %v1295_v21, %v1296_v9 }
 0x146   : > { %v581_v34 = vpop.f32.mrf.mxu0  ;;  %v1423_v35 = vrot.slane %v1421_v18, 3  ;;  %v1426_v36 = vrot.slane %v1424_v22, 4  ;;  %v6972_v37 = vcombine.low %v1294_v3, %v1295_v21  ;;  %v5445_v38 = vcombine.low %v2012_v23, %v6963_v19  ;;  %v1300_v56 = vld [vmem:[#allocation2 + $0x28] sm:$0xf] }
 0x147   : > { %852 = vst.msk [vmem:[#allocation2 + $0x38] sm:$0xf] %vm705_vm0, %v5693_v30  ;;  %v5691_v39 = vpack.c.bf16 %v681_v31, %v681_v31  ;;  %v684_v40 = vmax.f32 %v590_v32, 0.0  ;;  %v582_v41 = vadd.f32 %v6936_v29, %v581_v34  ;;  %v1429_v42 = vshrl.u32 %v5390_v33, 16  ;;  %v2017_v63 = vld [vmem:[#allocation2 + $0x28] sm:$0xf] }
 0x148   : > { %v5950_v43 = vpop.f32.mrf.mxu0  ;;  %v1427_v44 = vor.u32 %v1426_v36, %v1423_v35  ;;  %v1432_v45 = vshll.u32 %v5390_v33, 16  ;;  %v1298_v46 = vld [vmem:[#allocation2 + $0x20] sm:$0xf]  ;;  %v2134_v48 = vshrl.u32 %v5445_v38, 16  ;;  %v2137_v0 = vshll.u32 %v5445_v38, 16 }
 0x149   : > { %v6977_v47 = vld [vmem:[#allocation2 + $0x20] sm:$0xf]  ;;  %850 = vst.msk [vmem:[#allocation2 + $0x30] sm:$0xf] %vm705_vm0, %v5691_v39  ;;  %v5694_v49 = vpack.c.bf16 %v684_v40, %v684_v40  ;;  %v682_v50 = vmax.f32 %v582_v41, 0.0  ;;  %v603_v51 = vadd.f32 %v5950_v43, %v6936_v29  ;;  %v1431_v52 = vrot.slane %v1429_v42, 3 }
 0x14a   : > { %8841 = vst [vmem:[#allocation14_spill] sm:$0xff] %v6977_v47  ;;  %v594_v53 = vpop.f32.mrf.mxu0  ;;  %v1434_v54 = vrot.slane %v1432_v45, 4  ;;  %v5391_v55 = vcombine.low %v1297_v12, %v1298_v46  ;;  %v1301_v57 = vld [vmem:[#allocation2 + $0x2c] sm:$0xf]  ;;  %v6983_v58 = vcombine.low %v6957_v13, %v6977_v47  ;;  %v6985_v59 = vrot.slane %v2134_v48, 3  ;;  %v6432_v43 = vld [vmem:[#allocation6 + $0x60] sm:$0xff]  }
 0x14b   : > { %853 = vst.msk [vmem:[#allocation2 + $0x3c] sm:$0xf] %vm705_vm0, %v5694_v49  ;;  %v5692_v60 = vpack.c.bf16 %v682_v50, %v682_v50  ;;  %v687_v61 = vmax.f32 %v603_v51, 0.0  ;;  %v595_v62 = vadd.f32 %v6936_v29, %v594_v53  ;;  %v6993_v9 = vcombine.low %v1300_v56, %v1301_v57 }
 0x14c   : > { %v5951_v1 = vpop.f32.mrf.mxu0  ;;  %v6989_v2 = vor.u32 %v1434_v54, %v1431_v52  ;;  %v1438_v3 = vshrl.u32 %v5391_v55, 16  ;;  %v1441_v6 = vshll.u32 %v5391_v55, 16  ;;  %v1299_v7 = vld [vmem:[#allocation2 + $0x24] sm:$0xf]  ;;  %v7007_v36 = vrot.slane %v2137_v0, 4 }
 0x14d   : > { %v6991_v8 = vld [vmem:[#allocation2 + $0x24] sm:$0xf]  ;;  %8843 = vst [vmem:[#allocation16_spill] sm:$0xff] %v6993_v9  ;;  %851 = vst.msk [vmem:[#allocation2 + $0x34] sm:$0xf] %vm705_vm0, %v5692_v60  ;;  %v5697_v10 = vpack.c.bf16 %v687_v61, %v687_v61  ;;  %v685_v11 = vmax.f32 %v595_v62, 0.0  ;;  %v606_v12 = vadd.f32 %v5951_v1, %v6936_v29  ;;  %v5392_v15 = vcombine.low %v1299_v7, %v1300_v56 }
 0x14e   : > { %8842 = vst [vmem:[#allocation15_spill] sm:$0xff] %v6991_v8  ;;  %v597_v16 = vpop.f32.mrf.mxu0  ;;  %v1436_v17 = vsel %vm1419_vm2, %v1427_v44, %v6989_v2  ;;  %v1440_v18 = vrot.slane %v1438_v3, 3  ;;  %v1443_v20 = vrot.slane %v1441_v6, 4  ;;  %v7000_v21 = vcombine.low %v6991_v8, %v2017_v63  ;;  %v7031_v1 = vld [vmem:[#allocation6 + $0x18] sm:$0xff]  }
 0x14f   : > { %856 = vst.msk [vmem:[#allocation2 + $0x48] sm:$0xf] %vm705_vm0, %v5697_v10  ;;  %v5695_v22 = vpack.c.bf16 %v685_v11, %v685_v11  ;;  %v688_v23 = vmax.f32 %v606_v12, 0.0  ;;  %v598_v30 = vadd.f32 %v6936_v29, %v597_v16  ;;  %5972 = vmatprep.mubr.msk.bf16.mxu0 %vm1584_vm1, %v1436_v17  ;;  %v1447_v31 = vshrl.u32 %v5392_v15, 16  ;;  %v7036_v10 = vld [vmem:[#allocation2 + $0x38] sm:$0xf] }
 0x150   : > { %v5954_v32 = vpop.f32.mrf.mxu0  ;;  %v1444_v33 = vor.u32 %v1443_v20, %v1440_v18  ;;  %v1450_v34 = vshll.u32 %v5392_v15, 16  ;;  %v7005_v35 = vld [vmem:[#allocation2 + $0x30] sm:$0xf]  ;;  %v2142_v38 = vshrl.u32 %v6983_v58, 16  ;;  %v2140_v49 = vor.u32 %v7007_v36, %v6985_v59 }
 0x151   : > { %854 = vst.msk [vmem:[#allocation2 + $0x40] sm:$0xf] %vm705_vm0, %v5695_v22  ;;  %v5698_v39 = vpack.c.bf16 %v688_v23, %v688_v23  ;;  %v686_v40 = vmax.f32 %v598_v30, 0.0  ;;  %v619_v41 = vadd.f32 %v5954_v32, %v6936_v29  ;;  %v1449_v42 = vrot.slane %v1447_v31, 3 }
 0x152   : > { %v610_v44 = vpop.f32.mrf.mxu0  ;;  %v7014_v45 = vsel %vm1419_vm2, %v6989_v2, %v1444_v33  ;;  %v1452_v46 = vrot.slane %v1450_v34, 4  ;;  %v5393_v48 = vcombine.low %v1301_v57, %v7005_v35  ;;  %v2144_v53 = vrot.slane %v2142_v38, 3  ;;  %v7044_v22 = vld [vmem:[#allocation2 + $0x3c] sm:$0xf] }
 0x153   : > { %857 = vst.msk [vmem:[#allocation2 + $0x4c] sm:$0xf] %vm705_vm0, %v5698_v39  ;;  %v5696_v50 = vpack.c.bf16 %v686_v40, %v686_v40  ;;  %v691_v51 = vmax.f32 %v619_v41, 0.0  ;;  %v611_v52 = vadd.f32 %v6936_v29, %v610_v44  ;;  %5973 = vmatmul.mubr.msk.bf16.vlgmr.msra.gmra.mxu0 %vm1584_vm1, %v7014_v45  ;;  %v2145_v57 = vshll.u32 %v6983_v58, 16 }
 0x154   : > { %v5955_v54 = vpop.f32.mrf.mxu0  ;;  %v1453_v55 = vor.u32 %v1452_v46, %v1449_v42  ;;  %v1456_v56 = vshrl.u32 %v5393_v48, 16  ;;  %v1459_v60 = vshll.u32 %v5393_v48, 16  ;;  %6041 = vmatpush3.bf16.msra.mxu0 %v6927_v27  ;;  %v7025_v61 = vld [vmem:[#allocation2 + $0x34] sm:$0xf]  ;;  %v2151_v30 = vshrl.u32 %v7000_v21, 16 }
 0x155   : > { %855 = vst.msk [vmem:[#allocation2 + $0x44] sm:$0xf] %vm705_vm0, %v5696_v50  ;;  %v5701_v59 = vpack.c.bf16 %v691_v51, %v691_v51  ;;  %v689_v62 = vmax.f32 %v611_v52, 0.0  ;;  %v622_v63 = vadd.f32 %v5955_v54, %v6936_v29  ;;  %6042 = vmatprep.subr.bf16.mxu0 %v6432_v43  ;;  %v2147_v7 = vrot.slane %v2145_v57, 4  ;;  %v2019_v48 = vld [vmem:[#allocation2 + $0x30] sm:$0xf] }
 0x156   : > { %v613_v3 = vpop.f32.mrf.mxu0  ;;  %v7034_v6 = vsel %vm1419_vm2, %v1444_v33, %v1453_v55  ;;  %v1458_v27 = vrot.slane %v1456_v56, 3  ;;  %v1461_v58 = vrot.slane %v1459_v60, 4  ;;  %v5394_v16 = vcombine.low %v7025_v61, %v7036_v10  ;;  %v2018_v57 = vld [vmem:[#allocation2 + $0x2c] sm:$0xf] }
 0x157   : > { %860 = vst.msk [vmem:[#allocation2 + $0x58] sm:$0xf] %vm705_vm0, %v5701_v59  ;;  %v5699_v11 = vpack.c.bf16 %v689_v62, %v689_v62  ;;  %v692_v12 = vmax.f32 %v622_v63, 0.0  ;;  %v614_v15 = vadd.f32 %v6936_v29, %v613_v3  ;;  %5976 = vmatprep.mubr.msk.bf16.mxu0 %vm1584_vm1, %v7034_v6  ;;  %v2148_v20 = vor.u32 %v2147_v7, %v2144_v53 }
 0x158   : > { %v5958_v17 = vpop.f32.mrf.mxu0  ;;  %v1462_v18 = vor.u32 %v1461_v58, %v1458_v27  ;;  %6043 = vmatpush3.bf16.msra.mxu0 %v6432_v43  ;;  %v7046_v23 = vld [vmem:[#allocation2 + $0x40] sm:$0xf]  ;;  %v2154_v31 = vshll.u32 %v7000_v21, 16  ;;  %v1465_v36 = vshrl.u32 %v5394_v16, 16  ;;  %v1468_v41 = vshll.u32 %v5394_v16, 16 }
 0x159   : > { %858 = vst.msk [vmem:[#allocation2 + $0x50] sm:$0xf] %vm705_vm0, %v5699_v11  ;;  %v5702_v32 = vpack.c.bf16 %v692_v12, %v692_v12  ;;  %v690_v33 = vmax.f32 %v614_v15, 0.0  ;;  %v635_v34 = vadd.f32 %v5958_v17, %v6936_v29  ;;  %6112 = vmatprep.subr.bf16.mxu0 %v7031_v1  ;;  %v2149_v40 = vsel %vm1419_vm2, %v2140_v49, %v2148_v20  ;;  %v7070_v16 = vld [vmem:[#allocation6] sm:$0xff]  }
 0x15a   : > { %v626_v38 = vpop.f32.mrf.mxu0  ;;  %v7054_v39 = vsel %vm1419_vm2, %v1453_v55, %v1462_v18  ;;  %v5395_v42 = vcombine.low %v7044_v22, %v7046_v23  ;;  %v1467_v46 = vrot.slane %v1465_v36, 3  ;;  %v1470_v51 = vrot.slane %v1468_v41, 4  ;;  %v2020_v36 = vld [vmem:[#allocation2 + $0x34] sm:$0xf] }
 0x15b   : > { %861 = vst.msk [vmem:[#allocation2 + $0x5c] sm:$0xf] %vm705_vm0, %v5702_v32  ;;  %v5700_v21 = vpack.c.bf16 %v690_v33, %v690_v33  ;;  %v695_v43 = vmax.f32 %v635_v34, 0.0  ;;  %v627_v44 = vadd.f32 %v6936_v29, %v626_v38  ;;  %5977 = vmatmul.mubr.msk.bf16.gmra.mxu0 %vm1584_vm1, %v7054_v39  ;;  %v2153_v53 = vrot.slane %v2151_v30, 3 }
 0x15c   : > { %6044 = vmatprep.mubr.msk.bf16.mxu0 %vm1584_vm1, %v2149_v40  ;;  %v5959_v50 = vpop.f32.mrf.mxu0  ;;  %v1474_v49 = vshrl.u32 %v5395_v42, 16  ;;  %v1477_v52 = vshll.u32 %v5395_v42, 16  ;;  %v2156_v60 = vrot.slane %v2154_v31, 4  ;;  %v1471_v62 = vor.u32 %v1470_v51, %v1467_v46  ;;  %v7066_v58 = vld [vmem:[#allocation2 + $0x44] sm:$0xf] }
 0x15d   : > { %859 = vst.msk [vmem:[#allocation2 + $0x54] sm:$0xf] %vm705_vm0, %v5700_v21  ;;  %v5705_v54 = vpack.c.bf16 %v695_v43, %v695_v43  ;;  %v693_v55 = vmax.f32 %v627_v44, 0.0  ;;  %v638_v56 = vadd.f32 %v5959_v50, %v6936_v29  ;;  %v5448_v27 = vcombine.low %v2018_v57, %v2019_v48  ;;  %v7084_v42 = vld [vmem:[#allocation2 + $0x48] sm:$0xf]  ;;  %v6463_v21 = vld [vmem:[#allocation6 + $0x10] sm:$0xff]  }
 0x15e   : > { %v629_v59 = vpop.f32.mrf.mxu0  ;;  %v1476_v63 = vrot.slane %v1474_v49, 3  ;;  %v1479_v3 = vrot.slane %v1477_v52, 4  ;;  %v2157_v15 = vor.u32 %v2156_v60, %v2153_v53  ;;  %v7073_v17 = vsel %vm1419_vm2, %v1462_v18, %v1471_v62  ;;  %v7092_v51 = vld [vmem:[#allocation2 + $0x4c] sm:$0xf] }
 0x15f   : > { %864 = vst.msk [vmem:[#allocation2 + $0x68] sm:$0xf] %vm705_vm0, %v5705_v54  ;;  %v5703_v7 = vpack.c.bf16 %v693_v55, %v693_v55  ;;  %v696_v11 = vmax.f32 %v638_v56, 0.0  ;;  %v630_v12 = vadd.f32 %v6936_v29, %v629_v59  ;;  %v2160_v32 = vshrl.u32 %v5448_v27, 16  ;;  %5980 = vmatprep.mubr.msk.bf16.mxu1 %vm1584_vm1, %v7073_v17  ;;  %v2021_v54 = vld [vmem:[#allocation2 + $0x38] sm:$0xf] }
 0x160   : > { %v5962_v30 = vpop.f32.mrf.mxu0  ;;  %v7075_v31 = vor.u32 %v1479_v3, %v1476_v63  ;;  %v2163_v33 = vshll.u32 %v5448_v27, 16  ;;  %v7077_v34 = vld [vmem:[#allocation2 + $0x50] sm:$0xf]  ;;  %v2158_v18 = vsel %vm1419_vm2, %v2148_v20, %v2157_v15  ;;  %v5396_v50 = vcombine.low %v7066_v58, %v7084_v42 }
 0x161   : > { %862 = vst.msk [vmem:[#allocation2 + $0x60] sm:$0xf] %vm705_vm0, %v5703_v7  ;;  %v5706_v38 = vpack.c.bf16 %v696_v11, %v696_v11  ;;  %v694_v40 = vmax.f32 %v630_v12, 0.0  ;;  %v651_v41 = vadd.f32 %v5962_v30, %v6936_v29  ;;  %v2162_v46 = vrot.slane %v2160_v32, 3  ;;  %v7108_v7 = vld [vmem:[#allocation6 + $0x48] sm:$0xff]  }
 0x162   : > { %v642_v43 = vpop.f32.mrf.mxu0  ;;  %v7088_v44 = vsel %vm1419_vm2, %v1471_v62, %v7075_v31  ;;  %v2165_v48 = vrot.slane %v2163_v33, 4  ;;  %v5397_v53 = vcombine.low %v7092_v51, %v7077_v34  ;;  %v1483_v60 = vshrl.u32 %v5396_v50, 16  ;;  %v2023_v33 = vld [vmem:[#allocation2 + $0x40] sm:$0xf]  ;;  %v7201_v24 = vld [vmem:[#allocation2 + $0x5c] sm:$0xf] }
 0x163   : > { %865 = vst.msk [vmem:[#allocation2 + $0x6c] sm:$0xf] %vm705_vm0, %v5706_v38  ;;  %v5704_v49 = vpack.c.bf16 %v694_v40, %v694_v40  ;;  %v699_v52 = vmax.f32 %v651_v41, 0.0  ;;  %v643_v20 = vadd.f32 %v6936_v29, %v642_v43  ;;  %5981 = vmatmul.mubr.msk.bf16.vlgmr.msra.gmra.mxu1 %vm1584_vm1, %v7088_v44  ;;  %6045 = vmatmul.mubr.msk.bf16.vlgmr.msra.gmra.mxu0 %vm1584_vm1, %v2158_v18  ;;  %v1486_v57 = vshll.u32 %v5396_v50, 16 }
 0x164   : > { %6005 = vmatpush3.bf16.msra.mxu1 %v6930_v28  ;;  %v7102_v55 = vor.u32 %v2165_v48, %v2162_v46  ;;  %v5963_v56 = vpop.f32.mrf.mxu0  ;;  %v5449_v59 = vcombine.low %v2020_v36, %v2021_v54  ;;  %6113 = vmatpush3.bf16.msra.mxu0 %v7031_v1  ;;  %v1492_v27 = vshrl.u32 %v5397_v53, 16  ;;  %v7110_v28 = vld [vmem:[#allocation6 + $0x58] sm:$0xff]   ;;  %v1485_v30 = vrot.slane %v1483_v60, 3  ;;  %v7120_v54 = vld [vmem:[#allocation2 + $0x54] sm:$0xf]  ;;  %8856 = vst [vmem:[#allocation29_spill] sm:$0xff] %v7201_v24 }
 0x165   : > { %863 = vst.msk [vmem:[#allocation2 + $0x64] sm:$0xf] %vm705_vm0, %v5704_v49  ;;  %v5709_v62 = vpack.c.bf16 %v699_v52, %v699_v52  ;;  %v697_v63 = vmax.f32 %v643_v20, 0.0  ;;  %v654_v3 = vadd.f32 %v5963_v56, %v6936_v29  ;;  %6006 = vmatprep.subr.bf16.mxu1 %v7070_v16  ;;  %6114 = vmatprep.subr.bf16.mxu0 %v6463_v21  ;;  %8844 = vst [vmem:[#allocation17_spill] sm:$0xff] %v7110_v28 }
 0x166   : > { %v2167_v11 = vsel %vm1419_vm2, %v2157_v15, %v7102_v55  ;;  %v645_v12 = vpop.f32.mrf.mxu0  ;;  %v1488_v1 = vrot.slane %v1486_v57, 4  ;;  %v1495_v32 = vshll.u32 %v5397_v53, 16  ;;  %v1494_v41 = vrot.slane %v1492_v27, 3  ;;  %v2022_v15 = vld [vmem:[#allocation2 + $0x3c] sm:$0xf] }
 0x167   : > { %868 = vst.msk [vmem:[#allocation2 + $0x78] sm:$0xf] %vm705_vm0, %v5709_v62  ;;  %v5707_v36 = vpack.c.bf16 %v697_v63, %v697_v63  ;;  %6048 = vmatprep.mubr.msk.bf16.mxu0 %vm1584_vm1, %v2167_v11  ;;  %v700_v38 = vmax.f32 %v654_v3, 0.0  ;;  %v646_v40 = vadd.f32 %v6936_v29, %v645_v12  ;;  %v2169_v48 = vshrl.u32 %v5449_v59, 16  ;;  %v7132_v27 = vld [vmem:[#allocation2 + $0x58] sm:$0xf] }
 0x168   : > { %v1489_v18 = vor.u32 %v1488_v1, %v1485_v30  ;;  %v5966_v43 = vpop.f32.mrf.mxu0  ;;  %v1497_v46 = vrot.slane %v1495_v32, 4  ;;  %v2172_v50 = vshll.u32 %v5449_v59, 16  ;;  %6007 = vmatpush3.bf16.msra.mxu1 %v7070_v16  ;;  %6115 = vmatpush3.bf16.msra.mxu0 %v6463_v21  ;;  %v5450_v53 = vcombine.low %v2022_v15, %v2023_v33  ;;  %v7139_v32 = vld [vmem:[#allocation2 + $0x60] sm:$0xf]  ;;  %v7141_v33 = vld [vmem:[#allocation2 + $0x44] sm:$0xf] }
 0x169   : > { %866 = vst.msk [vmem:[#allocation2 + $0x70] sm:$0xf] %vm705_vm0, %v5707_v36  ;;  %v5710_v49 = vpack.c.bf16 %v700_v38, %v700_v38  ;;  %v698_v52 = vmax.f32 %v646_v40, 0.0  ;;  %v667_v20 = vadd.f32 %v5966_v43, %v6936_v29  ;;  %6076 = vmatprep.subr.bf16.mxu1 %v7108_v7  ;;  %6184 = vmatprep.subr.bf16.mxu0 %v7110_v28  ;;  %v2171_v21 = vrot.slane %v2169_v48, 3  ;;  %v7149_v15 = vld [vmem:[#allocation2 + $0x5c] sm:$0xf] }
 0x16a   : > { %v7126_v56 = vsel %vm1419_vm2, %v7075_v31, %v1489_v18  ;;  %v658_v60 = vpop.f32.mrf.mxu0  ;;  %v1498_v16 = vor.u32 %v1497_v46, %v1494_v41  ;;  %v2174_v57 = vrot.slane %v2172_v50, 4  ;;  %v2178_v3 = vshrl.u32 %v5450_v53, 16  ;;  %8847 = vst [vmem:[#allocation20_spill] sm:$0xff] %v7141_v33  ;;  %v7194_v0 = vld [vmem:[#allocation2 + $0x60] sm:$0xf] }
 0x16b   : > { %8845 = vst [vmem:[#allocation18_spill] sm:$0xff] %v7126_v56  ;;  %869 = vst.msk [vmem:[#allocation2 + $0x7c] sm:$0xf] %vm705_vm0, %v5710_v49  ;;  %v5708_v59 = vpack.c.bf16 %v698_v52, %v698_v52  ;;  %5984 = vmatprep.mubr.msk.bf16.mxu1 %vm1584_vm1, %v7126_v56  ;;  %v703_v62 = vmax.f32 %v667_v20, 0.0  ;;  %v659_v63 = vadd.f32 %v6936_v29, %v658_v60  ;;  %v2181_v12 = vshll.u32 %v5450_v53, 16 }
 0x16c   : > { %v7135_v11 = vsel %vm1419_vm2, %v1489_v18, %v1498_v16  ;;  %v2175_v31 = vor.u32 %v2174_v57, %v2171_v21  ;;  %v5967_v30 = vpop.f32.mrf.mxu0  ;;  %v5398_v1 = vcombine.low %v7120_v54, %v7132_v27  ;;  %v2180_v40 = vrot.slane %v2178_v3, 3  ;;  %v7156_v60 = vld [vmem:[#allocation2 + $0x48] sm:$0xf]  ;;  %v7164_v3 = vld [vmem:[#allocation2 + $0x64] sm:$0xf]  ;;  %8854 = vst [vmem:[#allocation27_spill] sm:$0xff] %v7194_v0 }
 0x16d   : > { %8846 = vst [vmem:[#allocation19_spill] sm:$0xff] %v7135_v11  ;;  %867 = vst.msk [vmem:[#allocation2 + $0x74] sm:$0xf] %vm705_vm0, %v5708_v59  ;;  %v5713_v36 = vpack.c.bf16 %v703_v62, %v703_v62  ;;  %v701_v38 = vmax.f32 %v659_v63, 0.0  ;;  %5985 = vmatmul.mubr.msk.bf16.gmra.mxu1 %vm1584_vm1, %v7135_v11  ;;  %v670_v41 = vadd.f32 %v5967_v30, %v6936_v29  ;;  %v2183_v43 = vrot.slane %v2181_v12, 4 }
 0x16e   : > { %v2176_v18 = vsel %vm1419_vm2, %v7102_v55, %v2175_v31  ;;  %v661_v46 = vpop.f32.mrf.mxu0  ;;  %v1501_v48 = vshrl.u32 %v5398_v1, 16  ;;  %v1504_v50 = vshll.u32 %v5398_v1, 16  ;;  %v5399_v53 = vcombine.low %v7149_v15, %v7139_v32  ;;  %8848 = vst [vmem:[#allocation21_spill] sm:$0xff] %v7156_v60  ;;  %v7160_v62 = vld [vmem:[#allocation2 + $0x4c] sm:$0xf] }
 0x16f   : > { %872 = vst.msk [vmem:[#allocation2 + $0x88] sm:$0xf] %vm705_vm0, %v5713_v36  ;;  %v5711_v49 = vpack.c.bf16 %v701_v38, %v701_v38  ;;  %6049 = vmatmul.mubr.msk.bf16.gmra.mxu0 %vm1584_vm1, %v2176_v18  ;;  %v704_v52 = vmax.f32 %v670_v41, 0.0  ;;  %v662_v20 = vadd.f32 %v6936_v29, %v661_v46  ;;  %v2184_v55 = vor.u32 %v2183_v43, %v2180_v40  ;;  %v7162_v63 = vld [vmem:[#allocation2 + $0x50] sm:$0xf] }
 0x170   : > { %v1503_v21 = vrot.slane %v1501_v48, 3  ;;  %v1506_v57 = vrot.slane %v1504_v50, 4  ;;  %v5451_v59 = vcombine.low %v7141_v33, %v7156_v60  ;;  %8849 = vst [vmem:[#allocation22_spill] sm:$0xff] %v7160_v62  ;;  %8850 = vst [vmem:[#allocation23_spill] sm:$0xff] %v7162_v63  ;;  %v1510_v30 = vshrl.u32 %v5399_v53, 16 }
 0x171   : > { %870 = vst.msk [vmem:[#allocation2 + $0x80] sm:$0xf] %vm705_vm0, %v5711_v49  ;;  %v5714_v29 = vpack.c.bf16 %v704_v52, %v704_v52  ;;  %v702_v12 = vmax.f32 %v662_v20, 0.0  ;;  %v1513_v1 = vshll.u32 %v5399_v53, 16  ;;  %v2185_v36 = vsel %vm1419_vm2, %v2175_v31, %v2184_v55  ;;  %v7168_v18 = vld [vmem:[#allocation2 + $0x70] sm:$0xf] }
 0x172   : > { %v1507_v38 = vor.u32 %v1506_v57, %v1503_v21  ;;  %v2187_v40 = vshrl.u32 %v5451_v59, 16  ;;  %v2190_v41 = vshll.u32 %v5451_v59, 16  ;;  %v7170_v43 = vld [vmem:[#allocation2 + $0x54] sm:$0xf]  ;;  %6052 = vmatprep.mubr.msk.bf16.mxu0 %vm1584_vm1, %v2185_v36  ;;  %v1512_v48 = vrot.slane %v1510_v30, 3 }
 0x173   : > { %8851 = vst [vmem:[#allocation24_spill] sm:$0xff] %v7170_v43  ;;  %873 = vst.msk [vmem:[#allocation2 + $0x8c] sm:$0xf] %vm705_vm0, %v5714_v29  ;;  %v5712_v46 = vpack.c.bf16 %v702_v12, %v702_v12  ;;  %v1515_v50 = vrot.slane %v1513_v1, 4  ;;  %v5452_v49 = vcombine.low %v7160_v62, %v7162_v63  ;;  %v7176_v52 = vld [vmem:[#allocation2 + $0x68] sm:$0xf] }
 0x174   : > { %v7179_v31 = vsel %vm1419_vm2, %v1498_v16, %v1507_v38  ;;  %v2189_v20 = vrot.slane %v2187_v40, 3  ;;  %v2192_v53 = vrot.slane %v2190_v41, 4  ;;  %v5400_v21 = vcombine.low %v7164_v3, %v7176_v52  ;;  %v7183_v57 = vld [vmem:[#allocation2 + $0x6c] sm:$0xf]  ;;  %v7190_v16 = vld [vmem:[#allocation2 + $0x58] sm:$0xf] }
 0x175   : > { %8852 = vst [vmem:[#allocation25_spill] sm:$0xff] %v7179_v31  ;;  %871 = vst.msk [vmem:[#allocation2 + $0x84] sm:$0xf] %vm705_vm0, %v5712_v46  ;;  %5988 = vmatprep.mubr.msk.bf16.mxu1 %vm1584_vm1, %v7179_v31  ;;  %v1516_v59 = vor.u32 %v1515_v50, %v1512_v48  ;;  %v2196_v29 = vshrl.u32 %v5452_v49, 16  ;;  %v2199_v12 = vshll.u32 %v5452_v49, 16  ;;  %v5401_v30 = vcombine.low %v7183_v57, %v7168_v18 }
 0x176   : > { %8853 = vst [vmem:[#allocation26_spill] sm:$0xff] %v7190_v16  ;;  %v2193_v1 = vor.u32 %v2192_v53, %v2189_v20  ;;  %v1519_v36 = vshrl.u32 %v5400_v21, 16  ;;  %v1522_v40 = vshll.u32 %v5400_v21, 16  ;;  %v5453_v41 = vcombine.low %v7170_v43, %v7190_v16  ;;  %v7196_v46 = vld [vmem:[#allocation2 + $0x74] sm:$0xf] }
 0x177   : > { %v7199_v26 = vsel %vm1419_vm2, %v1507_v38, %v1516_v59  ;;  %v2198_v48 = vrot.slane %v2196_v29, 3  ;;  %v2201_v50 = vrot.slane %v2199_v12, 4  ;;  %v1528_v49 = vshrl.u32 %v5401_v30, 16  ;;  %v7209_v12 = vld [vmem:[#allocation2 + $0x78] sm:$0xf] }
 0x178   : > { %8855 = vst [vmem:[#allocation28_spill] sm:$0xff] %v7199_v26  ;;  %5989 = vmatmul.mubr.msk.bf16.gmra.mxu1 %vm1584_vm1, %v7199_v26  ;;  %v2194_v20 = vsel %vm1419_vm2, %v2184_v55, %v2193_v1  ;;  %v1521_v53 = vrot.slane %v1519_v36, 3  ;;  %v1524_v21 = vrot.slane %v1522_v40, 4  ;;  %v1531_v33 = vshll.u32 %v5401_v30, 16  ;;  %v7206_v8 = vld [vmem:[#allocation2 + $0x80] sm:$0xf] }
 0x179   : > { %6053 = vmatmul.mubr.msk.bf16.gmra.mxu0 %vm1584_vm1, %v2194_v20  ;;  %v2202_v47 = vor.u32 %v2201_v50, %v2198_v48  ;;  %v1530_v38 = vrot.slane %v1528_v49, 3  ;;  %v2205_v13 = vshrl.u32 %v5453_v41, 16  ;;  %v2208_v29 = vshll.u32 %v5453_v41, 16  ;;  %v7215_v36 = vld [vmem:[#allocation2 + $0x7c] sm:$0xf] }
 0x17a   : > { %v1525_v19 = vor.u32 %v1524_v21, %v1521_v53  ;;  %v1533_v31 = vrot.slane %v1531_v33, 4  ;;  %v5454_v26 = vcombine.low %v7201_v24, %v7194_v0  ;;  %v5402_v55 = vcombine.low %v7196_v46, %v7209_v12  ;;  %v7220_v41 = vld [vmem:[#allocation2 + $0x64] sm:$0xf]  ;;  %v7222_v50 = vld [vmem:[#allocation2 + $0x70] sm:$0xf] }
 0x17b   : > { %v2203_v30 = vsel %vm1419_vm2, %v2193_v1, %v2202_v47  ;;  %v2207_v40 = vrot.slane %v2205_v13, 3  ;;  %v2210_v20 = vrot.slane %v2208_v29, 4  ;;  %v5403_v48 = vcombine.low %v7215_v36, %v7206_v8  ;;  %8857 = vst [vmem:[#allocation30_spill] sm:$0xff] %v7220_v41  ;;  %8858 = vst [vmem:[#allocation31_spill] sm:$0xff] %v7222_v50  ;;  %v7230_v1 = vld [vmem:[#allocation2 + $0x8c] sm:$0xf] }
 0x17c   : > { %6056 = vmatprep.mubr.msk.bf16.mxu0 %vm1584_vm1, %v2203_v30  ;;  %v7226_v33 = vsel %vm1419_vm2, %v1516_v59, %v1525_v19  ;;  %v1534_v49 = vor.u32 %v1533_v31, %v1530_v38  ;;  %v2214_v53 = vshrl.u32 %v5454_v26, 16  ;;  %v2217_v21 = vshll.u32 %v5454_v26, 16  ;;  %v7228_v0 = vld [vmem:[#allocation2 + $0x84] sm:$0xf]  ;;  %v7232_v13 = vld [vmem:[#allocation2 + $0x74] sm:$0xf] }
 0x17d   : > { %8859 = vst [vmem:[#allocation32_spill] sm:$0xff] %v7226_v33  ;;  %8860 = vst [vmem:[#allocation33_spill] sm:$0xff] %v7232_v13  ;;  %5992 = vmatprep.mubr.msk.bf16.mxu1 %vm1584_vm1, %v7226_v33  ;;  %v2211_v29 = vor.u32 %v2210_v20, %v2207_v40  ;;  %v1537_v9 = vshrl.u32 %v5402_v55, 16  ;;  %v1540_v11 = vshll.u32 %v5402_v55, 16  ;;  %v1546_v16 = vshrl.u32 %v5403_v48, 16 }
 0x17e   : > { %v7236_v30 = vld [vmem:[#allocation2 + $0x68] sm:$0xf]  ;;  %v7238_v59 = vld [vmem:[#allocation2 + $0x6c] sm:$0xf]  ;;  %v7241_v31 = vsel %vm1419_vm2, %v1525_v19, %v1534_v49  ;;  %v2216_v26 = vrot.slane %v2214_v53, 3  ;;  %v2219_v38 = vrot.slane %v2217_v21, 4 }
 0x17f   : > { %8861 = vst [vmem:[#allocation34_spill] sm:$0xff] %v7236_v30  ;;  %8862 = vst [vmem:[#allocation35_spill] sm:$0xff] %v7238_v59  ;;  %v1549_v24 = vshll.u32 %v5403_v48, 16  ;;  %v7243_v56 = vld [vmem:[#allocation2 + $0x88] sm:$0xf]  ;;  %v2212_v33 = vsel %vm1419_vm2, %v2202_v47, %v2211_v29  ;;  %v1539_v40 = vrot.slane %v1537_v9, 3  ;;  %v5455_v19 = vcombine.low %v7220_v41, %v7236_v30 }
 0x180   : > { %8863 = vst [vmem:[#allocation36_spill] sm:$0xff] %v7241_v31  ;;  %v7245_v63 = vld [vmem:[#allocation2 + $0x78] sm:$0xf]  ;;  %v1542_v20 = vrot.slane %v1540_v11, 4  ;;  %v1548_v55 = vrot.slane %v1546_v16, 3  ;;  %5993 = vmatmul.mubr.msk.bf16.gmra.mxu1 %vm1584_vm1, %v7241_v31  ;;  %v2220_v43 = vor.u32 %v2219_v38, %v2216_v26  ;;  %v5456_v48 = vcombine.low %v7238_v59, %v7222_v50 }
 0x181   : > { %8864 = vst [vmem:[#allocation37_spill] sm:$0xff] %v7245_v63  ;;  %v1551_v60 = vrot.slane %v1549_v24, 4  ;;  %6057 = vmatmul.mubr.msk.bf16.gmra.mxu0 %vm1584_vm1, %v2212_v33  ;;  %v5404_v47 = vcombine.low %v7228_v0, %v7243_v56  ;;  %v5405_v9 = vcombine.low %v7230_v1, %v7230_v1  ;;  %v5457_v11 = vcombine.low %v7232_v13, %v7245_v63  ;;  %v7274_v63 = vld [vmem:[#allocation2 + $0x80] sm:$0xf]  ;;  %v7276_v13 = vld [vmem:[#allocation2 + $0x84] sm:$0xf] }
 0x182   : > { %v1543_v53 = vor.u32 %v1542_v20, %v1539_v40  ;;  %v2221_v24 = vsel %vm1419_vm2, %v2211_v29, %v2220_v43  ;;  %v2223_v21 = vshrl.u32 %v5455_v19, 16  ;;  %v2226_v26 = vshll.u32 %v5455_v19, 16  ;;  %8867 = vst [vmem:[#allocation40_spill] sm:$0xff] %v7274_v63  ;;  %8868 = vst [vmem:[#allocation41_spill] sm:$0xff] %v7276_v13  ;;  %v7280_v30 = vld [vmem:[#allocation2 + $0x90] sm:$0xf] }
 0x183   : > { %v7262_v16 = vor.u32 %v1551_v60, %v1548_v55  ;;  %6060 = vmatprep.mubr.msk.bf16.mxu0 %vm1584_vm1, %v2221_v24  ;;  %v2232_v38 = vshrl.u32 %v5456_v48, 16  ;;  %v2235_v40 = vshll.u32 %v5456_v48, 16  ;;  %v1555_v20 = vshrl.u32 %v5404_v47, 16  ;;  %v7278_v48 = vld [vmem:[#allocation2 + $0x8c] sm:$0xf]  ;;  %8869 = vst [vmem:[#allocation42_spill] sm:$0xff] %v7280_v30 }
 0x184   : > { %v7266_v33 = vsel %vm1419_vm2, %v1534_v49, %v1543_v53  ;;  %v2225_v29 = vrot.slane %v2223_v21, 3  ;;  %v2228_v60 = vrot.slane %v2226_v26, 4  ;;  %v1558_v55 = vshll.u32 %v5404_v47, 16  ;;  %v7282_v62 = vld [vmem:[#allocation2 + $0x7c] sm:$0xf] }
 0x185   : > { %8865 = vst [vmem:[#allocation38_spill] sm:$0xff] %v7266_v33  ;;  %5996 = vmatprep.mubr.msk.bf16.mxu1 %vm1584_vm1, %v7266_v33  ;;  %v7272_v31 = vsel %vm1419_vm2, %v1543_v53, %v7262_v16  ;;  %v2234_v19 = vrot.slane %v2232_v38, 3  ;;  %v2237_v24 = vrot.slane %v2235_v40, 4  ;;  %v1557_v50 = vrot.slane %v1555_v20, 3  ;;  %8870 = vst [vmem:[#allocation43_spill] sm:$0xff] %v7282_v62 }
 0x186   : > { %8866 = vst [vmem:[#allocation39_spill] sm:$0xff] %v7272_v31  ;;  %v1564_v49 = vshrl.u32 %v5405_v9, 16  ;;  %v2229_v33 = vor.u32 %v2228_v60, %v2225_v29  ;;  %v1560_v59 = vrot.slane %v1558_v55, 4  ;;  %v1567_v41 = vshll.u32 %v5405_v9, 16  ;;  %v7286_v20 = vld [vmem:[#allocation2 + $0x88] sm:$0xf] }
 0x187   : > { %v2241_v53 = vshrl.u32 %v5457_v11, 16  ;;  %v2238_v21 = vor.u32 %v2237_v24, %v2234_v19  ;;  %v2244_v26 = vshll.u32 %v5457_v11, 16  ;;  %v8871_v38 = vshrl.u32 %v6959_v14, 16  ;;  %8872 = vst [vmem:[#allocation44_spill] sm:$0xff] %v7286_v20  ;;  %v7288_v28 = vld [vmem:[#allocation2 + $0x94] sm:$0xf] }
 0x188   : > { %v1566_v47 = vrot.slane %v1564_v49, 3  ;;  %5997 = vmatmul.mubr.msk.bf16.gmra.mxu1 %vm1584_vm1, %v7272_v31  ;;  %v2230_v29 = vsel %vm1419_vm2, %v2220_v43, %v2229_v33  ;;  %v1561_v60 = vor.u32 %v1560_v59, %v1557_v50  ;;  %v1569_v9 = vrot.slane %v1567_v41, 4 }
 0x189   : > { %v1814_v40 = vrot.slane %v8871_v38, 3  ;;  %v2243_v55 = vrot.slane %v2241_v53, 3  ;;  %6061 = vmatmul.mubr.msk.bf16.gmra.mxu0 %vm1584_vm1, %v2230_v29  ;;  %v2239_v19 = vsel %vm1419_vm2, %v2229_v33, %v2238_v21  ;;  %v2246_v11 = vrot.slane %v2244_v26, 4 }
 0x18a   : > { %v1815_v24 = vshll.u32 %v6959_v14, 16  ;;  %v5458_v49 = vcombine.low %v7282_v62, %v7274_v63  ;;  %6064 = vmatprep.mubr.msk.bf16.mxu0 %vm1584_vm1, %v2239_v19  ;;  %v1562_v38 = vsel %vm1419_vm2, %v7262_v16, %v1561_v60  ;;  %v5459_v43 = vcombine.low %v7276_v13, %v7286_v20 }
 0x18b   : > { %v5460_v41 = vcombine.low %v7278_v48, %v7280_v30  ;;  %6000 = vmatprep.mubr.msk.bf16.mxu1 %vm1584_vm1, %v1562_v38  ;;  %v2247_v50 = vor.u32 %v2246_v11, %v2243_v55  ;;  %v1810_v53 = vor.u32 %v6953_v5, %v6951_v4  ;;  %v5461_v19 = vcombine.low %v7288_v28, %v7288_v28 }
 0x18c   : > { %v1817_v59 = vrot.slane %v1815_v24, 4  ;;  %v2250_v33 = vshrl.u32 %v5458_v49, 16  ;;  %v2253_v14 = vshll.u32 %v5458_v49, 16  ;;  %v2259_v26 = vshrl.u32 %v5459_v43, 16 }
 0x18d   : > { %v2262_v29 = vshll.u32 %v5459_v43, 16  ;;  %v1570_v31 = vor.u32 %v1569_v9, %v1566_v47  ;;  %v2268_v62 = vshrl.u32 %v5460_v41, 16  ;;  %v2271_v30 = vshll.u32 %v5460_v41, 16  ;;  %v6547_v9 = vld [vmem:[#allocation2 + $0xc] sm:$0xf]  ;;  %v8874_v41 = vld [vmem:[#allocation22_spill] sm:$0xff] }
 0x18e   : > { %v1818_v63 = vor.u32 %v1817_v59, %v1814_v40  ;;  %v2252_v20 = vrot.slane %v2250_v33, 3  ;;  %v2255_v13 = vrot.slane %v2253_v14, 4  ;;  %v2248_v55 = vsel %vm1419_vm2, %v2238_v21, %v2247_v50  ;;  %v6548_v33 = vld [vmem:[#allocation2 + $0x20] sm:$0xf] }
 0x18f   : > { %v1571_v38 = vsel %vm1419_vm2, %v1561_v60, %v1570_v31  ;;  %v2261_v24 = vrot.slane %v2259_v26, 3  ;;  %v2264_v5 = vrot.slane %v2262_v29, 4  ;;  %v7316_v49 = vcombine.low %v7005_v35, %v7025_v61  ;;  %v6546_v60 = vld [vmem:[#allocation2 + $0x8] sm:$0xf]  ;;  %v8878_v29 = vld [vmem:[#allocation18_spill] sm:$0xff] }
 0x190   : > { %v2256_v11 = vor.u32 %v2255_v13, %v2252_v20  ;;  %6001 = vmatmul.mubr.msk.bf16.gmra.mxu1 %vm1584_vm1, %v1571_v38  ;;  %v1819_v4 = vsel %vm1419_vm2, %v1810_v53, %v1818_v63  ;;  %v7320_v47 = vcombine.low %v7036_v10, %v7044_v22  ;;  %v2277_v31 = vshrl.u32 %v5461_v19, 16  ;;  %v8876_v53 = vld [vmem:[#allocation24_spill] sm:$0xff]  ;;  %v8877_v26 = vld [vmem:[#allocation23_spill] sm:$0xff]  ;;  %v8880_v38 = vld [vmem:[#allocation26_spill] sm:$0xff] }
 0x191   : > { %6065 = vmatmul.mubr.msk.bf16.gmra.mxu0 %vm1584_vm1, %v2248_v55  ;;  %6008 = vmatprep.mubr.msk.bf16.mxu1 %vm1584_vm1, %v1819_v4  ;;  %v7327_v21 = vcombine.low %v7046_v23, %v7066_v58  ;;  %v7331_v40 = vcombine.low %v7084_v42, %v7092_v51  ;;  %v2270_v35 = vrot.slane %v2268_v62, 3  ;;  %v2273_v61 = vrot.slane %v2271_v30, 4  ;;  %v8883_v4 = vld [vmem:[#allocation30_spill] sm:$0xff] }
 0x192   : > { %v2257_v13 = vsel %vm1419_vm2, %v2247_v50, %v2256_v11  ;;  %v7336_v10 = vcombine.low %v7077_v34, %v7120_v54  ;;  %v7340_v22 = vcombine.low %v7132_v27, %v7149_v15  ;;  %v5426_v23 = vcombine.low %v7228_v0, %v7228_v0  ;;  %v8875_v50 = vld [vmem:[#allocation21_spill] sm:$0xff] }
 0x193   : > { %6068 = vmatprep.mubr.msk.bf16.mxu0 %vm1584_vm1, %v2257_v13  ;;  %v7346_v58 = vcombine.low %v7139_v32, %v7164_v3  ;;  %v7350_v42 = vcombine.low %v7176_v52, %v7183_v57  ;;  %v7354_v51 = vcombine.low %v7168_v18, %v7196_v46  ;;  %v2265_v34 = vor.u32 %v2264_v5, %v2261_v24  ;;  %v6465_v57 = vld [vmem:[#allocation6 + $0x40] sm:$0xff]   ;;  %v8882_v24 = vld [vmem:[#allocation16_spill] sm:$0xff]  ;;  %v8884_v5 = vld [vmem:[#allocation27_spill] sm:$0xff] }
 0x194   : > { %v2280_v54 = vshll.u32 %v5461_v19, 16  ;;  %v7358_v27 = vcombine.low %v7209_v12, %v7215_v36  ;;  %v7362_v15 = vcombine.low %v7206_v8, %v7228_v0  ;;  %v1822_v32 = vshrl.u32 %v5426_v23, 16  ;;  %v8879_v19 = vld [vmem:[#allocation29_spill] sm:$0xff]  ;;  %v6553_v13 = vld [vmem:[#allocation2 + $0x34] sm:$0xf] }
 0x195   : > { %v1825_v62 = vshll.u32 %v5426_v23, 16  ;;  %v1820_v3 = vsel %vm1419_vm2, %v1818_v63, %v6989_v2  ;;  %v2274_v52 = vor.u32 %v2273_v61, %v2270_v35  ;;  %v2266_v46 = vsel %vm1419_vm2, %v2256_v11, %v2265_v34  ;;  %v7374_v2 = vld [vmem:[#allocation6 + $0x78] sm:$0xff]   ;;  %v8881_v11 = vld [vmem:[#allocation19_spill] sm:$0xff]  ;;  %v8886_v35 = vld [vmem:[#allocation34_spill] sm:$0xff] }
 0x196   : > { %v1824_v30 = vrot.slane %v1822_v32, 3  ;;  %v2279_v20 = vrot.slane %v2277_v31, 3  ;;  %v2282_v12 = vrot.slane %v2280_v54, 4  ;;  %v5514_v43 = vcombine.low %v6546_v60, %v6547_v9  ;;  %v8885_v31 = vld [vmem:[#allocation35_spill] sm:$0xff]  ;;  %v8887_v23 = vld [vmem:[#allocation33_spill] sm:$0xff]  ;;  %v6475_v9 = vld [vmem:[#allocation2 + $0x10] sm:$0xff]  }
 0x197   : > { %v1827_v18 = vrot.slane %v1825_v62, 4  ;;  %v2275_v8 = vsel %vm1419_vm2, %v2265_v34, %v2274_v52  ;;  %v8888_v34 = vld [vmem:[#allocation31_spill] sm:$0xff]  ;;  %v8890_v62 = vld [vmem:[#allocation37_spill] sm:$0xff]  ;;  %v6502_v54 = vld [vmem:[#allocation2 + $0x30] sm:$0xff]  }
 0x198   : > { %6009 = vmatmul.mubr.msk.bf16.vlgmr.msra.gmra.mxu1 %vm1584_vm1, %v1820_v3  ;;  %v2283_v36 = vor.u32 %v2282_v12, %v2279_v20  ;;  %v8889_v32 = vld [vmem:[#allocation43_spill] sm:$0xff]  ;;  %v8895_v20 = vld [vmem:[#allocation44_spill] sm:$0xff] }
 0x199   : > { %6069 = vmatmul.mubr.msk.bf16.gmra.mxu0 %vm1584_vm1, %v2266_v46  ;;  %6077 = vmatpush3.bf16.msra.mxu1 %v7108_v7  ;;  %v1828_v0 = vor.u32 %v1827_v18, %v1824_v30  ;;  %v5495_v7 = vcombine.low %v7243_v56, %v7230_v1  ;;  %v8893_v30 = vld [vmem:[#allocation40_spill] sm:$0xff]  ;;  %v8899_v60 = vld [vmem:[#allocation39_spill] sm:$0xff] }
 0x19a   : > { %6012 = vmatprep.mubr.msk.bf16.mxu1 %vm1584_vm1, %v7014_v45  ;;  %6072 = vmatprep.mubr.msk.bf16.mxu0 %vm1584_vm1, %v2275_v8  ;;  %v2284_v45 = vsel %vm1419_vm2, %v2274_v52, %v2283_v36  ;;  %v8891_v52 = vld [vmem:[#allocation25_spill] sm:$0xff]  ;;  %v8894_v46 = vld [vmem:[#allocation28_spill] sm:$0xff]  ;;  %v8898_v36 = vld [vmem:[#allocation38_spill] sm:$0xff] }
 0x19b   : > { %6078 = vmatprep.subr.bf16.mxu1 %v6465_v57  ;;  %v1829_v63 = vsel %vm1419_vm2, %v7262_v16, %v1828_v0  ;;  %v6477_v16 = vld [vmem:[#allocation6 + $0x50] sm:$0xff]  }
 0x19c   : > { %v8896_v8 = vld [vmem:[#allocation32_spill] sm:$0xff] }
 0x19d   : > { %6079 = vmatpush3.bf16.msra.mxu1 %v6465_v57  ;;  %v8892_v57 = vld [vmem:[#allocation41_spill] sm:$0xff]  ;;  %v8897_v0 = vld [vmem:[#allocation36_spill] sm:$0xff] }
 0x19e   : > { %6148 = vmatprep.subr.bf16.mxu1 %v7374_v2  ;;  %v6552_v61 = vld [vmem:[#allocation2 + $0x30] sm:$0xf] }
 0x19f   : > { %v5536_v55 = vcombine.low %v6552_v61, %v6553_v13  ;;  %v4256_v13 = vshll.u32 %v6502_v54, 16 }
 0x1a0   : > { %6013 = vmatmul.mubr.msk.bf16.gmra.mxu1 %vm1584_vm1, %v7034_v6  ;;  %v8873_v6 = vld [vmem:[#allocation17_spill] sm:$0xff] }
 0x1a1   : > { %6073 = vmatmul.mubr.msk.bf16.gmra.mxu0 %vm1584_vm1, %v2284_v45  ;;  %6016 = vmatprep.mubr.msk.bf16.mxu1 %vm1584_vm1, %v7054_v39  ;;  %v7397_v39 = vld [vmem:[#allocation6 + $0x88] sm:$0xff]   ;;  %v6476_v45 = vld [vmem:[#allocation2 + $0x18] sm:$0xff]  }
 0x1a2   : > { %6116 = vmatprep.mubr.msk.bf16.mxu0 %vm1584_vm1, %v5514_v43  ;;  %v3561_v43 = vshll.u32 %v6475_v9, 16 }
 0x1a8   : > { %6017 = vmatmul.mubr.msk.bf16.gmra.mxu1 %vm1584_vm1, %v7073_v17  ;;  %v6549_v17 = vld [vmem:[#allocation2 + $0x24] sm:$0xf] }
 0x1a9   : > { %6117 = vmatmul.mubr.msk.bf16.vlgmr.msra.gmra.mxu0 %vm1584_vm1, %v6972_v37  ;;  %6020 = vmatprep.mubr.msk.bf16.mxu1 %vm1584_vm1, %v7088_v44  ;;  %v5482_v14 = vcombine.low %v6548_v33, %v6549_v17  ;;  %v3559_v33 = vshrl.u32 %v6475_v9, 16  ;;  %v3566_v17 = vshll.u32 %v6476_v45, 16 }
 0x1aa   : > { %6120 = vmatprep.mubr.msk.bf16.mxu0 %vm1584_vm1, %v6966_v25  ;;  %6185 = vmatpush3.bf16.msra.mxu0 %v8873_v6  ;;  %v6478_v6 = vld [vmem:[#allocation2 + $0x20] sm:$0xff]  }
 0x1ab   : > { %6186 = vmatprep.subr.bf16.mxu0 %v6477_v16 }
 0x1ae   : > { %6187 = vmatpush3.bf16.msra.mxu0 %v6477_v16  ;;  %v6482_v16 = vld [vmem:[#allocation6 + $0x70] sm:$0xff]  }
 0x1af   : > { %6256 = vmatprep.subr.bf16.mxu0 %v7397_v39 }
 0x1b0   : > { %6021 = vmatmul.mubr.msk.bf16.gmra.mxu1 %vm1584_vm1, %v8878_v29  ;;  %v3574_v29 = vshll.u32 %v6478_v6, 16 }
 0x1b1   : > { %6121 = vmatmul.mubr.msk.bf16.gmra.mxu0 %vm1584_vm1, %v5482_v14  ;;  %6024 = vmatprep.mubr.msk.bf16.mxu1 %vm1584_vm1, %v8881_v11  ;;  %v6479_v11 = vld [vmem:[#allocation2 + $0x28] sm:$0xff]  }
 0x1b2   : > { %6124 = vmatprep.mubr.msk.bf16.mxu0 %vm1584_vm1, %v8882_v24 }
 0x1b8   : > { %6025 = vmatmul.mubr.msk.bf16.gmra.mxu1 %vm1584_vm1, %v8891_v52  ;;  %v3576_v52 = vrot.slane %v3574_v29, 1  ;;  %v3586_v29 = vshrl.u32 %v6479_v11, 16 }
 0x1b9   : > { %6125 = vmatmul.mubr.msk.bf16.gmra.mxu0 %vm1584_vm1, %v7316_v49  ;;  %6028 = vmatprep.mubr.msk.bf16.mxu1 %vm1584_vm1, %v8894_v46  ;;  %v6480_v46 = vld [vmem:[#allocation2 + $0x30] sm:$0xff]  }
 0x1ba   : > { %6128 = vmatprep.mubr.msk.bf16.mxu0 %vm1584_vm1, %v7320_v47 }
 0x1c0   : > { %6029 = vmatmul.mubr.msk.bf16.gmra.mxu1 %vm1584_vm1, %v8896_v8  ;;  %v3578_v8 = vshrl.u32 %v6478_v6, 16 }
 0x1c1   : > { %6129 = vmatmul.mubr.msk.bf16.gmra.mxu0 %vm1584_vm1, %v7327_v21  ;;  %6032 = vmatprep.mubr.msk.bf16.mxu1 %vm1584_vm1, %v8897_v0  ;;  %v3582_v0 = vshll.u32 %v6479_v11, 16 }
 0x1c2   : > { %6132 = vmatprep.mubr.msk.bf16.mxu0 %vm1584_vm1, %v7331_v40 }
 0x1c8   : > { %6033 = vmatmul.mubr.msk.bf16.gmra.mxu1 %vm1584_vm1, %v8898_v36  ;;  %v3570_v36 = vshrl.u32 %v6476_v45, 16 }
 0x1c9   : > { %6133 = vmatmul.mubr.msk.bf16.gmra.mxu0 %vm1584_vm1, %v7336_v10  ;;  %6036 = vmatprep.mubr.msk.bf16.mxu1 %vm1584_vm1, %v8899_v60  ;;  %v3580_v60 = vor.u32 %v3578_v8, %v3576_v52 }
 0x1ca   : > { %6136 = vmatprep.mubr.msk.bf16.mxu0 %vm1584_vm1, %v7340_v22 }
 0x1d0   : > { %6037 = vmatmul.mubr.msk.bf16.gmra.mxu1 %vm1584_vm1, %v1829_v63  ;;  %v7461_v63 = vrot.slane %v3561_v43, 1  ;;  %v3584_v43 = vrot.slane %v3582_v0, 1 }
 0x1d1   : > { %6137 = vmatmul.mubr.msk.bf16.gmra.mxu0 %vm1584_vm1, %v7346_v58  ;;  %6080 = vmatprep.mubr.msk.bf16.mxu1 %vm1584_vm1, %v6972_v37  ;;  %v7466_v37 = vld [vmem:[#allocation6 + $0x28] sm:$0xff]  }
 0x1d2   : > { %6140 = vmatprep.mubr.msk.bf16.mxu0 %vm1584_vm1, %v7350_v42  ;;  %v7491_v45 = vsel %vm3557_vm3, %v3580_v60, %v3584_v43  ;;  %v3588_v8 = vor.u32 %v3586_v29, %v3584_v43 }
 0x1d8   : > { %6081 = vmatmul.mubr.msk.bf16.vlgmr.msra.gmra.mxu1 %vm1584_vm1, %v6966_v25  ;;  %v3564_v25 = vor.u32 %v7461_v63, %v3559_v33  ;;  %v6499_v33 = vld [vmem:[#allocation6 + $0x80] sm:$0xff]  }
 0x1d9   : > { %6141 = vmatmul.mubr.msk.bf16.gmra.mxu0 %vm1584_vm1, %v7354_v51  ;;  %6149 = vmatpush3.bf16.msra.mxu1 %v7374_v2  ;;  %v3568_v2 = vrot.slane %v3566_v17, 1  ;;  %v6483_v17 = vld [vmem:[#allocation2 + $0x40] sm:$0xff]  }
 0x1da   : > { %6084 = vmatprep.mubr.msk.bf16.mxu1 %vm1584_vm1, %v5482_v14  ;;  %6144 = vmatprep.mubr.msk.bf16.mxu0 %vm1584_vm1, %v7358_v27  ;;  %v3610_v60 = vshrl.u32 %v6483_v17, 16 }
 0x1db   : > { %6150 = vmatprep.subr.bf16.mxu1 %v6482_v16  ;;  %v7477_v14 = vsel %vm3557_vm3, %v3564_v25, %v3568_v2  ;;  %v3572_v9 = vor.u32 %v3570_v36, %v3568_v2 }
 0x1dd   : > { %6151 = vmatpush3.bf16.msra.mxu1 %v6482_v16  ;;  %v6481_v16 = vld [vmem:[#allocation2 + $0x38] sm:$0xff]  }
 0x1de   : > { %6220 = vmatprep.subr.bf16.mxu1 %v7466_v37  ;;  %v3598_v25 = vshll.u32 %v6481_v16, 16 }
 0x1e0   : > { %6085 = vmatmul.mubr.msk.bf16.gmra.mxu1 %vm1584_vm1, %v8882_v24  ;;  %v3590_v24 = vshll.u32 %v6480_v46, 16  ;;  %v3600_v0 = vrot.slane %v3598_v25, 1  ;;  %v6487_v25 = vld [vmem:[#allocation2 + $0x60] sm:$0xff]  }
 0x1e1   : > { %6145 = vmatmul.mubr.msk.bf16.gmra.mxu0 %vm1584_vm1, %v7362_v15  ;;  %6088 = vmatprep.mubr.msk.bf16.mxu1 %vm1584_vm1, %v7316_v49  ;;  %v7484_v49 = vsel %vm3557_vm3, %v3572_v9, %v3576_v52  ;;  %v3606_v52 = vshll.u32 %v6483_v17, 16 }
 0x1e2   : > { %6188 = vmatprep.mubr.msk.bf16.mxu0 %vm1584_vm1, %v7477_v14  ;;  %v3592_v6 = vrot.slane %v3590_v24, 1 }
 0x1e3   : > { %v3608_v11 = vrot.slane %v3606_v52, 1 }
 0x1e4   : > { %v7499_v36 = vsel %vm3557_vm3, %v3588_v8, %v3592_v6  ;;  %v3638_v8 = vshll.u32 %v6487_v25, 16 }
 0x1e5   : > { %v3612_v9 = vor.u32 %v3610_v60, %v3608_v11  ;;  %v6488_v60 = vld [vmem:[#allocation2 + $0x68] sm:$0xff]  }
 0x1e8   : > { %6089 = vmatmul.mubr.msk.bf16.gmra.mxu1 %vm1584_vm1, %v7320_v47  ;;  %v3594_v47 = vshrl.u32 %v6480_v46, 16  ;;  %v6485_v46 = vld [vmem:[#allocation2 + $0x50] sm:$0xff]  }
 0x1e9   : > { %6189 = vmatmul.mubr.msk.bf16.vlgmr.msra.gmra.mxu0 %vm1584_vm1, %v7484_v49  ;;  %6092 = vmatprep.mubr.msk.bf16.mxu1 %vm1584_vm1, %v7327_v21  ;;  %v6484_v21 = vld [vmem:[#allocation2 + $0x48] sm:$0xff]   ;;  %v3622_v43 = vshll.u32 %v6485_v46, 16  ;;  %v3626_v29 = vshrl.u32 %v6485_v46, 16 }
 0x1ea   : > { %6192 = vmatprep.mubr.msk.bf16.mxu0 %vm1584_vm1, %v7491_v45  ;;  %6257 = vmatpush3.bf16.msra.mxu0 %v7397_v39  ;;  %v3596_v2 = vor.u32 %v3594_v47, %v3592_v6  ;;  %v3614_v24 = vshll.u32 %v6484_v21, 16  ;;  %v6486_v47 = vld [vmem:[#allocation2 + $0x58] sm:$0xff]  }
 0x1eb   : > { %6258 = vmatprep.subr.bf16.mxu0 %v6499_v33 }
 0x1ec   : > { %v7506_v39 = vsel %vm3557_vm3, %v3596_v2, %v3600_v0  ;;  %v3616_v6 = vrot.slane %v3614_v24, 1  ;;  %v3630_v2 = vshll.u32 %v6486_v47, 16  ;;  %v6490_v24 = vld [vmem:[#allocation2 + $0x70] sm:$0xff]  }
 0x1ee   : > { %6259 = vmatpush3.bf16.msra.mxu0 %v6499_v33  ;;  %v7520_v17 = vsel %vm3557_vm3, %v3612_v9, %v3616_v6  ;;  %v3646_v9 = vshll.u32 %v6488_v60, 16 }
 0x1f0   : > { %6093 = vmatmul.mubr.msk.bf16.gmra.mxu1 %vm1584_vm1, %v7331_v40  ;;  %v3602_v40 = vshrl.u32 %v6481_v16, 16  ;;  %v3624_v16 = vrot.slane %v3622_v43, 1 }
 0x1f1   : > { %6193 = vmatmul.mubr.msk.bf16.gmra.mxu0 %vm1584_vm1, %v7499_v36  ;;  %6096 = vmatprep.mubr.msk.bf16.mxu1 %vm1584_vm1, %v7336_v10 }
 0x1f2   : > { %6196 = vmatprep.mubr.msk.bf16.mxu0 %vm1584_vm1, %v7506_v39  ;;  %v3604_v33 = vor.u32 %v3602_v40, %v3600_v0  ;;  %v3628_v52 = vor.u32 %v3626_v29, %v3624_v16  ;;  %v3642_v40 = vshrl.u32 %v6487_v25, 16  ;;  %v6491_v29 = vld [vmem:[#allocation2 + $0x78] sm:$0xff]  }
 0x1f4   : > { %v7513_v10 = vsel %vm3557_vm3, %v3604_v33, %v3608_v11  ;;  %v3632_v11 = vrot.slane %v3630_v2, 1  ;;  %v3654_v33 = vshll.u32 %v6490_v24, 16  ;;  %v6493_v2 = vld [vmem:[#allocation2 + $0x80] sm:$0xff]  }
 0x1f5   : > { %v3674_v1 = vshrl.u32 %v6493_v2, 16 }
 0x1f6   : > { %v7534_v46 = vsel %vm3557_vm3, %v3628_v52, %v3632_v11  ;;  %v3662_v52 = vshll.u32 %v6491_v29, 16 }
 0x1f7   : > { %8900 = vst [vmem:[#allocation17_spill] sm:$0xff] %v7534_v46 }
 0x1f8   : > { %6097 = vmatmul.mubr.msk.bf16.gmra.mxu1 %vm1584_vm1, %v7340_v22  ;;  %v3618_v22 = vshrl.u32 %v6484_v21, 16  ;;  %v3640_v21 = vrot.slane %v3638_v8, 1 }
 0x1f9   : > { %6197 = vmatmul.mubr.msk.bf16.gmra.mxu0 %vm1584_vm1, %v7513_v10  ;;  %6100 = vmatprep.mubr.msk.bf16.mxu1 %vm1584_vm1, %v7346_v58 }
 0x1fa   : > { %6200 = vmatprep.mubr.msk.bf16.mxu0 %vm1584_vm1, %v7520_v17  ;;  %v3620_v0 = vor.u32 %v3618_v22, %v3616_v6  ;;  %v3644_v43 = vor.u32 %v3642_v40, %v3640_v21  ;;  %v3658_v22 = vshrl.u32 %v6490_v24, 16  ;;  %v6494_v40 = vld [vmem:[#allocation2 + $0x88] sm:$0xff]   ;;  %v8905_v24 = vld [vmem:[#allocation12_spill] sm:$0xff] }
 0x1fc   : > { %v7527_v58 = vsel %vm3557_vm3, %v3620_v0, %v3624_v16  ;;  %v3648_v16 = vrot.slane %v3646_v9, 1  ;;  %v3670_v0 = vshll.u32 %v6493_v2, 16  ;;  %v8904_v9 = vld [vmem:[#allocation13_spill] sm:$0xff] }
 0x1fe   : > { %v7548_v25 = vsel %vm3557_vm3, %v3644_v43, %v3648_v16  ;;  %v3672_v43 = vrot.slane %v3670_v0, 1 }
 0x1ff   : > { %8902 = vst [vmem:[#allocation21_spill] sm:$0xff] %v7548_v25 }
 0x200   : > { %6101 = vmatmul.mubr.msk.bf16.gmra.mxu1 %vm1584_vm1, %v7350_v42  ;;  %v3634_v42 = vshrl.u32 %v6486_v47, 16  ;;  %v3656_v47 = vrot.slane %v3654_v33, 1  ;;  %v6497_v33 = vld [vmem:[#allocation2 + $0x18] sm:$0xff]  }
 0x201   : > { %6201 = vmatmul.mubr.msk.bf16.gmra.mxu0 %vm1584_vm1, %v7527_v58  ;;  %6104 = vmatprep.mubr.msk.bf16.mxu1 %vm1584_vm1, %v7354_v51  ;;  %v4235_v0 = vshll.u32 %v6497_v33, 16 }
 0x202   : > { %6204 = vmatprep.mubr.msk.bf16.mxu0 %vm1584_vm1, %v7534_v46  ;;  %v3636_v6 = vor.u32 %v3634_v42, %v3632_v11  ;;  %v3660_v8 = vor.u32 %v3658_v22, %v3656_v47  ;;  %v8906_v42 = vcombine.low %v8904_v9, %v8905_v24  ;;  %v6507_v9 = vld [vmem:[#allocation6 + $0x20] sm:$0xff]  }
 0x203   : > { %v8909_v24 = vld [vmem:[#allocation14_spill] sm:$0xff] }
 0x204   : > { %v7541_v51 = vsel %vm3557_vm3, %v3636_v6, %v3640_v21  ;;  %v3664_v21 = vrot.slane %v3662_v52, 1  ;;  %v3666_v6 = vshrl.u32 %v6491_v29, 16  ;;  %v6498_v52 = vld [vmem:[#allocation2 + $0x20] sm:$0xff]   ;;  %v6550_v29 = vld [vmem:[#allocation2 + $0x28] sm:$0xf] }
 0x205   : > { %8901 = vst [vmem:[#allocation22_spill] sm:$0xff] %v7541_v51  ;;  %v4244_v61 = vshrl.u32 %v6498_v52, 16 }
 0x208   : > { %6105 = vmatmul.mubr.msk.bf16.gmra.mxu1 %vm1584_vm1, %v7358_v27  ;;  %v3650_v27 = vshrl.u32 %v6488_v60, 16  ;;  %v7566_v60 = vsel %vm3557_vm3, %v3660_v8, %v3664_v21 }
 0x209   : > { %6205 = vmatmul.mubr.msk.bf16.gmra.mxu0 %vm1584_vm1, %v7541_v51  ;;  %6108 = vmatprep.mubr.msk.bf16.mxu1 %vm1584_vm1, %v7362_v15  ;;  %8907 = vst [vmem:[#allocation23_spill] sm:$0xff] %v7566_v60 }
 0x20a   : > { %6208 = vmatprep.mubr.msk.bf16.mxu0 %vm1584_vm1, %v7548_v25  ;;  %v3652_v11 = vor.u32 %v3650_v27, %v3648_v16  ;;  %v6496_v16 = vld [vmem:[#allocation2 + $0x90] ss:$0 sps:$4 sm:$0x11]   ;;  %v3668_v27 = vor.u32 %v3666_v6, %v3664_v21  ;;  %v4240_v6 = vshll.u32 %v6498_v52, 16 }
 0x20b   : > { %v3686_v3 = vshll.u32 %v6496_v16, 16  ;;  %v6500_v16 = vld [vmem:[#allocation2 + $0x28] sm:$0xff]  }
 0x20c   : > { %v7557_v15 = vsel %vm3557_vm3, %v3652_v11, %v3656_v47  ;;  %v7572_v47 = vor.u32 %v3674_v1, %v3672_v43  ;;  %v7583_v2 = vsel %vm3557_vm3, %v3668_v27, %v3672_v43  ;;  %v6551_v1 = vld [vmem:[#allocation2 + $0x2c] sm:$0xf]  ;;  %v4237_v27 = vrot.slane %v4235_v0, 1 }
 0x20d   : > { %8903 = vst [vmem:[#allocation24_spill] sm:$0xff] %v7557_v15  ;;  %8912 = vst [vmem:[#allocation29_spill] sm:$0xff] %v7583_v2  ;;  %v5535_v18 = vcombine.low %v6550_v29, %v6551_v1  ;;  %v4233_v29 = vshrl.u32 %v6497_v33, 16  ;;  %v4248_v0 = vshll.u32 %v6500_v16, 16 }
 0x20e   : > { %8908 = vst [vmem:[#allocation18_spill] sm:$0xff] %v7572_v47 }
 0x210   : > { %6109 = vmatmul.mubr.msk.bf16.gmra.mxu1 %vm1584_vm1, %v5495_v7  ;;  %v3678_v7 = vshll.u32 %v6494_v40, 16 }
 0x211   : > { %6209 = vmatmul.mubr.msk.bf16.gmra.mxu0 %vm1584_vm1, %v7557_v15  ;;  %6152 = vmatprep.mubr.msk.bf16.mxu1 %vm1584_vm1, %v8906_v42  ;;  %v8910_v42 = vld [vmem:[#allocation15_spill] sm:$0xff] }
 0x212   : > { %6212 = vmatprep.mubr.msk.bf16.mxu0 %vm1584_vm1, %v7566_v60  ;;  %v3680_v11 = vrot.slane %v3678_v7, 1  ;;  %v8911_v12 = vcombine.low %v8909_v24, %v8910_v42  ;;  %v3688_v42 = vrot.slane %v3686_v3, 1 }
 0x213   : > { %v7570_v56 = vpop.f32.mrf.mxu0 }
 0x214   : > { %v3681_v21 = vsel %vm3557_vm3, %v7572_v47, %v3680_v11 }
 0x215   : > { %v7574_v22 = vpop.f32.mrf.mxu0 }
 0x217   : > { %v7576_v8 = vpop.f32.mrf.mxu0 }
 0x218   : > { %6153 = vmatmul.mubr.msk.bf16.vlgmr.msra.gmra.mxu1 %vm1584_vm1, %v8911_v12  ;;  %v3682_v12 = vshrl.u32 %v6494_v40, 16  ;;  %v6555_v40 = vld [vmem:[#allocation2 + $0x3c] sm:$0xf] }
 0x219   : > { %6213 = vmatmul.mubr.msk.bf16.gmra.mxu0 %vm1584_vm1, %v7583_v2  ;;  %6221 = vmatpush3.bf16.msra.mxu1 %v7466_v37  ;;  %v7590_v7 = vpop.f32.mrf.mxu0  ;;  %v4242_v37 = vrot.slane %v4240_v6, 1 }
 0x21a   : > { %6156 = vmatprep.mubr.msk.bf16.mxu1 %vm1584_vm1, %v5535_v18  ;;  %6216 = vmatprep.mubr.msk.bf16.mxu0 %vm1584_vm1, %v3681_v21  ;;  %v3684_v24 = vor.u32 %v3682_v12, %v3680_v11  ;;  %v6554_v18 = vld [vmem:[#allocation2 + $0x38] sm:$0xf]  ;;  %v4238_v21 = vor.u32 %v4237_v27, %v4233_v29  ;;  %v4250_v12 = vrot.slane %v4248_v0, 1 }
 0x21b   : > { %v7594_v43 = vpop.f32.mrf.mxu0  ;;  %6222 = vmatprep.subr.bf16.mxu1 %v6507_v9  ;;  %v5537_v44 = vcombine.low %v6554_v18, %v6555_v40  ;;  %v4246_v27 = vor.u32 %v4244_v61, %v4242_v37  ;;  %v6506_v18 = vld [vmem:[#allocation2 + $0x40] sm:$0xff]  }
 0x21c   : > { %v3689_v3 = vsel %vm3557_vm3, %v3684_v24, %v3688_v42  ;;  %v4243_v33 = vsel %vm3557_vm3, %v4238_v21, %v4242_v37  ;;  %v4252_v24 = vshrl.u32 %v6500_v16, 16  ;;  %v4258_v42 = vrot.slane %v4256_v13, 1  ;;  %v6556_v40 = vld [vmem:[#allocation2 + $0x40] sm:$0xf]  ;;  %v8913_v21 = vld [vmem:[#allocation20_spill] sm:$0xff] }
 0x21d   : > { %v7596_v1 = vpop.f32.mrf.mxu0  ;;  %6223 = vmatpush3.bf16.msra.mxu1 %v6507_v9  ;;  %v4251_v37 = vsel %vm3557_vm3, %v4246_v27, %v4250_v12  ;;  %v8914_v16 = vcombine.low %v8875_v50, %v8874_v41  ;;  %v4272_v61 = vshll.u32 %v6506_v18, 16  ;;  %v6511_v41 = vld [vmem:[#allocation2 + $0x50] sm:$0xff]  }
 0x21e   : > { %v4254_v52 = vor.u32 %v4252_v24, %v4250_v12  ;;  %v4260_v24 = vshrl.u32 %v6502_v54, 16  ;;  %v8915_v54 = vcombine.low %v8877_v26, %v8876_v53 }
 0x21f   : > { %v7598_v59 = vpop.f32.mrf.mxu0  ;;  %v4274_v60 = vrot.slane %v4272_v61, 1 }
 0x220   : > { %6157 = vmatmul.mubr.msk.bf16.gmra.mxu1 %vm1584_vm1, %v5536_v55  ;;  %v6504_v55 = vld [vmem:[#allocation2 + $0x38] sm:$0xff]   ;;  %v4259_v0 = vsel %vm3557_vm3, %v4254_v52, %v4258_v42  ;;  %v4262_v12 = vor.u32 %v4260_v24, %v4258_v42  ;;  %v4288_v24 = vshll.u32 %v6511_v41, 16 }
 0x221   : > { %6217 = vmatmul.mubr.msk.bf16.gmra.mxu0 %vm1584_vm1, %v3689_v3  ;;  %6160 = vmatprep.mubr.msk.bf16.mxu1 %vm1584_vm1, %v5537_v44  ;;  %v7605_v11 = vpop.f32.mrf.mxu0  ;;  %v5538_v3 = vcombine.low %v6556_v40, %v8913_v21  ;;  %v4264_v2 = vshll.u32 %v6504_v55, 16 }
 0x222   : > { %6260 = vmatprep.mubr.msk.bf16.mxu0 %vm1584_vm1, %v4243_v33 }
 0x223   : > { %v7608_v9 = vpop.f32.mrf.mxu1  ;;  %v7610_v6 = vpop.f32.mrf.mxu0  ;;  %v4266_v21 = vrot.slane %v4264_v2, 1 }
 0x225   : > { %v7612_v29 = vpop.f32.mrf.mxu1  ;;  %v7614_v44 = vpop.f32.mrf.mxu0  ;;  %v4267_v2 = vsel %vm3557_vm3, %v4262_v12, %v4266_v21 }
 0x227   : > { %v7617_v47 = vpop.f32.mrf.mxu1  ;;  %v7619_v33 = vpop.f32.mrf.mxu0 }
 0x228   : > { %6161 = vmatmul.mubr.msk.bf16.gmra.mxu1 %vm1584_vm1, %v5538_v3  ;;  %v6509_v3 = vld [vmem:[#allocation2 + $0x48] sm:$0xff]  }
 0x229   : > { %6261 = vmatmul.mubr.msk.bf16.vlgmr.msra.gmra.mxu0 %vm1584_vm1, %v4251_v37  ;;  %6164 = vmatprep.mubr.msk.bf16.mxu1 %vm1584_vm1, %v8914_v16  ;;  %v7629_v13 = vpop.f32.mrf.mxu1  ;;  %v7632_v40 = vpop.f32.mrf.mxu0  ;;  %v4268_v37 = vshrl.u32 %v6504_v55, 16  ;;  %v4280_v15 = vshll.u32 %v6509_v3, 16  ;;  %v8916_v55 = vcombine.low %v8880_v38, %v8879_v19  ;;  %v4284_v38 = vshrl.u32 %v6509_v3, 16 }
 0x22a   : > { %6264 = vmatprep.mubr.msk.bf16.mxu0 %vm1584_vm1, %v4259_v0 }
 0x22b   : > { %v4270_v16 = vor.u32 %v4268_v37, %v4266_v21  ;;  %v4276_v37 = vshrl.u32 %v6506_v18, 16  ;;  %v4282_v26 = vrot.slane %v4280_v15, 1  ;;  %v6513_v21 = vld [vmem:[#allocation2 + $0x58] sm:$0xff]   ;;  %v8919_v18 = vcombine.low %v8884_v5, %v8883_v4 }
 0x22c   : > { %v4296_v25 = vshll.u32 %v6513_v21, 16 }
 0x22d   : > { %v7634_v27 = vpop.f32.mrf.mxu1  ;;  %v4275_v42 = vsel %vm3557_vm3, %v4270_v16, %v4274_v60  ;;  %v4278_v12 = vor.u32 %v4276_v37, %v4274_v60  ;;  %v6515_v16 = vld [vmem:[#allocation2 + $0x60] sm:$0xff]   ;;  %v8920_v60 = vcombine.low %v8886_v35, %v8885_v31  ;;  %v4292_v37 = vshrl.u32 %v6511_v41, 16 }
 0x22e   : > { %v4300_v31 = vshrl.u32 %v6513_v21, 16  ;;  %v8926_v21 = vcombine.low %v8890_v62, %v8889_v32 }
 0x22f   : > { %v7636_v50 = vpop.f32.mrf.mxu0  ;;  %v7638_v52 = vpop.f32.mrf.mxu1  ;;  %v4283_v15 = vsel %vm3557_vm3, %v4278_v12, %v4282_v26  ;;  %v6517_v12 = vld [vmem:[#allocation2 + $0x68] sm:$0xff]  }
 0x230   : > { %6165 = vmatmul.mubr.msk.bf16.gmra.mxu1 %vm1584_vm1, %v8915_v54  ;;  %v4316_v32 = vshrl.u32 %v6517_v12, 16 }
 0x231   : > { %6265 = vmatmul.mubr.msk.bf16.gmra.mxu0 %vm1584_vm1, %v4267_v2  ;;  %6168 = vmatprep.mubr.msk.bf16.mxu1 %vm1584_vm1, %v8916_v55  ;;  %v7651_v0 = vpop.f32.mrf.mxu0  ;;  %v7653_v61 = vpop.f32.mrf.mxu1  ;;  %v4290_v2 = vrot.slane %v4288_v24, 1  ;;  %v4286_v55 = vor.u32 %v4284_v38, %v4282_v26  ;;  %v4304_v24 = vshll.u32 %v6515_v16, 16  ;;  %v4298_v26 = vrot.slane %v4296_v25, 1 }
 0x232   : > { %6268 = vmatprep.mubr.msk.bf16.mxu0 %vm1584_vm1, %v4275_v42  ;;  %v8925_v25 = vcombine.low %v8888_v34, %v8887_v23 }
 0x233   : > { %v7656_v53 = vpop.f32.mrf.mxu0  ;;  %v7658_v54 = vpop.f32.mrf.mxu1  ;;  %v4291_v3 = vsel %vm3557_vm3, %v4286_v55, %v4290_v2  ;;  %v4294_v38 = vor.u32 %v4292_v37, %v4290_v2  ;;  %v4306_v35 = vrot.slane %v4304_v24, 1  ;;  %v4302_v41 = vor.u32 %v4300_v31, %v4298_v26  ;;  %v6522_v37 = vld [vmem:[#allocation2 + $0x8] sm:$0xff]  }
 0x234   : > { %8917 = vst [vmem:[#allocation26_spill] sm:$0xff] %v7658_v54 }
 0x235   : > { %v7660_v19 = vpop.f32.mrf.mxu0  ;;  %v4299_v2 = vsel %vm3557_vm3, %v4294_v38, %v4298_v26  ;;  %v4307_v24 = vsel %vm3557_vm3, %v4302_v41, %v4306_v35  ;;  %v6521_v38 = vld [vmem:[#allocation2 + $0x78] sm:$0xff]  }
 0x236   : > { %v4328_v54 = vshll.u32 %v6521_v38, 16 }
 0x238   : > { %v7662_v51 = vpop.f32.mrf.mxu1  ;;  %6169 = vmatmul.mubr.msk.bf16.gmra.mxu1 %vm1584_vm1, %v8919_v18 }
 0x239   : > { %8918 = vst [vmem:[#allocation19_spill] sm:$0xff] %v7662_v51  ;;  %v7669_v42 = vpop.f32.mrf.mxu0  ;;  %6269 = vmatmul.mubr.msk.bf16.gmra.mxu0 %vm1584_vm1, %v4283_v15  ;;  %6172 = vmatprep.mubr.msk.bf16.mxu1 %vm1584_vm1, %v8920_v60  ;;  %v6519_v60 = vld [vmem:[#allocation2 + $0x70] sm:$0xff]  }
 0x23a   : > { %6272 = vmatprep.mubr.msk.bf16.mxu0 %vm1584_vm1, %v4291_v3  ;;  %v7678_v4 = vpop.f32.mrf.mxu1  ;;  %v4312_v3 = vshll.u32 %v6517_v12, 16  ;;  %v4320_v31 = vshll.u32 %v6519_v60, 16 }
 0x23b   : > { %8921 = vst [vmem:[#allocation16_spill] sm:$0xff] %v7678_v4  ;;  %v7680_v5 = vpop.f32.mrf.mxu0 }
 0x23c   : > { %v7682_v18 = vpop.f32.mrf.mxu1  ;;  %v4314_v26 = vrot.slane %v4312_v3, 1  ;;  %v4322_v62 = vrot.slane %v4320_v31, 1  ;;  %v8932_v3 = vcombine.low %v8893_v30, %v8892_v57  ;;  %v8934_v31 = vcombine.low %v8895_v20, %v7278_v48 }
 0x23d   : > { %8922 = vst [vmem:[#allocation30_spill] sm:$0xff] %v7682_v18  ;;  %v7684_v15 = vpop.f32.mrf.mxu0  ;;  %v4324_v57 = vshrl.u32 %v6519_v60, 16  ;;  %v6525_v60 = vld [vmem:[#allocation2 + $0x90] sm:$0xff]  }
 0x23e   : > { %v7686_v51 = vpop.f32.mrf.mxu1 }
 0x23f   : > { %8923 = vst [vmem:[#allocation27_spill] sm:$0xff] %v7686_v51  ;;  %v7688_v55 = vpop.f32.mrf.mxu0 }
 0x240   : > { %v7690_v46 = vpop.f32.mrf.mxu1  ;;  %6173 = vmatmul.mubr.msk.bf16.gmra.mxu1 %vm1584_vm1, %v8925_v25 }
 0x241   : > { %8924 = vst [vmem:[#allocation35_spill] sm:$0xff] %v7690_v46  ;;  %v7697_v18 = vpop.f32.mrf.mxu0  ;;  %6273 = vmatmul.mubr.msk.bf16.gmra.mxu0 %vm1584_vm1, %v4299_v2  ;;  %6176 = vmatprep.mubr.msk.bf16.mxu1 %vm1584_vm1, %v8926_v21  ;;  %v4308_v46 = vshrl.u32 %v6515_v16, 16  ;;  %v3922_v2 = vshll.u32 %v6522_v37, 16  ;;  %v6523_v21 = vld [vmem:[#allocation2 + $0x80] sm:$0xff]  }
 0x242   : > { %6276 = vmatprep.mubr.msk.bf16.mxu0 %vm1584_vm1, %v4307_v24  ;;  %v7706_v23 = vpop.f32.mrf.mxu1  ;;  %v4318_v24 = vor.u32 %v4316_v32, %v4314_v26 }
 0x243   : > { %8927 = vst [vmem:[#allocation34_spill] sm:$0xff] %v7706_v23  ;;  %v7708_v34 = vpop.f32.mrf.mxu0  ;;  %v4310_v25 = vor.u32 %v4308_v46, %v4306_v35  ;;  %v3920_v35 = vshrl.u32 %v6522_v37, 16 }
 0x244   : > { %v7710_v51 = vpop.f32.mrf.mxu1  ;;  %v4323_v32 = vsel %vm3557_vm3, %v4318_v24, %v4322_v62  ;;  %v4332_v24 = vshrl.u32 %v6521_v38, 16 }
 0x245   : > { %8928 = vst [vmem:[#allocation33_spill] sm:$0xff] %v7710_v51  ;;  %v7712_v4 = vpop.f32.mrf.mxu0  ;;  %v4315_v46 = vsel %vm3557_vm3, %v4310_v25, %v4314_v26  ;;  %v3924_v51 = vrot.slane %v3922_v2, 1  ;;  %v4330_v26 = vrot.slane %v4328_v54, 1  ;;  %v4326_v25 = vor.u32 %v4324_v57, %v4322_v62 }
 0x246   : > { %v7714_v41 = vpop.f32.mrf.mxu1  ;;  %v4352_v62 = vshll.u32 %v6525_v60, 16 }
 0x247   : > { %8929 = vst [vmem:[#allocation31_spill] sm:$0xff] %v7714_v41  ;;  %v7716_v16 = vpop.f32.mrf.mxu0  ;;  %v6524_v41 = vld [vmem:[#allocation2 + $0x88] sm:$0xff]   ;;  %v3925_v20 = vor.u32 %v3924_v51, %v3920_v35  ;;  %v4331_v54 = vsel %vm3557_vm3, %v4326_v25, %v4330_v26  ;;  %v4340_v35 = vshrl.u32 %v6523_v21, 16 }
 0x248   : > { %8930 = vst [vmem:[#allocation43_spill] sm:$0xff] %v7716_v16  ;;  %v7718_v23 = vpop.f32.mrf.mxu1  ;;  %6177 = vmatmul.mubr.msk.bf16.gmra.mxu1 %vm1584_vm1, %v8932_v3  ;;  %v8937_v3 = vld [vmem:[#allocation42_spill] sm:$0xff]  ;;  %v4348_v25 = vshrl.u32 %v6524_v41, 16 }
 0x249   : > { %8931 = vst [vmem:[#allocation37_spill] sm:$0xff] %v7718_v23  ;;  %v7725_v12 = vpop.f32.mrf.mxu0  ;;  %6277 = vmatmul.mubr.msk.bf16.gmra.mxu0 %vm1584_vm1, %v4315_v46  ;;  %6180 = vmatprep.mubr.msk.bf16.mxu1 %vm1584_vm1, %v8934_v31  ;;  %v4336_v23 = vshll.u32 %v6523_v21, 16  ;;  %v5548_v48 = vcombine.low %v8937_v3, %v7288_v28  ;;  %v3926_v28 = vsel %vm3557_vm3, %v3925_v20, %v7461_v63  ;;  %v6526_v3 = vld [vmem:[#allocation2 + $0x98] ss:$0 sps:$4 sm:$0x11]  }
 0x24a   : > { %8933 = vst [vmem:[#allocation25_spill] sm:$0xff] %v7725_v12  ;;  %6280 = vmatprep.mubr.msk.bf16.mxu0 %vm1584_vm1, %v4323_v32  ;;  %v7734_v30 = vpop.f32.mrf.mxu1  ;;  %v4344_v12 = vshll.u32 %v6524_v41, 16 }
 0x24b   : > { %8935 = vst [vmem:[#allocation41_spill] sm:$0xff] %v7734_v30  ;;  %v7736_v37 = vpop.f32.mrf.mxu0  ;;  %v4338_v31 = vrot.slane %v4336_v23, 1  ;;  %v4334_v30 = vor.u32 %v4332_v24, %v4330_v26 }
 0x24c   : > { %8936 = vst [vmem:[#allocation40_spill] sm:$0xff] %v7736_v37  ;;  %v7738_v2 = vpop.f32.mrf.mxu1  ;;  %v4346_v38 = vrot.slane %v4344_v12, 1  ;;  %v4356_v12 = vshrl.u32 %v6525_v60, 16 }
 0x24d   : > { %v7742_v46 = vpop.f32.mrf.mxu0  ;;  %v4339_v23 = vsel %vm3557_vm3, %v4334_v30, %v4338_v31  ;;  %v4342_v63 = vor.u32 %v4340_v35, %v4338_v31  ;;  %v4360_v30 = vshll.u32 %v6526_v3, 16 }
 0x24e   : > { %v7744_v16 = vpop.f32.mrf.mxu1  ;;  %v4350_v24 = vor.u32 %v4348_v25, %v4346_v38 }
 0x24f   : > { %v7746_v32 = vpop.f32.mrf.mxu0  ;;  %v4362_v3 = vrot.slane %v4360_v30, 1 }
 0x250   : > { %v7748_v37 = vpop.f32.mrf.mxu1  ;;  %6181 = vmatmul.mubr.msk.bf16.gmra.mxu1 %vm1584_vm1, %v5548_v48 }
 0x251   : > { %v7754_v51 = vpop.f32.mrf.mxu0  ;;  %6281 = vmatmul.mubr.msk.bf16.gmra.mxu0 %vm1584_vm1, %v4331_v54  ;;  %6224 = vmatprep.mubr.msk.bf16.mxu1 %vm1584_vm1, %v3926_v28  ;;  %v4354_v54 = vrot.slane %v4352_v62, 1 }
 0x252   : > { %6284 = vmatprep.mubr.msk.bf16.mxu0 %vm1584_vm1, %v4339_v23  ;;  %v7760_v57 = vpop.f32.mrf.mxu1 }
 0x253   : > { %8938 = vst [vmem:[#allocation28_spill] sm:$0xff] %v7760_v57  ;;  %v7762_v26 = vpop.f32.mrf.mxu0  ;;  %v4347_v57 = vsel %vm3557_vm3, %v4342_v63, %v4346_v38  ;;  %v4355_v60 = vsel %vm3557_vm3, %v4350_v24, %v4354_v54  ;;  %v4358_v62 = vor.u32 %v4356_v12, %v4354_v54 }
 0x254   : > { %v7764_v48 = vpop.f32.mrf.mxu1 }
 0x255   : > { %v7766_v20 = vpop.f32.mrf.mxu0  ;;  %v4363_v54 = vsel %vm3557_vm3, %v4358_v62, %v4362_v3 }
 0x256   : > { %v7768_v28 = vpop.f32.mrf.mxu1 }
 0x257   : > { %v7770_v21 = vpop.f32.mrf.mxu0 }
 0x258   : > { %v6010_v23 = vpop.f32.mrf.mxu1  ;;  %6225 = vmatmul.mubr.msk.bf16.vlgmr.msra.gmra.mxu1 %vm1584_vm1, %v7477_v14 }
 0x259   : > { %v1894_v41 = vadd.f32 %v6010_v23, %v7570_v56  ;;  %v7776_v31 = vpop.f32.mrf.mxu0  ;;  %6285 = vmatmul.mubr.msk.bf16.gmra.mxu0 %vm1584_vm1, %v4347_v57  ;;  %6228 = vmatprep.mubr.msk.bf16.mxu1 %vm1584_vm1, %v7484_v49 }
 0x25a   : > { %6288 = vmatprep.mubr.msk.bf16.mxu0 %vm1584_vm1, %v4355_v60  ;;  %v1885_v35 = vpop.f32.mrf.mxu1 }
 0x25b   : > { %v7784_v14 = vadd.f32 %v7610_v6, %v1894_v41  ;;  %v1886_v38 = vadd.f32 %v1885_v35, %v7574_v22  ;;  %v7787_v56 = vpop.f32.mrf.mxu0 }
 0x25c   : > { %v6011_v25 = vpop.f32.mrf.mxu1 }
 0x25d   : > { %v7790_v57 = vadd.f32 %v7614_v44, %v1886_v38  ;;  %v1897_v49 = vadd.f32 %v6011_v25, %v7576_v8  ;;  %v7793_v63 = vpop.f32.mrf.mxu0 }
 0x25e   : > { %v1888_v24 = vpop.f32.mrf.mxu1 }
 0x25f   : > { %v7797_v12 = vadd.f32 %v7619_v33, %v1897_v49  ;;  %v1889_v6 = vadd.f32 %v1888_v24, %v7590_v7  ;;  %v7800_v30 = vpop.f32.mrf.mxu0 }
 0x260   : > { %v6014_v22 = vpop.f32.mrf.mxu1  ;;  %6229 = vmatmul.mubr.msk.bf16.gmra.mxu1 %vm1584_vm1, %v7491_v45 }
 0x261   : > { %v7805_v44 = vadd.f32 %v7632_v40, %v1889_v6  ;;  %v1910_v8 = vadd.f32 %v6014_v22, %v7594_v43  ;;  %v7808_v23 = vpop.f32.mrf.mxu0  ;;  %6232 = vmatprep.mubr.msk.bf16.mxu1 %vm1584_vm1, %v7499_v36  ;;  %6289 = vmatmul.mubr.msk.bf16.gmra.mxu0 %vm1584_vm1, %v4363_v54 }
 0x262   : > { %v1901_v33 = vpop.f32.mrf.mxu1 }
 0x263   : > { %v7814_v7 = vadd.f32 %v7636_v50, %v1910_v8  ;;  %v1902_v41 = vadd.f32 %v1901_v33, %v7596_v1  ;;  %v7817_v60 = vpop.f32.mrf.mxu0 }
 0x264   : > { %v6015_v45 = vpop.f32.mrf.mxu1 }
 0x265   : > { %v7820_v40 = vadd.f32 %v7651_v0, %v1902_v41  ;;  %v1913_v43 = vadd.f32 %v6015_v45, %v7598_v59  ;;  %v7823_v62 = vpop.f32.mrf.mxu0 }
 0x266   : > { %v1904_v35 = vpop.f32.mrf.mxu1 }
 0x267   : > { %v7826_v36 = vadd.f32 %v7656_v53, %v1913_v43  ;;  %v1905_v3 = vadd.f32 %v1904_v35, %v7605_v11  ;;  %v7829_v50 = vpop.f32.mrf.mxu0  ;;  %v8939_v35 = vld [vmem:[#allocation26_spill] sm:$0xff] }
 0x268   : > { %v6018_v38 = vpop.f32.mrf.mxu1  ;;  %6233 = vmatmul.mubr.msk.bf16.gmra.mxu1 %vm1584_vm1, %v7506_v39 }
 0x269   : > { %v7834_v1 = vadd.f32 %v7660_v19, %v1905_v3  ;;  %v1926_v0 = vadd.f32 %v6018_v38, %v7608_v9  ;;  %v7837_v59 = vpop.f32.mrf.mxu0  ;;  %6236 = vmatprep.mubr.msk.bf16.mxu1 %vm1584_vm1, %v7513_v10 }
 0x26a   : > { %v1917_v53 = vpop.f32.mrf.mxu1 }
 0x26b   : > { %v7842_v25 = vadd.f32 %v7669_v42, %v1926_v0  ;;  %v1918_v11 = vadd.f32 %v1917_v53, %v7612_v29  ;;  %v7845_v49 = vpop.f32.mrf.mxu0  ;;  %v6528_v29 = vld [vmem:[%s8758_s5 + $0x8] sm:$0xff]  }
 0x26c   : > { %v6019_v24 = vpop.f32.mrf.mxu1  ;;  %6292 = vmatprep.subr.bf16.mxu1 %v6528_v29  ;;  %v8941_v0 = vld [vmem:[#allocation43_spill] sm:$0xff] }
 0x26d   : > { %v7848_v39 = vadd.f32 %v7680_v5, %v1918_v11  ;;  %v1929_v19 = vadd.f32 %v6019_v24, %v7617_v47  ;;  %v7851_v9 = vpop.f32.mrf.mxu0  ;;  %6293 = vmatpush3.bf16.msra.mxu1 %v6528_v29  ;;  %v8943_v24 = vld [vmem:[#allocation22_spill] sm:$0xff] }
 0x26e   : > { %v1920_v54 = vpop.f32.mrf.mxu1 }
 0x26f   : > { %v7854_v6 = vadd.f32 %v7684_v15, %v1929_v19  ;;  %v1921_v10 = vadd.f32 %v1920_v54, %v7629_v13  ;;  %v7857_v42 = vpop.f32.mrf.mxu0  ;;  %v8944_v19 = vld [vmem:[#allocation25_spill] sm:$0xff] }
 0x270   : > { %v6022_v22 = vpop.f32.mrf.mxu1  ;;  %6237 = vmatmul.mubr.msk.bf16.gmra.mxu1 %vm1584_vm1, %v7520_v17 }
 0x271   : > { %v7865_v47 = vadd.f32 %v7688_v55, %v1921_v10  ;;  %v1942_v5 = vadd.f32 %v6022_v22, %v7634_v27  ;;  %v7868_v8 = vpop.f32.mrf.mxu0  ;;  %6240 = vmatprep.mubr.msk.bf16.mxu1 %vm1584_vm1, %v7527_v58  ;;  %v8945_v10 = vld [vmem:[#allocation16_spill] sm:$0xff] }
 0x272   : > { %v1933_v13 = vpop.f32.mrf.mxu1 }
 0x273   : > { %v7873_v15 = vadd.f32 %v7697_v18, %v1942_v5  ;;  %v1934_v33 = vadd.f32 %v1933_v13, %v7638_v52  ;;  %v7876_v41 = vpop.f32.mrf.mxu0  ;;  %v8940_v52 = vld [vmem:[#allocation17_spill] sm:$0xff]  ;;  %v8946_v13 = vld [vmem:[#allocation40_spill] sm:$0xff] }
 0x274   : > { %v6023_v17 = vpop.f32.mrf.mxu1 }
 0x275   : > { %v7879_v55 = vadd.f32 %v7708_v34, %v1934_v33  ;;  %v1945_v27 = vadd.f32 %v6023_v17, %v7653_v61  ;;  %v7882_v45 = vpop.f32.mrf.mxu0  ;;  %v8942_v34 = vld [vmem:[#allocation19_spill] sm:$0xff]  ;;  %v8948_v17 = vld [vmem:[#allocation30_spill] sm:$0xff] }
 0x276   : > { %v1936_v43 = vpop.f32.mrf.mxu1 }
 0x277   : > { %v7885_v58 = vadd.f32 %v7712_v4, %v1945_v27  ;;  %v1937_v3 = vadd.f32 %v1936_v43, %v8939_v35  ;;  %v7888_v18 = vpop.f32.mrf.mxu0 }
 0x278   : > { %v6026_v38 = vpop.f32.mrf.mxu1  ;;  %6241 = vmatmul.mubr.msk.bf16.gmra.mxu1 %vm1584_vm1, %v8940_v52 }
 0x279   : > { %v7893_v53 = vadd.f32 %v8941_v0, %v1937_v3  ;;  %v1958_v11 = vadd.f32 %v6026_v38, %v8942_v34  ;;  %v7896_v61 = vpop.f32.mrf.mxu0  ;;  %6244 = vmatprep.mubr.msk.bf16.mxu1 %vm1584_vm1, %v8943_v24  ;;  %v8950_v38 = vld [vmem:[#allocation27_spill] sm:$0xff] }
 0x27a   : > { %v1949_v4 = vpop.f32.mrf.mxu1 }
 0x27b   : > { %v7901_v54 = vadd.f32 %v8944_v19, %v1958_v11  ;;  %v1950_v29 = vadd.f32 %v1949_v4, %v8945_v10  ;;  %v7904_v22 = vpop.f32.mrf.mxu0  ;;  %v8951_v11 = vld [vmem:[#allocation21_spill] sm:$0xff]  ;;  %v8953_v4 = vld [vmem:[#allocation35_spill] sm:$0xff] }
 0x27c   : > { %v6027_v5 = vpop.f32.mrf.mxu1 }
 0x27d   : > { %v7907_v33 = vadd.f32 %v8946_v13, %v1950_v29  ;;  %v1961_v27 = vadd.f32 %v6027_v5, %v8948_v17  ;;  %v7910_v43 = vpop.f32.mrf.mxu0  ;;  %v8954_v29 = vld [vmem:[#allocation24_spill] sm:$0xff]  ;;  %v8956_v13 = vld [vmem:[#allocation34_spill] sm:$0xff] }
 0x27e   : > { %v1952_v35 = vpop.f32.mrf.mxu1 }
 0x27f   : > { %8947 = vst [vmem:[#allocation44_spill] sm:$0xff] %v7907_v33  ;;  %v7913_v3 = vadd.f32 %v7742_v46, %v1961_v27  ;;  %v1953_v52 = vadd.f32 %v1952_v35, %v8950_v38  ;;  %v7916_v0 = vpop.f32.mrf.mxu0 }
 0x280   : > { %v6030_v34 = vpop.f32.mrf.mxu1  ;;  %6245 = vmatmul.mubr.msk.bf16.gmra.mxu1 %vm1584_vm1, %v8951_v11  ;;  %v6527_v11 = vld [vmem:[#allocation2 + $0x88] ss:$0 sps:$4 sm:$0x11]  }
 0x281   : > { %8949 = vst [vmem:[#allocation32_spill] sm:$0xff] %v7913_v3  ;;  %v7921_v24 = vadd.f32 %v7746_v32, %v1953_v52  ;;  %v1974_v19 = vadd.f32 %v6030_v34, %v8953_v4  ;;  %v7924_v10 = vpop.f32.mrf.mxu0  ;;  %6248 = vmatprep.mubr.msk.bf16.mxu1 %vm1584_vm1, %v8954_v29  ;;  %v8958_v32 = vld [vmem:[#allocation33_spill] sm:$0xff] }
 0x282   : > { %v1965_v46 = vpop.f32.mrf.mxu1 }
 0x283   : > { %8952 = vst [vmem:[#allocation36_spill] sm:$0xff] %v7921_v24  ;;  %v7929_v5 = vadd.f32 %v7754_v51, %v1974_v19  ;;  %v1966_v17 = vadd.f32 %v1965_v46, %v8956_v13  ;;  %v7932_v27 = vpop.f32.mrf.mxu0  ;;  %v8960_v24 = vld [vmem:[#allocation31_spill] sm:$0xff] }
 0x284   : > { %v6031_v35 = vpop.f32.mrf.mxu1  ;;  %v8961_v13 = vld [vmem:[#allocation23_spill] sm:$0xff] }
 0x285   : > { %8955 = vst [vmem:[#allocation38_spill] sm:$0xff] %v7929_v5  ;;  %v7935_v38 = vadd.f32 %v7762_v26, %v1966_v17  ;;  %v1977_v52 = vadd.f32 %v6031_v35, %v8958_v32  ;;  %v7938_v34 = vpop.f32.mrf.mxu0  ;;  %v8963_v17 = vld [vmem:[#allocation37_spill] sm:$0xff] }
 0x286   : > { %v1968_v4 = vpop.f32.mrf.mxu1 }
 0x287   : > { %8957 = vst [vmem:[#allocation39_spill] sm:$0xff] %v7935_v38  ;;  %v7941_v29 = vadd.f32 %v7766_v20, %v1977_v52  ;;  %v1969_v51 = vadd.f32 %v1968_v4, %v8960_v24  ;;  %v7944_v19 = vpop.f32.mrf.mxu0  ;;  %v8964_v38 = vld [vmem:[#allocation29_spill] sm:$0xff]  ;;  %v3928_v20 = vshll.u32 %v6527_v11, 16 }
 0x288   : > { %v6034_v46 = vpop.f32.mrf.mxu1  ;;  %6249 = vmatmul.mubr.msk.bf16.gmra.mxu1 %vm1584_vm1, %v8961_v13  ;;  %v8966_v4 = vld [vmem:[#allocation41_spill] sm:$0xff] }
 0x289   : > { %8959 = vst [vmem:[#allocation13_spill] sm:$0xff] %v7941_v29  ;;  %v7949_v26 = vadd.f32 %v7770_v21, %v1969_v51  ;;  %v1990_v35 = vadd.f32 %v6034_v46, %v8963_v17  ;;  %v7952_v32 = vpop.f32.mrf.mxu0  ;;  %6252 = vmatprep.mubr.msk.bf16.mxu1 %vm1584_vm1, %v8964_v38  ;;  %v3930_v17 = vrot.slane %v3928_v20, 1 }
 0x28a   : > { %v1981_v52 = vpop.f32.mrf.mxu1 }
 0x28b   : > { %8962 = vst [vmem:[#allocation12_spill] sm:$0xff] %v7949_v26  ;;  %v7957_v24 = vadd.f32 %v7776_v31, %v1990_v35  ;;  %v1982_v29 = vadd.f32 %v1981_v52, %v8966_v4  ;;  %v7960_v5 = vpop.f32.mrf.mxu0  ;;  %v8969_v35 = vld [vmem:[#allocation18_spill] sm:$0xff]  ;;  %v8972_v4 = vld [vmem:[#allocation28_spill] sm:$0xff] }
 0x28c   : > { %v6035_v13 = vpop.f32.mrf.mxu1  ;;  %v3931_v52 = vsel %vm3557_vm3, %v8969_v35, %v3930_v17 }
 0x28d   : > { %8965 = vst [vmem:[#allocation14_spill] sm:$0xff] %v7957_v24  ;;  %v7963_v21 = vadd.f32 %v7787_v56, %v1982_v29  ;;  %v1993_v51 = vadd.f32 %v6035_v13, %v7738_v2  ;;  %v7966_v46 = vpop.f32.mrf.mxu0  ;;  %v6529_v56 = vld [vmem:[%s8758_s5] sm:$0xff]  }
 0x28e   : > { %v1984_v26 = vpop.f32.mrf.mxu1  ;;  %6294 = vmatprep.subr.bf16.mxu1 %v6529_v56 }
 0x28f   : > { %8967 = vst [vmem:[#allocation15_spill] sm:$0xff] %v7963_v21  ;;  %v7969_v38 = vadd.f32 %v7793_v63, %v1993_v51  ;;  %v1985_v31 = vadd.f32 %v1984_v26, %v7744_v16  ;;  %v7972_v11 = vpop.f32.mrf.mxu0  ;;  %6295 = vmatpush3.bf16.msra.mxu1 %v6529_v56 }
 0x290   : > { %v6038_v29 = vpop.f32.mrf.mxu1  ;;  %6253 = vmatmul.mubr.msk.bf16.gmra.mxu1 %vm1584_vm1, %v3931_v52 }
 0x291   : > { %8968 = vst [vmem:[#allocation20_spill] sm:$0xff] %v7969_v38  ;;  %v7981_v2 = vadd.f32 %v7800_v30, %v1985_v31  ;;  %v2006_v63 = vadd.f32 %v6038_v29, %v7748_v37  ;;  %v7984_v20 = vpop.f32.mrf.mxu0 }
 0x292   : > { %v1997_v16 = vpop.f32.mrf.mxu1 }
 0x293   : > { %8970 = vst [vmem:[#allocation42_spill] sm:$0xff] %v7981_v2  ;;  %v7987_v26 = vadd.f32 %v7808_v23, %v2006_v63  ;;  %v1998_v13 = vadd.f32 %v1997_v16, %v8972_v4  ;;  %v7990_v51 = vpop.f32.mrf.mxu0 }
 0x294   : > { %v6039_v17 = vpop.f32.mrf.mxu1 }
 0x295   : > { %8971 = vst [vmem:[#allocation26_spill] sm:$0xff] %v7987_v26  ;;  %v7993_v35 = vadd.f32 %v7817_v60, %v1998_v13  ;;  %v2009_v30 = vadd.f32 %v6039_v17, %v7764_v48  ;;  %v7996_v31 = vpop.f32.mrf.mxu0 }
 0x296   : > { %v2000_v37 = vpop.f32.mrf.mxu1 }
 0x297   : > { %8973 = vst [vmem:[#allocation17_spill] sm:$0xff] %v7993_v35  ;;  %v7999_v52 = vadd.f32 %v7823_v62, %v2009_v30  ;;  %v2001_v56 = vadd.f32 %v2000_v37, %v7768_v28  ;;  %v8002_v23 = vpop.f32.mrf.mxu0 }
 0x298   : > { %v6082_v29 = vpop.f32.mrf.mxu1 }
 0x299   : > { %8974 = vst [vmem:[#allocation43_spill] sm:$0xff] %v7999_v52  ;;  %v8005_v63 = vadd.f32 %v7829_v50, %v2001_v56  ;;  %v8008_v16 = vadd.f32 %v7837_v59, %v6082_v29  ;;  %v8010_v60 = vpop.f32.mrf.mxu0 }
 0x29a   : > { %v2818_v48 = vpop.f32.mrf.mxu1 }
 0x29b   : > { %8975 = vst [vmem:[#allocation19_spill] sm:$0xff] %v8005_v63  ;;  %v8013_v4 = vadd.f32 %v7845_v49, %v2818_v48  ;;  %v8015_v13 = vpop.f32.mrf.mxu0 }
 0x29c   : > { %v6083_v62 = vpop.f32.mrf.mxu1 }
 0x29d   : > { %v8018_v28 = vadd.f32 %v7851_v9, %v6083_v62  ;;  %v8020_v17 = vpop.f32.mrf.mxu0 }
 0x29e   : > { %v8022_v30 = vpop.f32.mrf.mxu1 }
 0x29f   : > { %v8024_v50 = vpop.f32.mrf.mxu0 }
 0x2a0   : > { %v6086_v59 = vpop.f32.mrf.mxu1 }
 0x2a1   : > { %v8027_v37 = vadd.f32 %v7868_v8, %v6086_v59  ;;  %v8029_v56 = vpop.f32.mrf.mxu0 }
 0x2a2   : > { %v2834_v49 = vpop.f32.mrf.mxu1 }
 0x2a3   : > { %v8032_v29 = vadd.f32 %v7876_v41, %v2834_v49  ;;  %v8034_v48 = vpop.f32.mrf.mxu0 }
 0x2a4   : > { %v6087_v9 = vpop.f32.mrf.mxu1 }
 0x2a5   : > { %v8037_v62 = vadd.f32 %v7882_v45, %v6087_v9  ;;  %v8039_v63 = vpop.f32.mrf.mxu0 }
 0x2a6   : > { %v8041_v52 = vpop.f32.mrf.mxu1 }
 0x2a7   : > { %v8043_v35 = vpop.f32.mrf.mxu0 }
 0x2a8   : > { %v6090_v8 = vpop.f32.mrf.mxu1 }
 0x2a9   : > { %v8046_v59 = vadd.f32 %v7896_v61, %v6090_v8  ;;  %v8048_v26 = vpop.f32.mrf.mxu0 }
 0x2aa   : > { %8976 = vst [vmem:[#allocation22_spill] sm:$0xff] %v8048_v26  ;;  %v2850_v41 = vpop.f32.mrf.mxu1 }
 0x2ab   : > { %v8051_v49 = vadd.f32 %v7904_v22, %v2850_v41  ;;  %v8053_v2 = vpop.f32.mrf.mxu0 }
 0x2ac   : > { %8977 = vst [vmem:[#allocation25_spill] sm:$0xff] %v8053_v2  ;;  %v6091_v45 = vpop.f32.mrf.mxu1 }
 0x2ad   : > { %v8056_v9 = vadd.f32 %v7910_v43, %v6091_v45  ;;  %v8058_v38 = vpop.f32.mrf.mxu0 }
 0x2ae   : > { %8978 = vst [vmem:[#allocation16_spill] sm:$0xff] %v8058_v38  ;;  %v8060_v21 = vpop.f32.mrf.mxu1 }
 0x2af   : > { %v8062_v24 = vpop.f32.mrf.mxu0 }
 0x2b0   : > { %8979 = vst [vmem:[#allocation40_spill] sm:$0xff] %v8062_v24  ;;  %v6094_v61 = vpop.f32.mrf.mxu1 }
 0x2b1   : > { %v8065_v8 = vadd.f32 %v7924_v10, %v6094_v61  ;;  %v8067_v26 = vpop.f32.mrf.mxu0 }
 0x2b2   : > { %8980 = vst [vmem:[#allocation30_spill] sm:$0xff] %v8067_v26  ;;  %v2866_v22 = vpop.f32.mrf.mxu1 }
 0x2b3   : > { %v8070_v41 = vadd.f32 %v7932_v27, %v2866_v22  ;;  %v8072_v2 = vpop.f32.mrf.mxu0 }
 0x2b4   : > { %8981 = vst [vmem:[#allocation27_spill] sm:$0xff] %v8072_v2  ;;  %v6095_v43 = vpop.f32.mrf.mxu1 }
 0x2b5   : > { %v8075_v45 = vadd.f32 %v7938_v34, %v6095_v43  ;;  %v8077_v38 = vpop.f32.mrf.mxu0 }
 0x2b6   : > { %8982 = vst [vmem:[#allocation21_spill] sm:$0xff] %v8077_v38  ;;  %v8079_v3 = vpop.f32.mrf.mxu1 }
 0x2b7   : > { %v8081_v24 = vpop.f32.mrf.mxu0 }
 0x2b8   : > { %8983 = vst [vmem:[#allocation35_spill] sm:$0xff] %v8081_v24  ;;  %v6098_v10 = vpop.f32.mrf.mxu1 }
 0x2b9   : > { %v8084_v61 = vadd.f32 %v7952_v32, %v6098_v10  ;;  %v8086_v26 = vpop.f32.mrf.mxu0 }
 0x2ba   : > { %8984 = vst [vmem:[#allocation24_spill] sm:$0xff] %v8086_v26  ;;  %v2882_v27 = vpop.f32.mrf.mxu1 }
 0x2bb   : > { %v8089_v22 = vadd.f32 %v7960_v5, %v2882_v27  ;;  %v8091_v2 = vpop.f32.mrf.mxu0 }
 0x2bc   : > { %8985 = vst [vmem:[#allocation34_spill] sm:$0xff] %v8091_v2  ;;  %v6099_v34 = vpop.f32.mrf.mxu1 }
 0x2bd   : > { %v8094_v43 = vadd.f32 %v7966_v46, %v6099_v34  ;;  %v8096_v38 = vpop.f32.mrf.mxu0 }
 0x2be   : > { %8986 = vst [vmem:[#allocation33_spill] sm:$0xff] %v8096_v38  ;;  %v2885_v33 = vpop.f32.mrf.mxu1 }
 0x2bf   : > { %v8099_v24 = vadd.f32 %v7972_v11, %v2885_v33  ;;  %v8101_v32 = vpop.f32.mrf.mxu0 }
 0x2c0   : > { %8987 = vst [vmem:[#allocation31_spill] sm:$0xff] %v8101_v32  ;;  %v6102_v10 = vpop.f32.mrf.mxu1 }
 0x2c1   : > { %v8104_v26 = vadd.f32 %v7984_v20, %v6102_v10  ;;  %v8106_v5 = vpop.f32.mrf.mxu0  ;;  %v874_v10 = vlaneseq }
 0x2c2   : > { %8989 = vst [vmem:[#allocation37_spill] sm:$0xff] %v8106_v5  ;;  %v2898_v27 = vpop.f32.mrf.mxu1 }
 0x2c3   : > { %8988 = vst [vmem:[#allocation23_spill] sm:$0xff] %v8104_v26  ;;  %v8109_v2 = vadd.f32 %v7990_v51, %v2898_v27  ;;  %v8111_v46 = vpop.f32.mrf.mxu0 }
 0x2c4   : > { %8990 = vst [vmem:[#allocation29_spill] sm:$0xff] %v8111_v46  ;;  %v6103_v34 = vpop.f32.mrf.mxu1 }
 0x2c5   : > { %v8114_v38 = vadd.f32 %v7996_v31, %v6103_v34  ;;  %v8116_v33 = vpop.f32.mrf.mxu0  ;;  %v8133_v34 = vshrl.u32 %v874_v10, 7 }
 0x2c6   : > { %8991 = vst [vmem:[#allocation41_spill] sm:$0xff] %v8116_v33  ;;  %v2901_v11 = vpop.f32.mrf.mxu1 }
 0x2c7   : > { %v8119_v32 = vadd.f32 %v8002_v23, %v2901_v11  ;;  %v8121_v20 = vpop.f32.mrf.mxu0 }
 0x2c8   : > { %8992 = vst [vmem:[#allocation18_spill] sm:$0xff] %v8121_v20  ;;  %v6106_v5 = vpop.f32.mrf.mxu1 }
 0x2c9   : > { %v8124_v26 = vadd.f32 %v8010_v60, %v6106_v5  ;;  %v8126_v51 = vpop.f32.mrf.mxu0 }
 0x2ca   : > { %8993 = vst [vmem:[#allocation28_spill] sm:$0xff] %v8126_v51  ;;  %v2914_v27 = vpop.f32.mrf.mxu1  ;;  %v877_v51 = vadd.s32 16, %v8133_v34 }
 0x2cb   : > { %v8129_v46 = vadd.f32 %v8015_v13, %v2914_v27  ;;  %v8131_v31 = vpop.f32.mrf.mxu0 }
 0x2cc   : > { %8994 = vst [vmem:[#allocation45_spill] sm:$0xff] %v8131_v31  ;;  %v6107_v33 = vpop.f32.mrf.mxu1 }
 0x2cd   : > { %v8136_v23 = vadd.f32 %v8020_v17, %v6107_v33  ;;  %v8138_v11 = vpop.f32.mrf.mxu0 }
 0x2ce   : > { %8996 = vst [vmem:[#allocation47_spill] sm:$0xff] %v8138_v11  ;;  %v2917_v20 = vpop.f32.mrf.mxu1  ;;  %v925_v11 = vand.u32 15, %v877_v51 }
 0x2cf   : > { %8995 = vst [vmem:[#allocation46_spill] sm:$0xff] %v8136_v23  ;;  %v8141_v60 = vadd.f32 %v8024_v50, %v2917_v20  ;;  %v8143_v5 = vpop.f32.mrf.mxu0 }
 0x2d0   : > { %8998 = vst [vmem:[#allocation49_spill] sm:$0xff] %v8143_v5  ;;  %v6110_v13 = vpop.f32.mrf.mxu1  ;;  %v911_v5 = vand.u32 15, %v8133_v34  ;;  %vm2540_vm4 = vcmp.ge.s32.totalorder %v925_v11, 1 }
 0x2d1   : > { %8997 = vst [vmem:[#allocation48_spill] sm:$0xff] %v8141_v60  ;;  %v8147_v27 = vadd.f32 %v8029_v56, %v6110_v13  ;;  %v8149_v10 = vpop.f32.mrf.mxu0 }
 0x2d2   : > { %8999 = vst [vmem:[#allocation50_spill] sm:$0xff] %v8149_v10  ;;  %v2930_v31 = vpop.f32.mrf.mxu1  ;;  %vm2538_vm5 = vcmp.ge.s32.totalorder %v911_v5, 1 }
 0x2d3   : > { %v8152_v17 = vadd.f32 %v8034_v48, %v2930_v31  ;;  %v8154_v33 = vpop.f32.mrf.mxu0  ;;  %v881_v48 = vadd.s32 48, %v8133_v34 }
 0x2d4   : > { %9000 = vst [vmem:[#allocation51_spill] sm:$0xff] %v8154_v33  ;;  %v6111_v23 = vpop.f32.mrf.mxu1 }
 0x2d5   : > { %v8157_v50 = vadd.f32 %v8039_v63, %v6111_v23  ;;  %v8159_v20 = vpop.f32.mrf.mxu0  ;;  %v879_v63 = vadd.s32 32, %v8133_v34  ;;  %v2636_v23 = vsel %vm2540_vm4, %v7784_v14, 0.0  ;;  %v953_v11 = vand.u32 15, %v881_v48 }
 0x2d6   : > { %9001 = vst [vmem:[#allocation52_spill] sm:$0xff] %v8159_v20  ;;  %v2933_v60 = vpop.f32.mrf.mxu1 }
 0x2d7   : > { %v8163_v56 = vadd.f32 %v8043_v35, %v2933_v60  ;;  %v8165_v13 = vpop.f32.mrf.mxu0  ;;  %v939_v14 = vand.u32 15, %v879_v63  ;;  %vm2544_vm6 = vcmp.ge.s32.totalorder %v953_v11, 1 }
 0x2d8   : > { %9003 = vst [vmem:[#allocation54_spill] sm:$0xff] %v8165_v13  ;;  %v6154_v31 = vpop.f32.mrf.mxu1  ;;  %v2634_v13 = vsel %vm2538_vm5, %v7790_v57, 0.0  ;;  %v885_v57 = vadd.s32 80, %v8133_v34 }
 0x2d9   : > { %9002 = vst [vmem:[#allocation53_spill] sm:$0xff] %v8163_v56  ;;  %v3366_v51 = vadd.f32 %v6154_v31, %v8008_v16  ;;  %v8169_v33 = vpop.f32.mrf.mxu0  ;;  %v2999_v16 = vadd.f32 %v7857_v42, %v8022_v30  ;;  %vm2542_vm7 = vcmp.ge.s32.totalorder %v939_v14, 1 }
 0x2da   : > { %9004 = vst [vmem:[#allocation55_spill] sm:$0xff] %v8169_v33  ;;  %v3237_v20 = vpop.f32.mrf.mxu1 }
 0x2db   : > { %v8173_v10 = vadd.f32 %v3366_v51, %v2636_v23  ;;  %v3364_v35 = vadd.f32 %v3237_v20, %v8013_v4  ;;  %v8176_v60 = vpop.f32.mrf.mxu0 }
 0x2dc   : > { %v6155_v56 = vpop.f32.mrf.mxu1 }
 0x2dd   : > { %v8181_v31 = vadd.f32 %v3364_v35, %v2634_v13  ;;  %v3367_v5 = vadd.f32 %v6155_v56, %v8018_v28  ;;  %v8184_v33 = vpop.f32.mrf.mxu0  ;;  %v883_v56 = vadd.s32 64, %v8133_v34 }
 0x2de   : > { %v3240_v51 = vpop.f32.mrf.mxu1 }
 0x2df   : > { %v8187_v23 = vadd.f32 %v3367_v5, %v7797_v12  ;;  %v3365_v4 = vadd.f32 %v3240_v51, %v2999_v16  ;;  %v8189_v20 = vpop.f32.mrf.mxu0  ;;  %v2640_v12 = vsel %vm2544_vm6, %v7814_v7, 0.0  ;;  %v981_v16 = vand.u32 15, %v885_v57 }
 0x2e0   : > { %9005 = vst [vmem:[#allocation56_spill] sm:$0xff] %v8189_v20  ;;  %v6158_v48 = vpop.f32.mrf.mxu1  ;;  %v967_v7 = vand.u32 15, %v883_v56  ;;  %v887_v56 = vadd.s32 96, %v8133_v34 }
 0x2e1   : > { %v8193_v42 = vadd.f32 %v3365_v4, %v7805_v44  ;;  %v3370_v30 = vadd.f32 %v6158_v48, %v8027_v37  ;;  %v8196_v28 = vpop.f32.mrf.mxu0  ;;  %v2638_v44 = vsel %vm2542_vm7, %v7820_v40, 0.0  ;;  %v3015_v37 = vadd.f32 %v7888_v18, %v8041_v52 }
 0x2e2   : > { %9006 = vst [vmem:[#allocation57_spill] sm:$0xff] %v8196_v28  ;;  %v3253_v13 = vpop.f32.mrf.mxu1  ;;  %vm2548_vm8 = vcmp.ge.s32.totalorder %v981_v16, 1  ;;  %v889_v40 = vadd.s32 112, %v8133_v34  ;;  %vm2546_vm9 = vcmp.ge.s32.totalorder %v967_v7, 1 }
 0x2e3   : > { %v8200_v63 = vadd.f32 %v3370_v30, %v2640_v12  ;;  %v3368_v35 = vadd.f32 %v3253_v13, %v8032_v29  ;;  %v8203_v11 = vpop.f32.mrf.mxu0 }
 0x2e4   : > { %9007 = vst [vmem:[#allocation58_spill] sm:$0xff] %v8203_v11  ;;  %v6159_v5 = vpop.f32.mrf.mxu1  ;;  %v9022_v11 = vld [vmem:[#allocation20_spill] sm:$0xff] }
 0x2e5   : > { %v8208_v51 = vadd.f32 %v3368_v35, %v2638_v44  ;;  %v3371_v14 = vadd.f32 %v6159_v5, %v8037_v62  ;;  %v8211_v4 = vpop.f32.mrf.mxu0  ;;  %v1009_v5 = vand.u32 15, %v889_v40 }
 0x2e6   : > { %9008 = vst [vmem:[#allocation59_spill] sm:$0xff] %v8211_v4  ;;  %v3256_v48 = vpop.f32.mrf.mxu1 }
 0x2e7   : > { %v8214_v30 = vadd.f32 %v3371_v14, %v7826_v36  ;;  %v3369_v29 = vadd.f32 %v3256_v48, %v3015_v37  ;;  %v8216_v12 = vpop.f32.mrf.mxu0  ;;  %v2644_v36 = vsel %vm2548_vm8, %v7842_v25, 0.0  ;;  %v995_v25 = vand.u32 15, %v887_v56 }
 0x2e8   : > { %9009 = vst [vmem:[#allocation60_spill] sm:$0xff] %v8216_v12  ;;  %v6162_v57 = vpop.f32.mrf.mxu1  ;;  %vm2552_vm10 = vcmp.ge.s32.totalorder %v1009_v5, 1  ;;  %v891_v56 = vadd.s32 128, %v8133_v34 }
 0x2e9   : > { %v8220_v18 = vadd.f32 %v3369_v29, %v7834_v1  ;;  %v3374_v52 = vadd.f32 %v6162_v57, %v8046_v59  ;;  %v8223_v62 = vpop.f32.mrf.mxu0  ;;  %v2642_v1 = vsel %vm2546_vm9, %v7848_v39, 0.0  ;;  %v3031_v59 = vadd.f32 %v7916_v0, %v8060_v21 }
 0x2ea   : > { %v3269_v13 = vpop.f32.mrf.mxu1  ;;  %v893_v39 = vadd.s32 144, %v8133_v34  ;;  %vm2550_vm11 = vcmp.ge.s32.totalorder %v995_v25, 1  ;;  %v1023_v25 = vand.u32 15, %v891_v56 }
 0x2eb   : > { %v8227_v35 = vadd.f32 %v3374_v52, %v2644_v36  ;;  %v3372_v16 = vadd.f32 %v3269_v13, %v8051_v49  ;;  %v8230_v44 = vpop.f32.mrf.mxu0 }
 0x2ec   : > { %v6163_v37 = vpop.f32.mrf.mxu1  ;;  %vm2554_vm13 = vcmp.ge.s32.totalorder %v1023_v25, 1  ;;  %v9011_v25 = vld [vmem:[#allocation32_spill] sm:$0xff] }
 0x2ed   : > { %v8235_v14 = vadd.f32 %v3372_v16, %v2642_v1  ;;  %v3375_v7 = vadd.f32 %v6163_v37, %v8056_v9  ;;  %v8238_v48 = vpop.f32.mrf.mxu0  ;;  %v1037_v1 = vand.u32 15, %v893_v39  ;;  %v897_v39 = vadd.s32 176, %v8133_v34 }
 0x2ee   : > { %v3272_v29 = vpop.f32.mrf.mxu1 }
 0x2ef   : > { %v8241_v57 = vadd.f32 %v3375_v7, %v7854_v6  ;;  %v3373_v49 = vadd.f32 %v3272_v29, %v3031_v59  ;;  %v8243_v52 = vpop.f32.mrf.mxu0  ;;  %v2648_v6 = vsel %vm2552_vm10, %v7873_v15, 0.0  ;;  %vm2556_vm12 = vcmp.ge.s32.totalorder %v1037_v1, 1 }
 0x2f0   : > { %v6166_v40 = vpop.f32.mrf.mxu1 }
 0x2f1   : > { %v8247_v0 = vadd.f32 %v3373_v49, %v7865_v47  ;;  %v3378_v21 = vadd.f32 %v6166_v40, %v8065_v8  ;;  %v8250_v9 = vpop.f32.mrf.mxu0  ;;  %v2646_v47 = vsel %vm2550_vm11, %v7879_v55, 0.0  ;;  %v3047_v8 = vadd.f32 %v7944_v19, %v8079_v3 }
 0x2f2   : > { %v3285_v36 = vpop.f32.mrf.mxu1  ;;  %v895_v19 = vadd.s32 160, %v8133_v34 }
 0x2f3   : > { %v8254_v13 = vadd.f32 %v3378_v21, %v2648_v6  ;;  %v3376_v16 = vadd.f32 %v3285_v36, %v8070_v41  ;;  %v8257_v5 = vpop.f32.mrf.mxu0  ;;  %v2652_v21 = vsel %vm2556_vm12, %v7901_v54, 0.0  ;;  %v1065_v36 = vand.u32 15, %v897_v39  ;;  %v9012_v39 = vld [vmem:[#allocation36_spill] sm:$0xff] }
 0x2f4   : > { %v6167_v37 = vpop.f32.mrf.mxu1 }
 0x2f5   : > { %v8262_v59 = vadd.f32 %v3376_v16, %v2646_v47  ;;  %v3379_v7 = vadd.f32 %v6167_v37, %v8075_v45  ;;  %v8265_v15 = vpop.f32.mrf.mxu0  ;;  %v9010_v16 = vld [vmem:[#allocation44_spill] sm:$0xff]  ;;  %v1051_v37 = vand.u32 15, %v895_v19  ;;  %vm2560_vm14 = vcmp.ge.s32.totalorder %v1065_v36, 1 }
 0x2f6   : > { %v3288_v29 = vpop.f32.mrf.mxu1  ;;  %v2650_v1 = vsel %vm2554_vm13, %v9010_v16, 0.0 }
 0x2f7   : > { %v8268_v49 = vadd.f32 %v3379_v7, %v7885_v58  ;;  %v3377_v41 = vadd.f32 %v3288_v29, %v3047_v8  ;;  %v8276_v45 = vpop.f32.mrf.mxu0  ;;  %vm2558_vm15 = vcmp.ge.s32.totalorder %v1051_v37, 1 }
 0x2f8   : > { %v6170_v55 = vpop.f32.mrf.mxu1 }
 0x2f9   : > { %v8272_v40 = vadd.f32 %v3377_v41, %v7893_v53  ;;  %v3382_v3 = vadd.f32 %v6170_v55, %v8084_v61  ;;  %v8286_v8 = vpop.f32.mrf.mxu0 }
 0x2fa   : > { %v3301_v56 = vpop.f32.mrf.mxu1 }
 0x2fb   : > { %v8279_v58 = vadd.f32 %v3382_v3, %v2652_v21  ;;  %v3380_v6 = vadd.f32 %v3301_v56, %v8089_v22  ;;  %v901_v22 = vadd.s32 208, %v8133_v34  ;;  %v9013_v3 = vld [vmem:[#allocation23_spill] sm:$0xff]  ;;  %v8298_v19 = vpop.f32.mrf.mxu0  ;;  %v9014_v56 = vld [vmem:[#allocation38_spill] sm:$0xff] }
 0x2fc   : > { %v6171_v47 = vpop.f32.mrf.mxu1 }
 0x2fd   : > { %v8283_v53 = vadd.f32 %v3380_v6, %v2650_v1  ;;  %v3383_v61 = vadd.f32 %v6171_v47, %v8094_v43  ;;  %v899_v43 = vadd.s32 192, %v8133_v34  ;;  %v2656_v6 = vsel %vm2560_vm14, %v9014_v56, 0.0  ;;  %v9015_v47 = vld [vmem:[#allocation39_spill] sm:$0xff]  ;;  %v9017_v56 = vld [vmem:[#allocation12_spill] sm:$0xff] }
 0x2fe   : > { %v3304_v7 = vpop.f32.mrf.mxu1  ;;  %v1093_v36 = vand.u32 15, %v901_v22 }
 0x2ff   : > { %v8289_v29 = vadd.f32 %v3383_v61, %v9011_v25  ;;  %v3381_v54 = vadd.f32 %v3304_v7, %v8099_v24  ;;  %v2654_v61 = vsel %vm2558_vm15, %v9015_v47, 0.0  ;;  %v1079_v37 = vand.u32 15, %v899_v43 }
 0x300   : > { %v6174_v41 = vpop.f32.mrf.mxu1  ;;  %vm2564_vm0 = vcmp.ge.s32.totalorder %v1093_v36, 1 }
 0x301   : > { %v8294_v55 = vadd.f32 %v3381_v54, %v9012_v39  ;;  %v3386_v21 = vadd.f32 %v6174_v41, %v9013_v3  ;;  %v8308_v41 = vpop.f32.mrf.mxu0  ;;  %v9016_v3 = vld [vmem:[#allocation13_spill] sm:$0xff]  ;;  %vm2562_vm2 = vcmp.ge.s32.totalorder %v1079_v37, 1 }
 0x302   : > { %v3317_v16 = vpop.f32.mrf.mxu1 }
 0x303   : > { %v8301_v1 = vadd.f32 %v3386_v21, %v2656_v6  ;;  %v3384_v24 = vadd.f32 %v3317_v16, %v8109_v2  ;;  %v905_v2 = vadd.s32 240, %v8133_v34  ;;  %v8320_v43 = vpop.f32.mrf.mxu0 }
 0x304   : > { %v6175_v7 = vpop.f32.mrf.mxu1 }
 0x305   : > { %v8305_v25 = vadd.f32 %v3384_v24, %v2654_v61  ;;  %v3387_v54 = vadd.f32 %v6175_v7, %v8114_v38  ;;  %v903_v38 = vadd.s32 224, %v8133_v34  ;;  %v9018_v24 = vld [vmem:[#allocation14_spill] sm:$0xff]  ;;  %v1121_v36 = vand.u32 15, %v905_v2 }
 0x306   : > { %v3320_v39 = vpop.f32.mrf.mxu1  ;;  %v2660_v47 = vsel %vm2564_vm0, %v9018_v24, 0.0  ;;  %v9024_v24 = vld [vmem:[#allocation48_spill] sm:$0xff] }
 0x307   : > { %v8311_v12 = vadd.f32 %v3387_v54, %v9016_v3  ;;  %v3385_v21 = vadd.f32 %v3320_v39, %v8119_v32  ;;  %v9019_v54 = vld [vmem:[#allocation15_spill] sm:$0xff]  ;;  %v1107_v37 = vand.u32 15, %v903_v38  ;;  %vm2568_vm3 = vcmp.ge.s32.totalorder %v1121_v36, 1 }
 0x308   : > { %v6178_v22 = vpop.f32.mrf.mxu1  ;;  %v2658_v39 = vsel %vm2562_vm2, %v9019_v54, 0.0  ;;  %v9027_v54 = vld [vmem:[#allocation26_spill] sm:$0xff] }
 0x309   : > { %v8316_v6 = vadd.f32 %v3385_v21, %v9017_v56  ;;  %v3390_v16 = vadd.f32 %v6178_v22, %v8124_v26  ;;  %v9021_v56 = vld [vmem:[#allocation46_spill] sm:$0xff]  ;;  %v8330_v22 = vpop.f32.mrf.mxu0  ;;  %vm2566_vm4 = vcmp.ge.s32.totalorder %v1107_v37, 1  ;;  %v2664_v38 = vsel %vm2568_vm3, %v9027_v54, 0.0  ;;  %v9033_v54 = vld [vmem:[#allocation53_spill] sm:$0xff] }
 0x30a   : > { %v3333_v61 = vpop.f32.mrf.mxu1  ;;  %v878_v37 = vadd.s32 24, %v8133_v34 }
 0x30b   : > { %v8323_v7 = vadd.f32 %v3390_v16, %v2660_v47  ;;  %v3388_v32 = vadd.f32 %v3333_v61, %v8129_v46  ;;  %v9025_v46 = vld [vmem:[#allocation42_spill] sm:$0xff] }
 0x30c   : > { %v6179_v3 = vpop.f32.mrf.mxu1 }
 0x30d   : > { %v8327_v21 = vadd.f32 %v3388_v32, %v2658_v39  ;;  %v3391_v26 = vadd.f32 %v6179_v3, %v9021_v56  ;;  %v8340_v32 = vpop.f32.mrf.mxu0  ;;  %v9029_v56 = vld [vmem:[#allocation17_spill] sm:$0xff] }
 0x30e   : > { %v3336_v4 = vpop.f32.mrf.mxu1 }
 0x30f   : > { %9020 = vst [vmem:[#allocation44_spill] sm:$0xff] %v8327_v21  ;;  %v8333_v28 = vadd.f32 %v3391_v26, %v9022_v11  ;;  %v3389_v16 = vadd.f32 %v3336_v4, %v9024_v24  ;;  %v2662_v26 = vsel %vm2566_vm4, %v9029_v56, 0.0  ;;  %v882_v21 = vadd.s32 56, %v8133_v34 }
 0x310   : > { %v6182_v47 = vpop.f32.mrf.mxu1 }
 0x311   : > { %9023 = vst [vmem:[#allocation32_spill] sm:$0xff] %v8333_v28  ;;  %v8337_v2 = vadd.f32 %v3389_v16, %v9025_v46  ;;  %v3394_v61 = vadd.f32 %v6182_v47, %v8147_v27  ;;  %v8350_v16 = vpop.f32.mrf.mxu0  ;;  %v9031_v47 = vld [vmem:[#allocation43_spill] sm:$0xff] }
 0x312   : > { %v3349_v39 = vpop.f32.mrf.mxu1 }
 0x313   : > { %9026 = vst [vmem:[#allocation36_spill] sm:$0xff] %v8337_v2  ;;  %v8343_v3 = vadd.f32 %v3394_v61, %v2664_v38  ;;  %v3392_v11 = vadd.f32 %v3349_v39, %v8152_v17  ;;  %v876_v17 = vadd.s32 8, %v8133_v34  ;;  %v9034_v39 = vld [vmem:[#allocation19_spill] sm:$0xff]  ;;  %v9037_v2 = vld [vmem:[#allocation25_spill] sm:$0xff] }
 0x314   : > { %v6183_v4 = vpop.f32.mrf.mxu1 }
 0x315   : > { %9028 = vst [vmem:[#allocation23_spill] sm:$0xff] %v8343_v3  ;;  %v8347_v36 = vadd.f32 %v3392_v11, %v2662_v26  ;;  %v3395_v24 = vadd.f32 %v6183_v4, %v8157_v50  ;;  %v9036_v11 = vld [vmem:[#allocation22_spill] sm:$0xff]  ;;  %v932_v4 = vand.u32 15, %v878_v37  ;;  %v9039_v37 = vld [vmem:[#allocation40_spill] sm:$0xff] }
 0x316   : > { %v3352_v27 = vpop.f32.mrf.mxu1 }
 0x317   : > { %9030 = vst [vmem:[#allocation38_spill] sm:$0xff] %v8347_v36  ;;  %v8354_v46 = vadd.f32 %v3395_v24, %v9031_v47  ;;  %v3393_v61 = vadd.f32 %v3352_v27, %v9033_v54  ;;  %v8362_v36 = vpop.f32.mrf.mxu0  ;;  %v918_v47 = vand.u32 15, %v876_v17  ;;  %v9038_v54 = vld [vmem:[#allocation16_spill] sm:$0xff]  ;;  %vm4620_vm5 = vcmp.le.s32.totalorder %v932_v4, 14 }
 0x318   : > { %v6226_v38 = vpop.f32.mrf.mxu1 }
 0x319   : > { %9032 = vst [vmem:[#allocation39_spill] sm:$0xff] %v8354_v46  ;;  %v8359_v56 = vadd.f32 %v3393_v61, %v9034_v39  ;;  %v3993_v26 = vadd.f32 %v6226_v38, %v9036_v11  ;;  %v8369_v61 = vpop.f32.mrf.mxu0  ;;  %vm4618_vm6 = vcmp.le.s32.totalorder %v918_v47, 14 }
 0x31a   : > { %v3984_v50 = vpop.f32.mrf.mxu1 }
 0x31b   : > { %9035 = vst [vmem:[#allocation13_spill] sm:$0xff] %v8359_v56  ;;  %v4587_v3 = vadd.f32 %v8223_v62, %v3993_v26  ;;  %v3985_v28 = vadd.f32 %v3984_v50, %v9037_v2  ;;  %v8375_v62 = vld [vmem:[%s8757_s4] ss:$0 sm:$0xff]  ;;  %v8382_v50 = vpop.f32.mrf.mxu0 }
 0x31c   : > { %v6227_v24 = vpop.f32.mrf.mxu1 }
 0x31d   : > { %v4585_v27 = vadd.f32 %v8230_v44, %v3985_v28  ;;  %v3996_v46 = vadd.f32 %v6227_v24, %v9038_v54  ;;  %v4747_v38 = vadd.f32 %v4587_v3, %v8173_v10  ;;  %v880_v28 = vadd.s32 40, %v8133_v34  ;;  %v9040_v54 = vld [vmem:[#allocation30_spill] sm:$0xff] }
 0x31e   : > { %v3987_v39 = vpop.f32.mrf.mxu1  ;;  %v960_v3 = vand.u32 15, %v882_v21 }
 0x31f   : > { %v4588_v2 = vadd.f32 %v8238_v48, %v3996_v46  ;;  %v3988_v17 = vadd.f32 %v3987_v39, %v9039_v37  ;;  %v4745_v44 = vadd.f32 %v4585_v27, %v8181_v31  ;;  %v4786_v4 = vadd.f32 %v8375_v62, %v4747_v38  ;;  %v9041_v37 = vld [vmem:[#allocation27_spill] sm:$0xff] }
 0x320   : > { %v6230_v11 = vpop.f32.mrf.mxu1  ;;  %v946_v20 = vand.u32 15, %v880_v28  ;;  %vm8394_vm7 = vcmp.le.s32.totalorder %v960_v3, 14  ;;  %v8399_v28 = vpop.f32.mrf.mxu0 }
 0x321   : > { %v4716_v26 = vsel %vm4620_vm5, %v4588_v2, 0.0  ;;  %v4586_v10 = vadd.f32 %v8243_v52, %v3988_v17  ;;  %v4009_v48 = vadd.f32 %v6230_v11, %v9040_v54  ;;  %v4784_v31 = vadd.f32 %v8375_v62, %v4745_v44  ;;  %v9042_v2 = vld [vmem:[#allocation21_spill] sm:$0xff]  ;;  %v9049_v17 = vld [vmem:[#allocation34_spill] sm:$0xff] }
 0x322   : > { %v4748_v24 = vadd.f32 %v4716_v26, %v8187_v23  ;;  %v4000_v46 = vpop.f32.mrf.mxu1  ;;  %v886_v11 = vadd.s32 88, %v8133_v34  ;;  %v4818_v44 = vmax.f32 %v4786_v4, 0.0  ;;  %vm8405_vm8 = vcmp.le.s32.totalorder %v946_v20, 14  ;;  %v8415_v20 = vpop.f32.mrf.mxu0 }
 0x323   : > { %v4714_v39 = vsel %vm4618_vm6, %v4586_v10, 0.0  ;;  %v4001_v56 = vadd.f32 %v4000_v46, %v9041_v37  ;;  %v4591_v21 = vadd.f32 %v8250_v9, %v4009_v48  ;;  %v884_v54 = vadd.s32 72, %v8133_v34 }
 0x324   : > { %v4787_v47 = vadd.f32 %v8375_v62, %v4748_v24  ;;  %v4746_v52 = vadd.f32 %v4714_v39, %v8193_v42  ;;  %v6231_v27 = vpop.f32.mrf.mxu1  ;;  %v4816_v48 = vmax.f32 %v4784_v31, 0.0 }
 0x325   : > { %v4589_v38 = vadd.f32 %v8257_v5, %v4001_v56  ;;  %v4012_v23 = vadd.f32 %v6231_v27, %v9042_v2  ;;  %v4751_v42 = vadd.f32 %v4591_v21, %v8200_v63  ;;  %v9045_v5 = vld [vmem:[#allocation35_spill] sm:$0xff]  ;;  %v988_v21 = vand.u32 15, %v886_v11 }
 0x326   : > { %v4819_v26 = vmax.f32 %v4787_v47, 0.0  ;;  %v4785_v10 = vadd.f32 %v8375_v62, %v4746_v52  ;;  %v4003_v9 = vpop.f32.mrf.mxu1 }
 0x327   : > { %v4592_v24 = vadd.f32 %v8265_v15, %v4012_v23  ;;  %v4004_v56 = vadd.f32 %v4003_v9, %v9045_v5  ;;  %v4749_v4 = vadd.f32 %v4589_v38, %v8208_v51  ;;  %v9048_v15 = vld [vmem:[#allocation24_spill] sm:$0xff]  ;;  %v4790_v27 = vadd.f32 %v8375_v62, %v4751_v42  ;;  %v9050_v42 = vld [vmem:[#allocation33_spill] sm:$0xff] }
 0x328   : > { %v4849_v46 = vpack.c.bf16 %v4819_v26, %v4818_v44  ;;  %v4817_v39 = vmax.f32 %v4785_v10, 0.0  ;;  %v6234_v37 = vpop.f32.mrf.mxu1  ;;  %v974_v26 = vand.u32 15, %v884_v54  ;;  %vm8429_vm9 = vcmp.le.s32.totalorder %v988_v21, 14  ;;  %v9058_v5 = vld [vmem:[#allocation41_spill] sm:$0xff] }
 0x329   : > { %v4720_v63 = vsel %vm8394_vm7, %v4592_v24, 0.0  ;;  %v4590_v47 = vadd.f32 %v8276_v45, %v4004_v56  ;;  %v4025_v52 = vadd.f32 %v6234_v37, %v9048_v15  ;;  %v4788_v45 = vadd.f32 %v8375_v62, %v4749_v4  ;;  %v8435_v56 = vpop.f32.mrf.mxu0  ;;  %v9053_v4 = vld [vmem:[#allocation31_spill] sm:$0xff] }
 0x32a   : > { %v4752_v2 = vadd.f32 %v4720_v63, %v8214_v30  ;;  %v4016_v31 = vpop.f32.mrf.mxu1  ;;  %v4848_v23 = vpack.c.bf16 %v4817_v39, %v4816_v48  ;;  %v4822_v3 = vmax.f32 %v4790_v27, 0.0  ;;  %vm8441_vm10 = vcmp.le.s32.totalorder %v974_v26, 14 }
 0x32b   : > { %v4718_v51 = vsel %vm8405_vm8, %v4590_v47, 0.0  ;;  %v4595_v38 = vadd.f32 %v8286_v8, %v4025_v52  ;;  %v4017_v44 = vadd.f32 %v4016_v31, %v9049_v17  ;;  %v890_v8 = vadd.s32 120, %v8133_v34  ;;  %v8450_v31 = vpop.f32.mrf.mxu0 }
 0x32c   : > { %v4791_v11 = vadd.f32 %v8375_v62, %v4752_v2  ;;  %v4750_v10 = vadd.f32 %v4718_v51, %v8220_v18  ;;  %v6235_v9 = vpop.f32.mrf.mxu1  ;;  %6296 = vmatprep.mubr.msk.bf16.mxu1 %vm1584_vm1, %v4848_v23  ;;  %v4820_v47 = vmax.f32 %v4788_v45, 0.0  ;;  %v9057_v45 = vld [vmem:[#allocation29_spill] sm:$0xff] }
 0x32d   : > { %v4593_v30 = vadd.f32 %v8298_v19, %v4017_v44  ;;  %v4028_v24 = vadd.f32 %v6235_v9, %v9050_v42  ;;  %6297 = vmatmul.mubr.msk.bf16.vlgmr.msra.gmra.mxu1 %vm1584_vm1, %v4849_v46  ;;  %v4755_v48 = vadd.f32 %v4595_v38, %v8227_v35  ;;  %v888_v46 = vadd.s32 104, %v8133_v34  ;;  %v9056_v38 = vld [vmem:[#allocation37_spill] sm:$0xff] }
 0x32e   : > { %v4823_v54 = vmax.f32 %v4791_v11, 0.0  ;;  %v4789_v18 = vadd.f32 %v8375_v62, %v4750_v10  ;;  %v4019_v39 = vpop.f32.mrf.mxu1 }
 0x32f   : > { %v4596_v19 = vadd.f32 %v8308_v41, %v4028_v24  ;;  %v4020_v37 = vadd.f32 %v4019_v39, %v9053_v4  ;;  %v4753_v21 = vadd.f32 %v4593_v30, %v8235_v14  ;;  %v1016_v41 = vand.u32 15, %v890_v8  ;;  %v9061_v4 = vld [vmem:[#allocation18_spill] sm:$0xff] }
 0x330   : > { %v4851_v15 = vpack.c.bf16 %v4823_v54, %v4822_v3  ;;  %v4821_v52 = vmax.f32 %v4789_v18, 0.0  ;;  %v6238_v27 = vpop.f32.mrf.mxu1  ;;  %v4794_v23 = vadd.f32 %v8375_v62, %v4755_v48  ;;  %v1002_v10 = vand.u32 15, %v888_v46  ;;  %v8471_v18 = vpop.f32.mrf.mxu0 }
 0x331   : > { %v4724_v35 = vsel %vm8429_vm9, %v4596_v19, 0.0  ;;  %v4594_v2 = vadd.f32 %v8320_v43, %v4020_v37  ;;  %v4041_v17 = vadd.f32 %v6238_v27, %v9056_v38  ;;  %v4792_v9 = vadd.f32 %v8375_v62, %v4753_v21 }
 0x332   : > { %v4756_v51 = vadd.f32 %v4724_v35, %v8241_v57  ;;  %v4032_v44 = vpop.f32.mrf.mxu1  ;;  %v4850_v26 = vpack.c.bf16 %v4821_v52, %v4820_v47  ;;  %vm8465_vm11 = vcmp.le.s32.totalorder %v1016_v41, 14  ;;  %v894_v54 = vadd.s32 152, %v8133_v34 }
 0x333   : > { %v4722_v14 = vsel %vm8441_vm10, %v4594_v2, 0.0  ;;  %v4033_v11 = vadd.f32 %v4032_v44, %v9057_v45  ;;  %v4599_v42 = vadd.f32 %v8330_v22, %v4041_v17  ;;  %vm8477_vm12 = vcmp.le.s32.totalorder %v1002_v10, 14 }
 0x334   : > { %v4795_v43 = vadd.f32 %v8375_v62, %v4756_v51  ;;  %v4754_v30 = vadd.f32 %v4722_v14, %v8247_v0  ;;  %v6239_v24 = vpop.f32.mrf.mxu1  ;;  %6300 = vmatprep.mubr.msk.bf16.mxu1 %vm1584_vm1, %v4850_v26  ;;  %v4826_v0 = vmax.f32 %v4794_v23, 0.0  ;;  %v892_v46 = vadd.s32 136, %v8133_v34  ;;  %v8487_v23 = vpop.f32.mrf.mxu0  ;;  %v9065_v14 = vld [vmem:[#allocation45_spill] sm:$0xff] }
 0x335   : > { %v4597_v57 = vadd.f32 %v8340_v32, %v4033_v11  ;;  %v4044_v8 = vadd.f32 %v6239_v24, %v9058_v5  ;;  %6301 = vmatmul.mubr.msk.bf16.gmra.mxu1 %vm1584_vm1, %v4851_v15  ;;  %v4759_v39 = vadd.f32 %v4599_v42, %v8254_v13  ;;  %v4824_v47 = vmax.f32 %v4792_v9, 0.0 }
 0x336   : > { %v4827_v48 = vmax.f32 %v4795_v43, 0.0  ;;  %v4793_v22 = vadd.f32 %v8375_v62, %v4754_v30  ;;  %v4035_v19 = vpop.f32.mrf.mxu1  ;;  %v1044_v41 = vand.u32 15, %v894_v54  ;;  %v1030_v11 = vand.u32 15, %v892_v46  ;;  %v9066_v30 = vld [vmem:[#allocation47_spill] sm:$0xff] }
 0x337   : > { %v4600_v32 = vadd.f32 %v8350_v16, %v4044_v8  ;;  %v4036_v37 = vadd.f32 %v4035_v19, %v9061_v4  ;;  %v4757_v21 = vadd.f32 %v4597_v57, %v8262_v59  ;;  %v9064_v16 = vld [vmem:[#allocation28_spill] sm:$0xff]  ;;  %v4798_v51 = vadd.f32 %v8375_v62, %v4759_v39  ;;  %v8507_v57 = vpop.f32.mrf.mxu0 }
 0x338   : > { %v4853_v15 = vpack.c.bf16 %v4827_v48, %v4826_v0  ;;  %v4825_v52 = vmax.f32 %v4793_v22, 0.0  ;;  %v6242_v27 = vpop.f32.mrf.mxu1  ;;  %vm8501_vm13 = vcmp.le.s32.totalorder %v1044_v41, 14  ;;  %v9069_v0 = vld [vmem:[#allocation49_spill] sm:$0xff]  ;;  %vm8513_vm14 = vcmp.le.s32.totalorder %v1030_v11, 14 }
 0x339   : > { %v4728_v13 = vsel %vm8465_vm11, %v4600_v32, 0.0  ;;  %v4598_v35 = vadd.f32 %v8362_v36, %v4036_v37  ;;  %v4057_v2 = vadd.f32 %v6242_v27, %v9064_v16  ;;  %v4796_v36 = vadd.f32 %v8375_v62, %v4757_v21  ;;  %v9072_v21 = vld [vmem:[#allocation50_spill] sm:$0xff] }
 0x33a   : > { %v4760_v38 = vadd.f32 %v4728_v13, %v8268_v49  ;;  %v4048_v17 = vpop.f32.mrf.mxu1  ;;  %v4852_v44 = vpack.c.bf16 %v4825_v52, %v4824_v47  ;;  %v4830_v5 = vmax.f32 %v4798_v51, 0.0  ;;  %v896_v39 = vadd.s32 168, %v8133_v34  ;;  %v4554_v47 = vpop.f32.mrf.mxu0 }
 0x33b   : > { %v4726_v59 = vsel %vm8477_vm12, %v4598_v35, 0.0  ;;  %v4603_v26 = vadd.f32 %v8369_v61, %v4057_v2  ;;  %v4049_v45 = vadd.f32 %v4048_v17, %v9065_v14  ;;  %v898_v61 = vadd.s32 184, %v8133_v34  ;;  %v9087_v14 = vld [vmem:[#allocation32_spill] sm:$0xff] }
 0x33c   : > { %v4799_v10 = vadd.f32 %v8375_v62, %v4760_v38  ;;  %v4758_v9 = vadd.f32 %v4726_v59, %v8272_v40  ;;  %v6243_v43 = vpop.f32.mrf.mxu1  ;;  %6304 = vmatprep.mubr.msk.bf16.mxu1 %vm1584_vm1, %v4852_v44  ;;  %v4828_v19 = vmax.f32 %v4796_v36, 0.0  ;;  %v1058_v41 = vand.u32 15, %v896_v39  ;;  %v9074_v59 = vld [vmem:[#allocation52_spill] sm:$0xff]  ;;  %v6287_v11 = vpop.f32.mrf.mxu0 }
 0x33d   : > { %v4601_v49 = vadd.f32 %v8382_v50, %v4049_v45  ;;  %v4060_v42 = vadd.f32 %v6243_v43, %v9066_v30  ;;  %6305 = vmatmul.mubr.msk.bf16.gmra.mxu1 %vm1584_vm1, %v4853_v15  ;;  %v4763_v3 = vadd.f32 %v4603_v26, %v8279_v58  ;;  %v902_v45 = vadd.s32 216, %v8133_v34  ;;  %v9077_v43 = vld [vmem:[#allocation54_spill] sm:$0xff]  ;;  %v9090_v30 = vld [vmem:[#allocation36_spill] sm:$0xff] }
 0x33e   : > { %v4831_v8 = vmax.f32 %v4799_v10, 0.0  ;;  %v4797_v40 = vadd.f32 %v8375_v62, %v4758_v9  ;;  %v4051_v54 = vpop.f32.mrf.mxu1  ;;  %vm8545_vm0 = vcmp.le.s32.totalorder %v1058_v41, 14 }
 0x33f   : > { %v4604_v50 = vadd.f32 %v8399_v28, %v4060_v42  ;;  %v4052_v48 = vadd.f32 %v4051_v54, %v9069_v0  ;;  %v4761_v37 = vadd.f32 %v4601_v49, %v8283_v53  ;;  %v1072_v28 = vand.u32 15, %v898_v61  ;;  %v9073_v53 = vld [vmem:[#allocation51_spill] sm:$0xff]  ;;  %v4557_v0 = vpop.f32.mrf.mxu0 }
 0x340   : > { %v4855_v32 = vpack.c.bf16 %v4831_v8, %v4830_v5  ;;  %v4829_v4 = vmax.f32 %v4797_v40, 0.0  ;;  %v6246_v63 = vpop.f32.mrf.mxu1  ;;  %v4802_v15 = vadd.f32 %v8375_v62, %v4763_v3  ;;  %v900_v42 = vadd.s32 200, %v8133_v34 }
 0x341   : > { %v4732_v58 = vsel %vm8501_vm13, %v4604_v50, 0.0  ;;  %v4602_v46 = vadd.f32 %v8415_v20, %v4052_v48  ;;  %v4073_v27 = vadd.f32 %v6246_v63, %v9072_v21  ;;  %v4800_v51 = vadd.f32 %v8375_v62, %v4761_v37 }
 0x342   : > { %v4764_v52 = vadd.f32 %v4732_v58, %v8289_v29  ;;  %v4064_v13 = vpop.f32.mrf.mxu1  ;;  %v4854_v35 = vpack.c.bf16 %v4829_v4, %v4828_v19  ;;  %vm8535_vm15 = vcmp.le.s32.totalorder %v1072_v28, 14  ;;  %v4834_v36 = vmax.f32 %v4802_v15, 0.0  ;;  %v6290_v28 = vpop.f32.mrf.mxu0 }
 0x343   : > { %v4730_v16 = vsel %vm8513_vm14, %v4602_v46, 0.0  ;;  %v4065_v2 = vadd.f32 %v4064_v13, %v9073_v53  ;;  %v4607_v17 = vadd.f32 %v8435_v56, %v4073_v27  ;;  %v4832_v24 = vmax.f32 %v4800_v51, 0.0 }
 0x344   : > { %v4803_v20 = vadd.f32 %v8375_v62, %v4764_v52  ;;  %v4762_v38 = vadd.f32 %v4730_v16, %v8294_v55  ;;  %v6247_v44 = vpop.f32.mrf.mxu1  ;;  %6308 = vmatprep.mubr.msk.bf16.mxu1 %vm1584_vm1, %v4854_v35  ;;  %v1100_v50 = vand.u32 15, %v902_v45  ;;  %v1086_v37 = vand.u32 15, %v900_v42  ;;  %v9083_v16 = vld [vmem:[#allocation56_spill] sm:$0xff] }
 0x345   : > { %v4605_v29 = vadd.f32 %v8450_v31, %v4065_v2  ;;  %v4076_v26 = vadd.f32 %v6247_v44, %v9074_v59  ;;  %6309 = vmatmul.mubr.msk.bf16.gmra.mxu1 %vm1584_vm1, %v4855_v32  ;;  %v4767_v10 = vadd.f32 %v4607_v17, %v8301_v1  ;;  %v904_v53 = vadd.s32 232, %v8133_v34  ;;  %v4570_v17 = vpop.f32.mrf.mxu0 }
 0x346   : > { %v4835_v55 = vmax.f32 %v4803_v20, 0.0  ;;  %v4801_v56 = vadd.f32 %v8375_v62, %v4762_v38  ;;  %v4067_v9 = vpop.f32.mrf.mxu1  ;;  %vm8566_vm2 = vcmp.le.s32.totalorder %v1100_v50, 14  ;;  %vm8575_vm3 = vcmp.le.s32.totalorder %v1086_v37, 14  ;;  %v9086_v20 = vld [vmem:[#allocation44_spill] sm:$0xff] }
 0x347   : > { %v4608_v31 = vadd.f32 %v8471_v18, %v4076_v26  ;;  %v4068_v49 = vadd.f32 %v4067_v9, %v9077_v43  ;;  %v4765_v8 = vadd.f32 %v4605_v29, %v8305_v25  ;;  %v9080_v18 = vld [vmem:[#allocation55_spill] sm:$0xff]  ;;  %v4806_v48 = vadd.f32 %v8375_v62, %v4767_v10  ;;  %v9089_v10 = vld [vmem:[#allocation58_spill] sm:$0xff] }
 0x348   : > { %v4857_v61 = vpack.c.bf16 %v4835_v55, %v4834_v36  ;;  %v4833_v5 = vmax.f32 %v4801_v56, 0.0  ;;  %v6250_v40 = vpop.f32.mrf.mxu1 }
 0x349   : > { %v4736_v1 = vsel %vm8535_vm15, %v4608_v31, 0.0  ;;  %v4606_v3 = vadd.f32 %v8487_v23, %v4068_v49  ;;  %v4089_v54 = vadd.f32 %v6250_v40, %v9080_v18  ;;  %v4804_v23 = vadd.f32 %v8375_v62, %v4765_v8  ;;  %v9091_v40 = vld [vmem:[#allocation59_spill] sm:$0xff] }
 0x34a   : > { %v4768_v22 = vadd.f32 %v4736_v1, %v8311_v12  ;;  %v4080_v39 = vpop.f32.mrf.mxu1  ;;  %v4856_v19 = vpack.c.bf16 %v4833_v5, %v4832_v24  ;;  %v1114_v31 = vand.u32 15, %v904_v53 }
 0x34b   : > { %v4734_v32 = vsel %vm8545_vm0, %v4606_v3, 0.0  ;;  %v4611_v25 = vadd.f32 %v8507_v57, %v4089_v54  ;;  %v4081_v4 = vadd.f32 %v4080_v39, %v8176_v60  ;;  %v906_v60 = vadd.s32 248, %v8133_v34 }
 0x34c   : > { %v4807_v63 = vadd.f32 %v8375_v62, %v4768_v22  ;;  %v4766_v58 = vadd.f32 %v4734_v32, %v8316_v6  ;;  %v6251_v46 = vpop.f32.mrf.mxu1  ;;  %6312 = vmatprep.mubr.msk.bf16.mxu1 %vm1584_vm1, %v4856_v19  ;;  %v4838_v57 = vmax.f32 %v4806_v48, 0.0  ;;  %v4836_v2 = vmax.f32 %v4804_v23, 0.0  ;;  %v9095_v19 = vld [vmem:[#allocation60_spill] sm:$0xff]  ;;  %v9096_v23 = vld [vmem:[#allocation38_spill] sm:$0xff] }
 0x34d   : > { %v4609_v12 = vadd.f32 %v4554_v47, %v4081_v4  ;;  %v4092_v15 = vadd.f32 %v6251_v46, %v8184_v33  ;;  %6313 = vmatmul.mubr.msk.bf16.gmra.mxu1 %vm1584_vm1, %v4857_v61  ;;  %v4771_v6 = vadd.f32 %v4611_v25, %v8323_v7  ;;  %v1128_v59 = vand.u32 15, %v906_v60  ;;  %v6291_v61 = vpop.f32.mrf.mxu0 }
 0x34e   : > { %v4839_v21 = vmax.f32 %v4807_v63, 0.0  ;;  %v4805_v27 = vadd.f32 %v8375_v62, %v4766_v58  ;;  %v4083_v13 = vpop.f32.mrf.mxu1  ;;  %vm4646_vm5 = vcmp.le.s32.totalorder %v1114_v31, 14 }
 0x34f   : > { %v4612_v35 = vadd.f32 %v6287_v11, %v4092_v15  ;;  %v4084_v47 = vadd.f32 %v4083_v13, %v9083_v16  ;;  %v4769_v38 = vadd.f32 %v4609_v12, %v9086_v20  ;;  %v4810_v26 = vadd.f32 %v8375_v62, %v4771_v6  ;;  %v9088_v11 = vld [vmem:[#allocation57_spill] sm:$0xff]  ;;  %v4573_v58 = vpop.f32.mrf.mxu0  ;;  %v9097_v15 = vld [vmem:[#allocation39_spill] sm:$0xff] }
 0x350   : > { %v4859_v41 = vpack.c.bf16 %v4839_v21, %v4838_v57  ;;  %v4837_v51 = vmax.f32 %v4805_v27, 0.0  ;;  %v6254_v44 = vpop.f32.mrf.mxu1  ;;  %vm8594_vm4 = vcmp.le.s32.totalorder %v1128_v59, 14  ;;  %v9098_v6 = vld [vmem:[#allocation13_spill] sm:$0xff]  ;;  %v6557_v20 = vld [vmem:[%s6871_s16 + $0x8] sm:$0xff]  }
 0x351   : > { %v4740_v7 = vsel %vm8566_vm2, %v4612_v35, 0.0  ;;  %v4610_v29 = vadd.f32 %v4557_v0, %v4084_v47  ;;  %v4105_v36 = vadd.f32 %v6254_v44, %v9088_v11  ;;  %v4808_v43 = vadd.f32 %v8375_v62, %v4769_v38  ;;  %v9094_v0 = vld [vmem:[#allocation23_spill] sm:$0xff]  ;;  %v6558_v44 = vld [vmem:[%s6871_s16] sm:$0xff]  }
 0x352   : > { %v4772_v45 = vadd.f32 %v4740_v7, %v9087_v14  ;;  %v4096_v55 = vpop.f32.mrf.mxu1  ;;  %v4858_v34 = vpack.c.bf16 %v4837_v51, %v4836_v2  ;;  %v4842_v18 = vmax.f32 %v4810_v26, 0.0  ;;  %v8618_v51 = vld [vmem:[%s8759_s6] ss:$0 sm:$0xff]  ;;  %v5098_v38 = vunpack.c.l.bf16 %v6557_v20 }
 0x353   : > { %v4738_v56 = vsel %vm8575_vm3, %v4610_v29, 0.0  ;;  %v4097_v9 = vadd.f32 %v4096_v55, %v9089_v10  ;;  %v4615_v24 = vadd.f32 %v6290_v28, %v4105_v36  ;;  %v4840_v25 = vmax.f32 %v4808_v43, 0.0  ;;  %v6559_v43 = vld [vmem:[%s6871_s16 + $0x18] sm:$0xff]  }
 0x354   : > { %v4811_v49 = vadd.f32 %v8375_v62, %v4772_v45  ;;  %v4770_v42 = vadd.f32 %v4738_v56, %v9090_v30  ;;  %v6255_v5 = vpop.f32.mrf.mxu1  ;;  %6316 = vmatprep.mubr.msk.bf16.mxu1 %vm1584_vm1, %v4858_v34  ;;  %v5096_v7 = vunpack.c.l.bf16 %v6558_v44  ;;  %v5099_v14 = vunpack.c.h.bf16 %v6557_v20  ;;  %v6563_v20 = vld [vmem:[%s6871_s16 + $0x38] sm:$0xff]  }
 0x355   : > { %v4613_v8 = vadd.f32 %v4570_v17, %v4097_v9  ;;  %v4108_v1 = vadd.f32 %v6255_v5, %v9091_v40  ;;  %6317 = vmatmul.mubr.msk.bf16.gmra.mxu1 %vm1584_vm1, %v4859_v41  ;;  %v4775_v48 = vadd.f32 %v4615_v24, %v9094_v0  ;;  %v5097_v11 = vunpack.c.h.bf16 %v6558_v44  ;;  %v6560_v5 = vld [vmem:[%s6871_s16 + $0x10] sm:$0xff]  }
 0x356   : > { %v4843_v54 = vmax.f32 %v4811_v49, 0.0  ;;  %v4809_v50 = vadd.f32 %v8375_v62, %v4770_v42  ;;  %v4099_v22 = vpop.f32.mrf.mxu1  ;;  %v5102_v49 = vunpack.c.l.bf16 %v6559_v43 }
 0x357   : > { %v4616_v39 = vadd.f32 %v6291_v61, %v4108_v1  ;;  %v4100_v32 = vadd.f32 %v4099_v22, %v9095_v19  ;;  %v4773_v63 = vadd.f32 %v4613_v8, %v9096_v23  ;;  %v4814_v12 = vadd.f32 %v8375_v62, %v4775_v48 }
 0x358   : > { %v4861_v4 = vpack.c.bf16 %v4843_v54, %v4842_v18  ;;  %v4841_v37 = vmax.f32 %v4809_v50, 0.0  ;;  %v5100_v8 = vunpack.c.l.bf16 %v6560_v5  ;;  %v5103_v54 = vunpack.c.h.bf16 %v6559_v43 }
 0x359   : > { %v4744_v46 = vsel %vm8594_vm4, %v4616_v39, 0.0  ;;  %v4614_v28 = vadd.f32 %v4573_v58, %v4100_v32  ;;  %v4812_v21 = vadd.f32 %v8375_v62, %v4773_v63  ;;  %v4846_v35 = vmax.f32 %v4814_v12, 0.0  ;;  %v6562_v12 = vld [vmem:[%s6871_s16 + $0x20] sm:$0xff]  }
 0x35a   : > { %v4776_v52 = vadd.f32 %v4744_v46, %v9097_v15  ;;  %v4860_v60 = vpack.c.bf16 %v4841_v37, %v4840_v25  ;;  %v5101_v39 = vunpack.c.h.bf16 %v6560_v5  ;;  %v6561_v37 = vld [vmem:[%s6871_s16 + $0x28] sm:$0xff]   ;;  %v5104_v15 = vunpack.c.l.bf16 %v6562_v12 }
 0x35b   : > { %v4742_v57 = vsel %vm4646_vm5, %v4614_v28, 0.0  ;;  %v4844_v33 = vmax.f32 %v4812_v21, 0.0  ;;  %v5106_v23 = vunpack.c.l.bf16 %v6561_v37 }
 0x35c   : > { %v4815_v27 = vadd.f32 %v8375_v62, %v4776_v52  ;;  %v4774_v13 = vadd.f32 %v4742_v57, %v9098_v6  ;;  %6320 = vmatprep.mubr.msk.bf16.mxu1 %vm1584_vm1, %v4860_v60 }
 0x35d   : > { %6321 = vmatmul.mubr.msk.bf16.gmra.mxu1 %vm1584_vm1, %v4861_v4 }
 0x35e   : > { %v4847_v16 = vmax.f32 %v4815_v27, 0.0  ;;  %v4813_v47 = vadd.f32 %v8375_v62, %v4774_v13  ;;  %v5107_v27 = vunpack.c.h.bf16 %v6561_v37 }
 0x360   : > { %v4863_v53 = vpack.c.bf16 %v4847_v16, %v4846_v35  ;;  %v4845_v2 = vmax.f32 %v4813_v47, 0.0  ;;  %v5105_v47 = vunpack.c.h.bf16 %v6562_v12 }
 0x362   : > { %v4862_v41 = vpack.c.bf16 %v4845_v2, %v4844_v33 }
 0x364   : > { %6324 = vmatprep.mubr.msk.bf16.mxu1 %vm1584_vm1, %v4862_v41 }
 0x365   : > { %6325 = vmatmul.mubr.msk.bf16.gmra.mxu1 %vm1584_vm1, %v4863_v53 }
 0x3ed   : > { %v6298_v17 = vpop.f32.mrf.mxu1 }
 0x3ee   : > { %v4978_v62 = vadd.f32 %v6298_v17, %v8618_v51 }
 0x3ef   : > { %v4969_v29 = vpop.f32.mrf.mxu1 }
 0x3f0   : > { %v5130_v59 = vadd.f32 %v5098_v38, %v4978_v62  ;;  %v4970_v26 = vadd.f32 %v8618_v51, %v4969_v29  ;;  %v5110_v38 = vunpack.c.l.bf16 %v6563_v20  ;;  %v6564_v29 = vld [vmem:[%s6871_s16 + $0x30] sm:$0xff]  }
 0x3f1   : > { %v6299_v45 = vpop.f32.mrf.mxu1 }
 0x3f2   : > { %v5162_v36 = vmax.f32 %v5130_v59, 0.0  ;;  %v5128_v55 = vadd.f32 %v5096_v7, %v4970_v26  ;;  %v4981_v34 = vadd.f32 %v6299_v45, %v8618_v51  ;;  %v5108_v59 = vunpack.c.l.bf16 %v6564_v29 }
 0x3f3   : > { %v4972_v56 = vpop.f32.mrf.mxu1 }
 0x3f4   : > { %5194 = vst [vmem:[%s8626_s19 + $0x10] sm:$0xff] %v5162_v36  ;;  %v5160_v10 = vmax.f32 %v5128_v55, 0.0  ;;  %v5131_v9 = vadd.f32 %v5099_v14, %v4981_v34  ;;  %v4973_v31 = vadd.f32 %v8618_v51, %v4972_v56  ;;  %v5111_v36 = vunpack.c.h.bf16 %v6563_v20 }
 0x3f5   : > { %v6302_v30 = vpop.f32.mrf.mxu1 }
 0x3f6   : > { %5192 = vst [vmem:[%s8626_s19] sm:$0xff] %v5160_v10  ;;  %v5163_v42 = vmax.f32 %v5131_v9, 0.0  ;;  %v5129_v24 = vadd.f32 %v5097_v11, %v4973_v31  ;;  %v4994_v61 = vadd.f32 %v6302_v30, %v8618_v51  ;;  %v5109_v9 = vunpack.c.h.bf16 %v6564_v29 }
 0x3f7   : > { %v4985_v40 = vpop.f32.mrf.mxu1 }
 0x3f8   : > { %5195 = vst [vmem:[%s8626_s19 + $0x18] sm:$0xff] %v5163_v42  ;;  %v5161_v1 = vmax.f32 %v5129_v24, 0.0  ;;  %v5134_v3 = vadd.f32 %v5102_v49, %v4994_v61  ;;  %v4986_v18 = vadd.f32 %v8618_v51, %v4985_v40  ;;  %v6565_v42 = vld [vmem:[%s6871_s16 + $0x48] sm:$0xff]  }
 0x3f9   : > { %v6303_v50 = vpop.f32.mrf.mxu1  ;;  %v5114_v24 = vunpack.c.l.bf16 %v6565_v42 }
 0x3fa   : > { %5193 = vst [vmem:[%s8626_s19 + $0x8] sm:$0xff] %v5161_v1  ;;  %v5166_v0 = vmax.f32 %v5134_v3, 0.0  ;;  %v5132_v48 = vadd.f32 %v5100_v8, %v4986_v18  ;;  %v4997_v22 = vadd.f32 %v6303_v50, %v8618_v51  ;;  %v6566_v1 = vld [vmem:[%s6871_s16 + $0x40] sm:$0xff]  }
 0x3fb   : > { %v4988_v19 = vpop.f32.mrf.mxu1  ;;  %v5112_v3 = vunpack.c.l.bf16 %v6566_v1 }
 0x3fc   : > { %5198 = vst [vmem:[%s8626_s19 + $0x30] sm:$0xff] %v5166_v0  ;;  %v5164_v32 = vmax.f32 %v5132_v48, 0.0  ;;  %v5135_v25 = vadd.f32 %v5103_v54, %v4997_v22  ;;  %v4989_v4 = vadd.f32 %v8618_v51, %v4988_v19  ;;  %v5115_v48 = vunpack.c.h.bf16 %v6565_v42 }
 0x3fd   : > { %v6306_v63 = vpop.f32.mrf.mxu1 }
 0x3fe   : > { %5196 = vst [vmem:[%s8626_s19 + $0x20] sm:$0xff] %v5164_v32  ;;  %v5167_v58 = vmax.f32 %v5135_v25, 0.0  ;;  %v5133_v46 = vadd.f32 %v5101_v39, %v4989_v4  ;;  %v5010_v28 = vadd.f32 %v6306_v63, %v8618_v51  ;;  %v5113_v25 = vunpack.c.h.bf16 %v6566_v1 }
 0x3ff   : > { %v5001_v52 = vpop.f32.mrf.mxu1 }
 0x400   : > { %5199 = vst [vmem:[%s8626_s19 + $0x38] sm:$0xff] %v5167_v58  ;;  %v5165_v60 = vmax.f32 %v5133_v46, 0.0  ;;  %v5138_v57 = vadd.f32 %v5106_v23, %v5010_v28  ;;  %v5002_v21 = vadd.f32 %v8618_v51, %v5001_v52  ;;  %v6567_v58 = vld [vmem:[%s6871_s16 + $0x58] sm:$0xff]  }
 0x401   : > { %v6307_v6 = vpop.f32.mrf.mxu1  ;;  %v5118_v46 = vunpack.c.l.bf16 %v6567_v58 }
 0x402   : > { %5197 = vst [vmem:[%s8626_s19 + $0x28] sm:$0xff] %v5165_v60  ;;  %v5170_v13 = vmax.f32 %v5138_v57, 0.0  ;;  %v5136_v35 = vadd.f32 %v5104_v15, %v5002_v21  ;;  %v5013_v16 = vadd.f32 %v6307_v6, %v8618_v51  ;;  %v6568_v60 = vld [vmem:[%s6871_s16 + $0x50] sm:$0xff]  }
 0x403   : > { %v5004_v33 = vpop.f32.mrf.mxu1  ;;  %v5116_v57 = vunpack.c.l.bf16 %v6568_v60 }
 0x404   : > { %5202 = vst [vmem:[%s8626_s19 + $0x50] sm:$0xff] %v5170_v13  ;;  %v5168_v53 = vmax.f32 %v5136_v35, 0.0  ;;  %v5139_v2 = vadd.f32 %v5107_v27, %v5013_v16  ;;  %v5005_v41 = vadd.f32 %v8618_v51, %v5004_v33  ;;  %v5119_v35 = vunpack.c.h.bf16 %v6567_v58 }
 0x405   : > { %v6310_v17 = vpop.f32.mrf.mxu1 }
 0x406   : > { %5200 = vst [vmem:[%s8626_s19 + $0x40] sm:$0xff] %v5168_v53  ;;  %v5171_v44 = vmax.f32 %v5139_v2, 0.0  ;;  %v5137_v7 = vadd.f32 %v5105_v47, %v5005_v41  ;;  %v5026_v62 = vadd.f32 %v6310_v17, %v8618_v51  ;;  %v5117_v2 = vunpack.c.h.bf16 %v6568_v60 }
 0x407   : > { %v5017_v26 = vpop.f32.mrf.mxu1 }
 0x408   : > { %5203 = vst [vmem:[%s8626_s19 + $0x58] sm:$0xff] %v5171_v44  ;;  %v5169_v14 = vmax.f32 %v5137_v7, 0.0  ;;  %v5142_v45 = vadd.f32 %v5110_v38, %v5026_v62  ;;  %v5018_v11 = vadd.f32 %v8618_v51, %v5017_v26  ;;  %v6569_v44 = vld [vmem:[%s6871_s16 + $0x68] sm:$0xff]  }
 0x409   : > { %v6311_v55 = vpop.f32.mrf.mxu1  ;;  %v5122_v7 = vunpack.c.l.bf16 %v6569_v44 }
 0x40a   : > { %5201 = vst [vmem:[%s8626_s19 + $0x48] sm:$0xff] %v5169_v14  ;;  %v5174_v34 = vmax.f32 %v5142_v45, 0.0  ;;  %v5140_v56 = vadd.f32 %v5108_v59, %v5018_v11  ;;  %v5029_v10 = vadd.f32 %v6311_v55, %v8618_v51  ;;  %v6570_v14 = vld [vmem:[%s6871_s16 + $0x60] sm:$0xff]  }
 0x40b   : > { %v5020_v31 = vpop.f32.mrf.mxu1  ;;  %v5120_v45 = vunpack.c.l.bf16 %v6570_v14 }
 0x40c   : > { %5206 = vst [vmem:[%s8626_s19 + $0x70] sm:$0xff] %v5174_v34  ;;  %v5172_v43 = vmax.f32 %v5140_v56, 0.0  ;;  %v5143_v49 = vadd.f32 %v5111_v36, %v5029_v10  ;;  %v5021_v30 = vadd.f32 %v8618_v51, %v5020_v31  ;;  %v5123_v56 = vunpack.c.h.bf16 %v6569_v44 }
 0x40d   : > { %v6314_v61 = vpop.f32.mrf.mxu1 }
 0x40e   : > { %5204 = vst [vmem:[%s8626_s19 + $0x60] sm:$0xff] %v5172_v43  ;;  %v5175_v5 = vmax.f32 %v5143_v49, 0.0  ;;  %v5141_v8 = vadd.f32 %v5109_v9, %v5021_v30  ;;  %v5042_v40 = vadd.f32 %v6314_v61, %v8618_v51  ;;  %v5121_v49 = vunpack.c.h.bf16 %v6570_v14 }
 0x40f   : > { %v5033_v18 = vpop.f32.mrf.mxu1 }
 0x410   : > { %5207 = vst [vmem:[%s8626_s19 + $0x78] sm:$0xff] %v5175_v5  ;;  %v5173_v54 = vmax.f32 %v5141_v8, 0.0  ;;  %v5146_v50 = vadd.f32 %v5114_v24, %v5042_v40  ;;  %v5034_v0 = vadd.f32 %v8618_v51, %v5033_v18  ;;  %v6571_v5 = vld [vmem:[%s6871_s16 + $0x78] sm:$0xff]  }
 0x411   : > { %v6315_v22 = vpop.f32.mrf.mxu1  ;;  %v5126_v8 = vunpack.c.l.bf16 %v6571_v5 }
 0x412   : > { %5205 = vst [vmem:[%s8626_s19 + $0x68] sm:$0xff] %v5173_v54  ;;  %v5178_v39 = vmax.f32 %v5146_v50, 0.0  ;;  %v5144_v19 = vadd.f32 %v5112_v3, %v5034_v0  ;;  %v5045_v32 = vadd.f32 %v6315_v22, %v8618_v51  ;;  %v6572_v54 = vld [vmem:[%s6871_s16 + $0x70] sm:$0xff]   ;;  %s5715_s16 = sshll.u32 %s6766_s28, 12  ;;  %s6702_s28 = smov [#allocation8]  }
 0x413   : > { %v5036_v4 = vpop.f32.mrf.mxu1  ;;  %v5124_v50 = vunpack.c.l.bf16 %v6572_v54  ;;  %s8706_s20 = scalar_lea.hbm %s8760_s7, %s5715_s16  ;;  %s6631_s29 = sshll.u32 %s6702_s28, 4  ;;  %s6632_s29 = int_to_ptr.vmem [resolvable:$false] %s6631_s29 }
 0x414   : > { %5210 = vst [vmem:[%s8626_s19 + $0x90] sm:$0xff] %v5178_v39  ;;  %v5176_v37 = vmax.f32 %v5144_v19, 0.0  ;;  %v5147_v23 = vadd.f32 %v5115_v48, %v5045_v32  ;;  %v5037_v63 = vadd.f32 %v8618_v51, %v5036_v4  ;;  %v5127_v19 = vunpack.c.h.bf16 %v6571_v5  ;;  %s6633_s17 = scalar_lea.vmem %s6632_s29, 8192  ;;  %p6634_p10 = scmp.lt.s32.totalorder %s8708_s14, %s6632_s29 }
 0x415   : > { %v6318_v28 = vpop.f32.mrf.mxu1  ;;  %p6635_p12 = scmp.lt.s32.totalorder %s6633_s17, %s6627_s23 }
 0x416   : > { %5208 = vst [vmem:[%s8626_s19 + $0x80] sm:$0xff] %v5176_v37  ;;  %v5179_v12 = vmax.f32 %v5147_v23, 0.0  ;;  %v5145_v15 = vadd.f32 %v5113_v25, %v5037_v63  ;;  %v5058_v52 = vadd.f32 %v6318_v28, %v8618_v51  ;;  %v5125_v23 = vunpack.c.h.bf16 %v6572_v54 }
 0x417   : > { %v5049_v21 = vpop.f32.mrf.mxu1  ;;  %p6636_p13 = por %p6635_p12, %p6634_p10 }
 0x418   : > { %5211 = vst [vmem:[%s8626_s19 + $0x98] sm:$0xff] %v5179_v12  ;;  %v5177_v27 = vmax.f32 %v5145_v15, 0.0  ;;  %v5150_v6 = vadd.f32 %v5118_v46, %v5058_v52  ;;  %v5050_v13 = vadd.f32 %v8618_v51, %v5049_v21 }
 0x419   : > { %v6319_v16 = vpop.f32.mrf.mxu1  ;;  %p6637_p0 = pnand %p6636_p13, %p6630_p9 }
 0x41a   : > { %5209 = vst [vmem:[%s8626_s19 + $0x88] sm:$0xff] %v5177_v27  ;;  %v5182_v47 = vmax.f32 %v5150_v6, 0.0  ;;  %v5148_v33 = vadd.f32 %v5116_v57, %v5050_v13  ;;  %v5061_v53 = vadd.f32 %v6319_v16, %v8618_v51 }
 0x41b   : > { %v5052_v41 = vpop.f32.mrf.mxu1 }
 0x41c   : > { %5214 = vst [vmem:[%s8626_s19 + $0xb0] sm:$0xff] %v5182_v47  ;;  %v5180_v20 = vmax.f32 %v5148_v33, 0.0  ;;  %v5151_v38 = vadd.f32 %v5119_v35, %v5061_v53  ;;  %v5053_v17 = vadd.f32 %v8618_v51, %v5052_v41 }
 0x41d   : > { %v6322_v62 = vpop.f32.mrf.mxu1 }
 0x41e   : > { %5212 = vst [vmem:[%s8626_s19 + $0xa0] sm:$0xff] %v5180_v20  ;;  %v5183_v29 = vmax.f32 %v5151_v38, 0.0  ;;  %v5149_v59 = vadd.f32 %v5117_v2, %v5053_v17  ;;  %v5074_v26 = vadd.f32 %v6322_v62, %v8618_v51 }
 0x41f   : > { %v5065_v11 = vpop.f32.mrf.mxu1 }
 0x420   : > { %5215 = vst [vmem:[%s8626_s19 + $0xb8] sm:$0xff] %v5183_v29  ;;  %v5181_v36 = vmax.f32 %v5149_v59, 0.0  ;;  %v5154_v55 = vadd.f32 %v5122_v7, %v5074_v26  ;;  %v5066_v34 = vadd.f32 %v8618_v51, %v5065_v11 }
 0x421   : > { %v6323_v10 = vpop.f32.mrf.mxu1 }
 0x422   : > { %5213 = vst [vmem:[%s8626_s19 + $0xa8] sm:$0xff] %v5181_v36  ;;  %v5186_v9 = vmax.f32 %v5154_v55, 0.0  ;;  %v5152_v31 = vadd.f32 %v5120_v45, %v5066_v34  ;;  %v5077_v43 = vadd.f32 %v6323_v10, %v8618_v51 }
 0x423   : > { %v5068_v30 = vpop.f32.mrf.mxu1 }
 0x424   : > { %5218 = vst [vmem:[%s8626_s19 + $0xd0] sm:$0xff] %v5186_v9  ;;  %v5184_v42 = vmax.f32 %v5152_v31, 0.0  ;;  %v5155_v24 = vadd.f32 %v5123_v56, %v5077_v43  ;;  %v5069_v61 = vadd.f32 %v8618_v51, %v5068_v30 }
 0x425   : > { %v6326_v40 = vpop.f32.mrf.mxu1 }
 0x426   : > { %5216 = vst [vmem:[%s8626_s19 + $0xc0] sm:$0xff] %v5184_v42  ;;  %v5187_v1 = vmax.f32 %v5155_v24, 0.0  ;;  %v5153_v3 = vadd.f32 %v5121_v49, %v5069_v61  ;;  %v5090_v18 = vadd.f32 %v6326_v40, %v8618_v51 }
 0x427   : > { %v5081_v0 = vpop.f32.mrf.mxu1 }
 0x428   : > { %5219 = vst [vmem:[%s8626_s19 + $0xd8] sm:$0xff] %v5187_v1  ;;  %v5185_v48 = vmax.f32 %v5153_v3, 0.0  ;;  %v5158_v22 = vadd.f32 %v5126_v8, %v5090_v18  ;;  %v5082_v39 = vadd.f32 %v8618_v51, %v5081_v0 }
 0x429   : > { %v6327_v32 = vpop.f32.mrf.mxu1 }
 0x42a   : > { %5217 = vst [vmem:[%s8626_s19 + $0xc8] sm:$0xff] %v5185_v48  ;;  %v5190_v25 = vmax.f32 %v5158_v22, 0.0  ;;  %v5156_v4 = vadd.f32 %v5124_v50, %v5082_v39  ;;  %v5093_v37 = vadd.f32 %v6327_v32, %v8618_v51 }
 0x42b   : > { %v5084_v63 = vpop.f32.mrf.mxu1 }
 0x42c   : > { %5222 = vst [vmem:[%s8626_s19 + $0xf0] sm:$0xff] %v5190_v25  ;;  %v5188_v58 = vmax.f32 %v5156_v4, 0.0  ;;  %v5159_v46 = vadd.f32 %v5127_v19, %v5093_v37  ;;  %v5085_v28 = vadd.f32 %v8618_v51, %v5084_v63 }
 0x42e   : > { %5220 = vst [vmem:[%s8626_s19 + $0xe0] sm:$0xff] %v5188_v58  ;;  %v5191_v12 = vmax.f32 %v5159_v46, 0.0  ;;  %v5157_v15 = vadd.f32 %v5125_v23, %v5085_v28 }
 0x430   : > { %5223 = vst [vmem:[%s8626_s19 + $0xf8] sm:$0xff] %v5191_v12  ;;  %v5189_v52 = vmax.f32 %v5157_v15, 0.0 }
 0x432   : > { %5221 = vst [vmem:[%s8626_s19 + $0xe8] sm:$0xff] %v5189_v52 }
 0x433   : > { %6640 = shalt.err (!%p6637_p0)
}
 0x434   : > { %s6641_s12 = scalar_lea.hbm %s8706_s20, 4096  ;;  %s6645_s9 = scalar_lea.hbm %s8760_s7, 8192 }
 0x435   : > { %p6642_p5 = scmp.ne.s32.totalorder %s8706_s20, %s6641_s12  ;;  %p6646_p4 = scmp.lt.s32.totalorder %s8706_s20, %s8760_s7 }
 0x436   : > { %p6647_p6 = scmp.lt.s32.totalorder %s6645_s9, %s6641_s12 }
 0x437   : > { %p6643_p2 = pnand %p6642_p5, %p9099_p11 }
 0x438   : > { %p6648_p8 = por %p6647_p6, %p6646_p4 }
 0x439   : > { %p6644_p1 = pneg %p6643_p2 }
 0x43b   : > { %p6649_p3 = pnand %p6648_p8, %p6644_p1 }
 0x43d   : > { %6652 = shalt.err (!%p6649_p3)
}
 0x43e   : > { %s6703_s15 = smov 128   ;;  %s6704_s30 = smov 8  }
 0x43f   : > { %6338 = dma.vmem_to_hbm [thread:$0]  (%p9099_p11), %s8708_s14, 4096, %s8706_s20, %s5225_s11, %s6703_s15, %s6703_s15, %s6704_s30  }
 0x440 PF: > { %s5253_s23 = sand.u32 1, %s6683_s24   ;;  %p9100_p7 = scmp.ne.s32.totalorder %s8826_s8, 0 }
 0x441   : > { %p9101_p9 = scmp.ge.s32.totalorder %s6695_s27, 2  ;;  %s5254_s28 = scalar_lea.sflag [#allocation5], %s5253_s23 }
 0x443   : > { %p6349_p10 = pnand %p9101_p9, %p9100_p7 }
 0x445   : > { %p6350_p12 = pneg %p6349_p10 }
 0x447   : > { %6678 = dma.done.wait (%p6350_p12), %s5254_s28, 4096  }
 0x448   : > { %6680 = vsyncadd (%p6350_p12), %s5254_s28, 4294963200  ;;  %p21_p13 = scmp.ge.s32.totalorder %s6799_s13, 4   ;;  %s9102_s24 = smov %s6687_s25 }
 0x449   : > { %s9103_s25 = smov %s6691_s26  ;;  %s9104_s26 = smov %s6819_s21 }
 0x44a   : > { %s9105_s27 = smov %s6799_s13  ;;  %23 = sbr.rel (!%p21_p13) target bundleno = 8 (0x8), region = 105 }
 0x44f   :  { %5259 = vsyncpa [#allocation4], 1 }
 0x450   :  { %5261 = vsyncpa [#allocation4 + $0x1], 1 }
 0x451   :  { %5262 = vsyncpa [#allocation7], 1 }
 0x452   :  { %5263 = vsyncpa [#allocation5], 1 }
 0x453   :  { %5265 = vsyncpa [#allocation5 + $0x1], 1 }

</bundles_post_ra>
